<compile_context>
chip_gen: v7x
topology: tpu7x:2x2x1
jax: 0.10.0
libtpu: 0.0.40
codegen_flags: <defaults>
</compile_context>

<pallas_src>
import functools

import jax
import jax.numpy as jnp
import numpy as np
from jax import lax
from jax.experimental import pallas as pl
from jax.experimental.pallas import tpu as pltpu


def _round_up(v, m):
    return ((v + m - 1) // m) * m


# ----------------------------------------------------------------------------
# Kernel 1: TT ConvLSTM time steps per grid iteration (state carried in VMEM),
#           BN sum/sumsq accumulated lane-dense, reduced once at the last chunk.
# ----------------------------------------------------------------------------
def _convlstm_chunk_kernel(x_ref, lap_hbm, wbd_ref, bias_ref,            # inputs
                           y_ref, stats_ref,                             # outputs
                           lap_scr, feat_scr, c_scr, stat_scr, lap_sem,  # scratch
                           *, K, hid, batch, cin, tt, t_total):
    chunk = pl.program_id(0)
    bh = batch * hid
    bc = batch * cin

    @pl.when(chunk == 0)
    def _init():
        # Laplacian: HBM -> single VMEM buffer, once (no double buffering of the largest
        # resident; hook for N-tiling / sparse lap handling at realistic mesh sizes).
        cp = pltpu.make_async_copy(lap_hbm, lap_scr, lap_sem)
        cp.start()
        cp.wait()
        # ConvLSTM init_hidden: zeros.  The hidden rows live inside the feature scratch.
        feat_scr[pl.ds(bc, bh), :] = jnp.zeros((bh, feat_scr.shape[1]), feat_scr.dtype)
        c_scr[...] = jnp.zeros_like(c_scr)
        stat_scr[...] = jnp.zeros_like(stat_scr)

    lapT = lap_scr[...]            # [N, N] (compute dtype), hoisted once per chunk
    bias = bias_ref[...]           # [4*B*H, 1] f32, lane-broadcast add per step
    cdt = lapT.dtype

    def step(i, carry):
        @pl.when(chunk * tt + i < t_total)        # mask padded tail time steps
        def _():
            # Only the x rows change; the h rows already hold h_{t-1} (written in place).
            feat_scr[pl.ds(0, bc), :] = x_ref[i]
            x0 = feat_scr[...]                                    # [B*Cin + B*H, N]

            # Chebyshev recursion first: lapT is the only MXU RHS for K-1 consecutive
            # matmuls, so it stays staged in the MXU weight registers.
            xs = [x0]
            for k in range(1, K):
                if k == 1:
                    xk = jnp.dot(x0.astype(cdt), lapT,
                                 preferred_element_type=jnp.float32)
                else:
                    xk = 2.0 * jnp.dot(xs[-1].astype(cdt), lapT,
                                       preferred_element_type=jnp.float32) - xs[-2]
                xs.append(xk)

            # Gate projection: block-diagonal weights fuse the batch into one matmul per
            # order.  (Fine while B*(Cin+H) <= the MXU native tile; switch to per-batch
            # dense matmuls beyond that.)
            gates = jnp.dot(wbd_ref[0], xs[0].astype(cdt),
                            preferred_element_type=jnp.float32)
            for k in range(1, K):
                gates = gates + jnp.dot(wbd_ref[k], xs[k].astype(cdt),
                                        preferred_element_type=jnp.float32)
            gates = gates + bias

            # Gate-major rows: [i | f | o | g], each ordered (batch, hidden).
            # Elementwise gate math stays f32 (v5e has no bf16 VPU/EUP).
            i_g = jax.nn.sigmoid(gates[0 * bh:1 * bh])
            f_g = jax.nn.sigmoid(gates[1 * bh:2 * bh])
            o_g = jax.nn.sigmoid(gates[2 * bh:3 * bh])
            g_g = jnp.tanh(gates[3 * bh:4 * bh])

            c_next = f_g * c_scr[...] + i_g * g_g                 # [B*H, N], lane-dense
            h_next = o_g * jnp.tanh(c_next)
            c_scr[...] = c_next
            feat_scr[pl.ds(bc, bh), :] = h_next                   # in-place hidden update

            y_ref[:, pl.ds(i, 1), :, :] = (
                h_next.reshape(batch, 1, hid, h_next.shape[-1]).astype(y_ref.dtype))

            # BN statistics: lane-dense VPU accumulation only (XLU reduce deferred).
            stat_scr[pl.ds(0, bh), :] = stat_scr[pl.ds(0, bh), :] + h_next
            stat_scr[pl.ds(bh, bh), :] = stat_scr[pl.ds(bh, bh), :] + h_next * h_next
        return carry

    lax.fori_loop(0, tt, step, 0, unroll=(tt <= 8))

    @pl.when(chunk == pl.num_programs(0) - 1)
    def _finalize():
        tot = stat_scr[...].reshape(2, batch, hid, stat_scr.shape[-1])
        stats_ref[...] = jnp.sum(tot, axis=(1, 3))                # [2, H] once, not per step


# ----------------------------------------------------------------------------
# Kernel 2: pure streaming normalize + ReLU (scale/shift precomputed from stats).
# ----------------------------------------------------------------------------
def _bn_relu_kernel(y_ref, scale_ref, shift_ref, out_ref):
    y = y_ref[...]                                  # [rb, H, N]
    s = scale_ref[...][None]                        # [1, H, 1] lane/row broadcast
    b = shift_ref[...][None]
    out_ref[...] = jnp.maximum(y * s + b, 0.0).astype(out_ref.dtype)


# ----------------------------------------------------------------------------
# Wrapper-side weight / budget preparation.
# ----------------------------------------------------------------------------
def _build_block_diag_weights(w, batch, cin, hid, dtype):
    """w: [K, Cin+H, 4H] -> [K, 4*B*H, B*Cin + B*H] block-diagonal-over-batch weights.

    Rows are gate-major (gate, batch, hidden); columns are [x rows batch-major | h rows
    batch-major], matching the kernel's stacked feature-scratch layout.
    NOTE: grows O(B^2); switch to per-batch dense matmuls once B*(Cin+H) exceeds the MXU
    native tile (128 on v5e, 256 on v6e/v7x).
    """
    K = w.shape[0]
    wT = jnp.swapaxes(w, 1, 2)                      # [K, 4H, Fin]
    out_rows = 4 * batch * hid
    in_cols = batch * (cin + hid)
    wbd = jnp.zeros((K, out_rows, in_cols), jnp.float32)
    hh = jnp.arange(hid)
    for bb in range(batch):
        rows = (jnp.arange(4)[:, None] * (batch * hid) + bb * hid + hh[None, :]).reshape(-1)
        col_x = bb * cin + jnp.arange(cin)
        col_h = batch * cin + bb * hid + hh
        wbd = wbd.at[:, rows[:, None], col_x[None, :]].set(wT[:, :, :cin])
        wbd = wbd.at[:, rows[:, None], col_h[None, :]].set(wT[:, :, cin:])
    return wbd.astype(dtype)


def _pick_row_block(bt, hid, n, target_bytes=4 << 20):
    """Large lane-dense row blocks for the BN pass; tail handled by a cdiv grid + masking."""
    bytes_per_row = _round_up(hid, 8) * _round_up(n, 128) * 4
    rows = int(min(bt, max(1, target_bytes // bytes_per_row)))
    if rows >= 8:
        rows = (rows // 8) * 8
    return rows


def _vmem_limit_k1(N, batch, cin, hid, K, tt, cd_bytes):
    bc, bh = batch * cin, batch * hid

    def tile(r, c, isz):
        return _round_up(r, 8) * _round_up(c, 128) * isz

    scr = (tile(N, N, cd_bytes) + tile(bc + bh, N, 4) + tile(bh, N, 4)
           + tile(2 * bh, N, 4))
    io = 2 * tt * tile(bc, N, 4) + 2 * batch * tt * tile(hid, N, 4)
    wts = (2 * K * tile(4 * bh, bc + bh, cd_bytes) + 2 * tile(4 * bh, 1, 4)
           + 2 * tile(2, hid, 4))
    return int(min(128 << 20, 2 * (scr + io + wts) + (16 << 20)))


def _vmem_limit_k2(rb, hid, n):
    blk = rb * _round_up(hid, 8) * _round_up(n, 128) * 4
    return int(min(128 << 20, 8 * blk + (8 << 20)))


# ----------------------------------------------------------------------------
# Wrapper
# ----------------------------------------------------------------------------
def convlstm_spherical_cheb_bn(x, lap, w, b, gamma, beta, *, hid, K, eps=1e-5,
                               time_block=8, compute_dtype=jnp.float32):
    """x: [B, T, N, Cin]  ->  [B, T, hid, N]

    `compute_dtype` is the MXU operand dtype for the Laplacian recursion / gate projection
    (use jnp.bfloat16 on v6e/v7x after validating against the f32 reference); accumulation,
    gate nonlinearities and BN statistics always stay in f32.
    """
    B, T, N, Cin = x.shape
    BH = B * hid
    BC = B * Cin
    in_rows = BC + BH
    tt = max(1, min(int(time_block), T))
    num_chunks = pl.cdiv(T, tt)

    # Pre-pack x to [T, B*Cin, N]: vertices land on the lane axis and the per-step matmul LHS
    # rows arrive already in the layout the kernel stacks them in (no per-step concatenate).
    x_packed = jnp.transpose(x, (1, 0, 3, 2)).reshape(T, BC, N).astype(jnp.float32)
    lapT = jnp.transpose(lap).astype(compute_dtype)                 # stays in HBM (pl.ANY)
    wbd = _build_block_diag_weights(w.astype(jnp.float32), B, Cin, hid, compute_dtype)
    bias_col = jnp.broadcast_to(b.reshape(4, hid)[:, None, :],
                                (4, B, hid)).reshape(4 * BH, 1).astype(jnp.float32)

    step_kernel = functools.partial(_convlstm_chunk_kernel, K=K, hid=hid, batch=B,
                                    cin=Cin, tt=tt, t_total=T)
    cd_bytes = jnp.dtype(compute_dtype).itemsize
    y, stats = pl.pallas_call(
        step_kernel,
        out_shape=(jax.ShapeDtypeStruct((B, T, hid, N), jnp.float32),
                   jax.ShapeDtypeStruct((2, hid), jnp.float32)),
        grid_spec=pltpu.PrefetchScalarGridSpec(
            num_scalar_prefetch=0,
            grid=(num_chunks,),
            in_specs=[
                pl.BlockSpec((tt, BC, N), lambda c: (c, 0, 0)),      # x chunk [tt, B*Cin, N]
                pl.BlockSpec(memory_space=pl.ANY),                   # lap^T left in HBM
                pl.BlockSpec((K, 4 * BH, in_rows), lambda c: (0, 0, 0)),
                pl.BlockSpec((4 * BH, 1), lambda c: (0, 0)),
            ],
            out_specs=[
                pl.BlockSpec((B, tt, hid, N), lambda c: (0, c, 0, 0)),
                pl.BlockSpec((2, hid), lambda c: (0, 0)),            # resident stats block
            ],
            scratch_shapes=[
                pltpu.VMEM((N, N), compute_dtype),        # Laplacian (single-buffered)
                pltpu.VMEM((in_rows, N), jnp.float32),    # [x rows | h rows] feature scratch
                pltpu.VMEM((BH, N), jnp.float32),         # cell state c
                pltpu.VMEM((2 * BH, N), jnp.float32),     # BN sum / sumsq accumulators
                pltpu.SemaphoreType.DMA(()),              # lap copy semaphore
            ],
        ),
        compiler_params=pltpu.CompilerParams(
            dimension_semantics=("arbitrary",),
            vmem_limit_bytes=_vmem_limit_k1(N, B, Cin, hid, K, tt, cd_bytes)),
    )(x_packed, lapT, wbd, bias_col)
    # TODO(synk): for two-TC v7x, add a leading "parallel" grid axis over batch halves
    # (per-half scratch + per-half stats combined here); a single serial T grid uses one core.

    # Per-channel BN affine folding from kernel-1 statistics (training-mode biased var, f32).
    count = B * T * N
    mean = stats[0] / count
    var = stats[1] / count - mean * mean
    inv = lax.rsqrt(var + eps)
    scale_vec = gamma.reshape(-1).astype(jnp.float32) * inv
    shift_vec = beta.reshape(-1).astype(jnp.float32) - mean * scale_vec
    scale = scale_vec.reshape(hid, 1)
    shift = shift_vec.reshape(hid, 1)

    BT = B * T
    y2 = y.reshape(BT, hid, N)                      # free leading-dim merge (torch reshape)
    rb = _pick_row_block(BT, hid, N)
    out = pl.pallas_call(
        _bn_relu_kernel,
        out_shape=jax.ShapeDtypeStruct((BT, hid, N), jnp.float32),
        grid_spec=pltpu.PrefetchScalarGridSpec(
            num_scalar_prefetch=0,
            grid=(pl.cdiv(BT, rb),),                # masked tail instead of rb=1 fallback
            in_specs=[
                pl.BlockSpec((rb, hid, N), lambda i: (i, 0, 0)),
                pl.BlockSpec((hid, 1), lambda i: (0, 0)),
                pl.BlockSpec((hid, 1), lambda i: (0, 0)),
            ],
            out_specs=pl.BlockSpec((rb, hid, N), lambda i: (i, 0, 0)),
        ),
        compiler_params=pltpu.CompilerParams(
            dimension_semantics=("parallel",),
            vmem_limit_bytes=_vmem_limit_k2(rb, hid, N)),
        input_output_aliases={0: 0},                # normalize in place, no extra HBM buffer
    )(y2, scale, shift)
    # TODO(synk): emitting y in bf16 from kernel 1 (normalizing in f32 here) would halve this
    # HBM-bandwidth pass; kept f32 so the output matches the PyTorch module's f32 forward.

    return out.reshape(B, T, hid, N)


# ----------------------------------------------------------------------------
# Pure-JAX reference (same math, high-precision dots) for a correctness check.
# ----------------------------------------------------------------------------
def _reference(x, lap, w, b, gamma, beta, *, hid, K):
    B, T, N, Cin = x.shape
    hp = jax.lax.Precision.HIGHEST
    h = jnp.zeros((B, N, hid), jnp.float32)
    c = jnp.zeros((B, N, hid), jnp.float32)
    outs = []
    for t in range(T):
        comb = jnp.concatenate([x[:, t], h], axis=-1)               # [B, N, Fin]
        x0 = comb
        gates = jnp.einsum('bnf,fo->bno', x0, w[0], precision=hp)
        x1 = jnp.einsum('vw,bwf->bvf', lap, x0, precision=hp)
        gates += jnp.einsum('bnf,fo->bno', x1, w[1], precision=hp)
        xm2, xm1 = x0, x1
        for k in range(2, K):
            x2 = 2.0 * jnp.einsum('vw,bwf->bvf', lap, xm1, precision=hp) - xm2
            gates += jnp.einsum('bnf,fo->bno', x2, w[k], precision=hp)
            xm2, xm1 = xm1, x2
        gates = gates + b[0]
        i = jax.nn.sigmoid(gates[..., 0 * hid:1 * hid])
        f = jax.nn.sigmoid(gates[..., 1 * hid:2 * hid])
        o = jax.nn.sigmoid(gates[..., 2 * hid:3 * hid])
        g = jnp.tanh(gates[..., 3 * hid:4 * hid])
        c = f * c + i * g
        h = o * jnp.tanh(c)
        outs.append(jnp.transpose(h, (0, 2, 1)))                    # [B, hid, N]
    y = jnp.stack(outs, axis=1)                                     # [B, T, hid, N]
    y2 = y.reshape(B * T, hid, N)
    mean = y2.mean(axis=(0, 2), keepdims=True)
    var = ((y2 - mean) ** 2).mean(axis=(0, 2), keepdims=True)
    yn = (y2 - mean) / jnp.sqrt(var + 1e-5)
    yn = yn * gamma[0][None, :, None] + beta[0][None, :, None]
    return jnp.maximum(yn, 0.0).reshape(B, T, hid, N)


if __name__ == "__main__":
    B, T, N = 2, 6, 128          # batch, time, vertices (T=6 exercises the masked tail paths)
    Cin, H, K = 4, 8, 3          # in_channels, out_channels (hidden), Chebyshev kernel_size

    key = jax.random.PRNGKey(0)
    kx, kw, kb = jax.random.split(key, 3)
    x = jax.random.normal(kx, (B, T, N, Cin), dtype=jnp.float32)

    # Synthetic rescaled graph Laplacian (ring graph with 1- and 2-hop neighbours),
    # spectrum contained in [-1, 1] as after deepsphere's lmax rescaling.
    eye = np.eye(N, dtype=np.float32)
    r1 = np.roll(eye, 1, axis=1)
    r2 = np.roll(eye, 2, axis=1)
    adj = 0.35 * (r1 + r1.T) + 0.15 * (r2 + r2.T)
    lap = jnp.asarray(-adj, dtype=jnp.float32)

    Fin = Cin + H
    w = 0.2 * jax.random.normal(kw, (K, Fin, 4 * H), dtype=jnp.float32)   # Cheb weights
    b = 0.1 * jax.random.normal(kb, (1, 4 * H), dtype=jnp.float32)        # gate bias
    gamma = jnp.ones((1, H), jnp.float32)    # BatchNorm1d weight (default init)
    beta = jnp.zeros((1, H), jnp.float32)    # BatchNorm1d bias   (default init)
    # TODO(synk): BatchNorm1d running_mean/running_var buffer updates are train-time
    # bookkeeping and do not affect the forward output, so they are not implemented.

    fn = jax.jit(functools.partial(convlstm_spherical_cheb_bn, hid=H, K=K, time_block=4))
    out = jax.block_until_ready(fn(x, lap, w, b, gamma, beta))

    ref = _reference(x, lap, w, b, gamma, beta, hid=H, K=K)
    err = float(jnp.max(jnp.abs(out - ref)))
    assert out.shape == (B, T, H, N), out.shape
    assert err < 1e-2, f"max abs error {err}"
    print("KERNEL_OK")
</pallas_src>

<mosaic_0001>
module attributes {stable_mosaic.version = 11 : i64} {
  func.func @_convlstm_chunk_kernel(%arg0: i32, %arg1: memref<4x8x128xf32, #tpu.memory_space<vmem>>, %arg2: memref<128x128xf32, #tpu.memory_space<any>>, %arg3: memref<3x64x24xf32, #tpu.memory_space<vmem>>, %arg4: memref<64x1xf32, #tpu.memory_space<vmem>>, %arg5: memref<2x4x8x128xf32, #tpu.memory_space<vmem>>, %arg6: memref<2x8xf32, #tpu.memory_space<vmem>>, %arg7: memref<128x128xf32, #tpu.memory_space<vmem>>, %arg8: memref<24x128xf32, #tpu.memory_space<vmem>>, %arg9: memref<16x128xf32, #tpu.memory_space<vmem>>, %arg10: memref<32x128xf32, #tpu.memory_space<vmem>>, %arg11: memref<!tpu.dma_semaphore, #tpu.memory_space<semaphore_mem>>) attributes {dimension_semantics = [#tpu.dimension_semantics<arbitrary>], iteration_bounds = array<i64: 2>, scalar_prefetch = 0 : i64, scratch_operands = 5 : i64, tpu.core_type = #tpu.core_type<tc>, window_params = [{transform_indices = @transform_0, window_bounds = array<i64: 4, 8, 128>}, {}, {pipeline_mode = #tpu.pipeline_mode<synchronous>, transform_indices = @transform_2, window_bounds = array<i64: 3, 64, 24>}, {pipeline_mode = #tpu.pipeline_mode<synchronous>, transform_indices = @transform_3, window_bounds = array<i64: 64, 1>}, {transform_indices = @transform_4, window_bounds = array<i64: 2, 4, 8, 128>}, {pipeline_mode = #tpu.pipeline_mode<synchronous>, transform_indices = @transform_5, window_bounds = array<i64: 2, 8>}]} {
    %c0_i32 = arith.constant 0 : i32
    %0 = arith.cmpi eq, %arg0, %c0_i32 : i32
    %1 = arith.extui %0 : i1 to i32
    %c0_i32_0 = arith.constant 0 : i32
    %2 = arith.cmpi ne, %1, %c0_i32_0 : i32
    scf.if %2 {
      tpu.enqueue_dma source(%arg2 : memref<128x128xf32, #tpu.memory_space<any>>) target(%arg7 : memref<128x128xf32, #tpu.memory_space<vmem>>) target_semaphore(%arg11 : memref<!tpu.dma_semaphore, #tpu.memory_space<semaphore_mem>>)
      tpu.wait_dma2 semaphore(%arg11 : memref<!tpu.dma_semaphore, #tpu.memory_space<semaphore_mem>>) src(%arg2 : memref<128x128xf32, #tpu.memory_space<any>>) dst(%arg7 : memref<128x128xf32, #tpu.memory_space<vmem>>)
      %cst = arith.constant 0.000000e+00 : f32
      %28 = vector.broadcast %cst : f32 to vector<16x128xf32>
      %c8 = arith.constant 8 : index
      %c0_18 = arith.constant 0 : index
      %29 = vector.load %arg8[%c8, %c0_18] : memref<24x128xf32, #tpu.memory_space<vmem>>, vector<16x128xf32>
      tpu.vector_store %arg8[%c8, %c0_18], %28 {strides = array<i32>} : memref<24x128xf32, #tpu.memory_space<vmem>>, vector<16x128xf32>,
      %cst_19 = arith.constant 0.000000e+00 : f32
      %30 = vector.broadcast %cst_19 : f32 to vector<16x128xf32>
      %c0_20 = arith.constant 0 : index
      %c0_21 = arith.constant 0 : index
      %31 = vector.load %arg9[%c0_20, %c0_21] : memref<16x128xf32, #tpu.memory_space<vmem>>, vector<16x128xf32>
      tpu.vector_store %arg9[%c0_20, %c0_21], %30 {strides = array<i32>} : memref<16x128xf32, #tpu.memory_space<vmem>>, vector<16x128xf32>,
      %cst_22 = arith.constant 0.000000e+00 : f32
      %32 = vector.broadcast %cst_22 : f32 to vector<32x128xf32>
      %c0_23 = arith.constant 0 : index
      %c0_24 = arith.constant 0 : index
      %33 = vector.load %arg10[%c0_23, %c0_24] : memref<32x128xf32, #tpu.memory_space<vmem>>, vector<32x128xf32>
      tpu.vector_store %arg10[%c0_23, %c0_24], %32 {strides = array<i32>} : memref<32x128xf32, #tpu.memory_space<vmem>>, vector<32x128xf32>,
    } else {
    }
    %c0 = arith.constant 0 : index
    %c0_1 = arith.constant 0 : index
    %3 = vector.load %arg7[%c0, %c0_1] : memref<128x128xf32, #tpu.memory_space<vmem>>, vector<128x128xf32>
    %c0_2 = arith.constant 0 : index
    %c0_3 = arith.constant 0 : index
    %4 = vector.load %arg4[%c0_2, %c0_3] : memref<64x1xf32, #tpu.memory_space<vmem>>, vector<64x1xf32>
    %c0_i32_4 = arith.constant 0 : i32
    %c4_i32 = arith.constant 4 : i32
    %5 = arith.muli %arg0, %c4_i32 : i32
    %6 = arith.addi %5, %c0_i32_4 : i32
    %c6_i32 = arith.constant 6 : i32
    %7 = arith.cmpi slt, %6, %c6_i32 : i32
    %8 = arith.extui %7 : i1 to i32
    %c0_i32_5 = arith.constant 0 : i32
    %9 = arith.cmpi ne, %8, %c0_i32_5 : i32
    scf.if %9 {
      %28 = arith.index_cast %c0_i32_4 : i32 to index
      %c0_18 = arith.constant 0 : index
      %c0_19 = arith.constant 0 : index
      %29 = vector.load %arg1[%28, %c0_18, %c0_19] : memref<4x8x128xf32, #tpu.memory_space<vmem>>, vector<1x8x128xf32>
      %30 = vector.shape_cast %29 : vector<1x8x128xf32> to vector<8x128xf32>
      %c0_20 = arith.constant 0 : index
      %c0_21 = arith.constant 0 : index
      %31 = vector.load %arg8[%c0_20, %c0_21] : memref<24x128xf32, #tpu.memory_space<vmem>>, vector<8x128xf32>
      tpu.vector_store %arg8[%c0_20, %c0_21], %30 {strides = array<i32>} : memref<24x128xf32, #tpu.memory_space<vmem>>, vector<8x128xf32>,
      %c0_22 = arith.constant 0 : index
      %c0_23 = arith.constant 0 : index
      %32 = vector.load %arg8[%c0_22, %c0_23] : memref<24x128xf32, #tpu.memory_space<vmem>>, vector<24x128xf32>
      %cst = arith.constant dense<0.000000e+00> : vector<24x128xf32>
      %33 = tpu.matmul %32, %3, %cst {dimension_numbers = #tpu.dot_dimension_numbers<[1], [0], [0], [1], [0, 0, 1, 1], [], []>} : vector<24x128xf32>, vector<128x128xf32>, vector<24x128xf32> -> vector<24x128xf32>
      %cst_24 = arith.constant dense<0.000000e+00> : vector<24x128xf32>
      %34 = tpu.matmul %33, %3, %cst_24 {dimension_numbers = #tpu.dot_dimension_numbers<[1], [0], [0], [1], [0, 0, 1, 1], [], []>} : vector<24x128xf32>, vector<128x128xf32>, vector<24x128xf32> -> vector<24x128xf32>
      %cst_25 = arith.constant 2.000000e+00 : f32
      %35 = vector.broadcast %cst_25 : f32 to vector<24x128xf32>
      %36 = arith.mulf %35, %34 : vector<24x128xf32>
      %37 = arith.subf %36, %32 : vector<24x128xf32>
      %c0_26 = arith.constant 0 : index
      %c0_27 = arith.constant 0 : index
      %c0_28 = arith.constant 0 : index
      %38 = vector.load %arg3[%c0_26, %c0_27, %c0_28] : memref<3x64x24xf32, #tpu.memory_space<vmem>>, vector<1x64x24xf32>
      %39 = vector.shape_cast %38 : vector<1x64x24xf32> to vector<64x24xf32>
      %cst_29 = arith.constant dense<0.000000e+00> : vector<64x128xf32>
      %40 = tpu.matmul %39, %32, %cst_29 {dimension_numbers = #tpu.dot_dimension_numbers<[1], [0], [0], [1], [0, 0, 1, 1], [], []>} : vector<64x24xf32>, vector<24x128xf32>, vector<64x128xf32> -> vector<64x128xf32>
      %c1 = arith.constant 1 : index
      %c0_30 = arith.constant 0 : index
      %c0_31 = arith.constant 0 : index
      %41 = vector.load %arg3[%c1, %c0_30, %c0_31] : memref<3x64x24xf32, #tpu.memory_space<vmem>>, vector<1x64x24xf32>
      %42 = vector.shape_cast %41 : vector<1x64x24xf32> to vector<64x24xf32>
      %cst_32 = arith.constant dense<0.000000e+00> : vector<64x128xf32>
      %43 = tpu.matmul %42, %33, %cst_32 {dimension_numbers = #tpu.dot_dimension_numbers<[1], [0], [0], [1], [0, 0, 1, 1], [], []>} : vector<64x24xf32>, vector<24x128xf32>, vector<64x128xf32> -> vector<64x128xf32>
      %44 = arith.addf %40, %43 : vector<64x128xf32>
      %c2 = arith.constant 2 : index
      %c0_33 = arith.constant 0 : index
      %c0_34 = arith.constant 0 : index
      %45 = vector.load %arg3[%c2, %c0_33, %c0_34] : memref<3x64x24xf32, #tpu.memory_space<vmem>>, vector<1x64x24xf32>
      %46 = vector.shape_cast %45 : vector<1x64x24xf32> to vector<64x24xf32>
      %cst_35 = arith.constant dense<0.000000e+00> : vector<64x128xf32>
      %47 = tpu.matmul %46, %37, %cst_35 {dimension_numbers = #tpu.dot_dimension_numbers<[1], [0], [0], [1], [0, 0, 1, 1], [], []>} : vector<64x24xf32>, vector<24x128xf32>, vector<64x128xf32> -> vector<64x128xf32>
      %48 = arith.addf %44, %47 : vector<64x128xf32>
      %49 = vector.broadcast %4 : vector<64x1xf32> to vector<64x128xf32>
      %50 = arith.addf %48, %49 : vector<64x128xf32>
      %51 = vector.extract_strided_slice %50 {offsets = [0, 0], sizes = [16, 128], strides = [1, 1]} : vector<64x128xf32> to vector<16x128xf32>
      %52 = arith.negf %51 : vector<16x128xf32>
      %53 = math.exp %52 : vector<16x128xf32>
      %cst_36 = arith.constant 1.000000e+00 : f32
      %54 = vector.broadcast %cst_36 : f32 to vector<16x128xf32>
      %55 = arith.addf %54, %53 : vector<16x128xf32>
      %56 = arith.divf %54, %55 : vector<16x128xf32>
      %57 = vector.extract_strided_slice %50 {offsets = [16, 0], sizes = [16, 128], strides = [1, 1]} : vector<64x128xf32> to vector<16x128xf32>
      %58 = arith.negf %57 : vector<16x128xf32>
      %59 = math.exp %58 : vector<16x128xf32>
      %cst_37 = arith.constant 1.000000e+00 : f32
      %60 = vector.broadcast %cst_37 : f32 to vector<16x128xf32>
      %61 = arith.addf %60, %59 : vector<16x128xf32>
      %62 = arith.divf %60, %61 : vector<16x128xf32>
      %63 = vector.extract_strided_slice %50 {offsets = [32, 0], sizes = [16, 128], strides = [1, 1]} : vector<64x128xf32> to vector<16x128xf32>
      %64 = arith.negf %63 : vector<16x128xf32>
      %65 = math.exp %64 : vector<16x128xf32>
      %cst_38 = arith.constant 1.000000e+00 : f32
      %66 = vector.broadcast %cst_38 : f32 to vector<16x128xf32>
      %67 = arith.addf %66, %65 : vector<16x128xf32>
      %68 = arith.divf %66, %67 : vector<16x128xf32>
      %69 = vector.extract_strided_slice %50 {offsets = [48, 0], sizes = [16, 128], strides = [1, 1]} : vector<64x128xf32> to vector<16x128xf32>
      %70 = math.tanh %69 : vector<16x128xf32>
      %c0_39 = arith.constant 0 : index
      %c0_40 = arith.constant 0 : index
      %71 = vector.load %arg9[%c0_39, %c0_40] : memref<16x128xf32, #tpu.memory_space<vmem>>, vector<16x128xf32>
      %72 = arith.mulf %62, %71 : vector<16x128xf32>
      %73 = arith.mulf %56, %70 : vector<16x128xf32>
      %74 = arith.addf %72, %73 : vector<16x128xf32>
      %75 = math.tanh %74 : vector<16x128xf32>
      %76 = arith.mulf %68, %75 : vector<16x128xf32>
      %c0_41 = arith.constant 0 : index
      %c0_42 = arith.constant 0 : index
      %77 = vector.load %arg9[%c0_41, %c0_42] : memref<16x128xf32, #tpu.memory_space<vmem>>, vector<16x128xf32>
      tpu.vector_store %arg9[%c0_41, %c0_42], %74 {strides = array<i32>} : memref<16x128xf32, #tpu.memory_space<vmem>>, vector<16x128xf32>,
      %c8 = arith.constant 8 : index
      %c0_43 = arith.constant 0 : index
      %78 = vector.load %arg8[%c8, %c0_43] : memref<24x128xf32, #tpu.memory_space<vmem>>, vector<16x128xf32>
      tpu.vector_store %arg8[%c8, %c0_43], %76 {strides = array<i32>} : memref<24x128xf32, #tpu.memory_space<vmem>>, vector<16x128xf32>,
      %79 = vector.shape_cast %76 : vector<16x128xf32> to vector<2x1x8x128xf32>
      %c0_44 = arith.constant 0 : index
      %80 = arith.index_cast %c0_i32_4 : i32 to index
      %c0_45 = arith.constant 0 : index
      %c0_46 = arith.constant 0 : index
      %81 = vector.load %arg5[%c0_44, %80, %c0_45, %c0_46] : memref<2x4x8x128xf32, #tpu.memory_space<vmem>>, vector<2x1x8x128xf32>
      tpu.vector_store %arg5[%c0_44, %80, %c0_45, %c0_46], %79 {strides = array<i32>} : memref<2x4x8x128xf32, #tpu.memory_space<vmem>>, vector<2x1x8x128xf32>,
      %c0_47 = arith.constant 0 : index
      %c0_48 = arith.constant 0 : index
      %82 = vector.load %arg10[%c0_47, %c0_48] : memref<32x128xf32, #tpu.memory_space<vmem>>, vector<16x128xf32>
      %83 = arith.addf %82, %76 : vector<16x128xf32>
      %c0_49 = arith.constant 0 : index
      %c0_50 = arith.constant 0 : index
      %84 = vector.load %arg10[%c0_49, %c0_50] : memref<32x128xf32, #tpu.memory_space<vmem>>, vector<16x128xf32>
      tpu.vector_store %arg10[%c0_49, %c0_50], %83 {strides = array<i32>} : memref<32x128xf32, #tpu.memory_space<vmem>>, vector<16x128xf32>,
      %c16 = arith.constant 16 : index
      %c0_51 = arith.constant 0 : index
      %85 = vector.load %arg10[%c16, %c0_51] : memref<32x128xf32, #tpu.memory_space<vmem>>, vector<16x128xf32>
      %86 = arith.mulf %76, %76 : vector<16x128xf32>
      %87 = arith.addf %85, %86 : vector<16x128xf32>
      %c16_52 = arith.constant 16 : index
      %c0_53 = arith.constant 0 : index
      %88 = vector.load %arg10[%c16_52, %c0_53] : memref<32x128xf32, #tpu.memory_space<vmem>>, vector<16x128xf32>
      tpu.vector_store %arg10[%c16_52, %c0_53], %87 {strides = array<i32>} : memref<32x128xf32, #tpu.memory_space<vmem>>, vector<16x128xf32>,
    } else {
    }
    %c1_i32 = arith.constant 1 : i32
    %c4_i32_6 = arith.constant 4 : i32
    %10 = arith.muli %arg0, %c4_i32_6 : i32
    %11 = arith.addi %10, %c1_i32 : i32
    %c6_i32_7 = arith.constant 6 : i32
    %12 = arith.cmpi slt, %11, %c6_i32_7 : i32
    %13 = arith.extui %12 : i1 to i32
    %c0_i32_8 = arith.constant 0 : i32
    %14 = arith.cmpi ne, %13, %c0_i32_8 : i32
    scf.if %14 {
      %28 = arith.index_cast %c1_i32 : i32 to index
      %c0_18 = arith.constant 0 : index
      %c0_19 = arith.constant 0 : index
      %29 = vector.load %arg1[%28, %c0_18, %c0_19] : memref<4x8x128xf32, #tpu.memory_space<vmem>>, vector<1x8x128xf32>
      %30 = vector.shape_cast %29 : vector<1x8x128xf32> to vector<8x128xf32>
      %c0_20 = arith.constant 0 : index
      %c0_21 = arith.constant 0 : index
      %31 = vector.load %arg8[%c0_20, %c0_21] : memref<24x128xf32, #tpu.memory_space<vmem>>, vector<8x128xf32>
      tpu.vector_store %arg8[%c0_20, %c0_21], %30 {strides = array<i32>} : memref<24x128xf32, #tpu.memory_space<vmem>>, vector<8x128xf32>,
      %c0_22 = arith.constant 0 : index
      %c0_23 = arith.constant 0 : index
      %32 = vector.load %arg8[%c0_22, %c0_23] : memref<24x128xf32, #tpu.memory_space<vmem>>, vector<24x128xf32>
      %cst = arith.constant dense<0.000000e+00> : vector<24x128xf32>
      %33 = tpu.matmul %32, %3, %cst {dimension_numbers = #tpu.dot_dimension_numbers<[1], [0], [0], [1], [0, 0, 1, 1], [], []>} : vector<24x128xf32>, vector<128x128xf32>, vector<24x128xf32> -> vector<24x128xf32>
      %cst_24 = arith.constant dense<0.000000e+00> : vector<24x128xf32>
      %34 = tpu.matmul %33, %3, %cst_24 {dimension_numbers = #tpu.dot_dimension_numbers<[1], [0], [0], [1], [0, 0, 1, 1], [], []>} : vector<24x128xf32>, vector<128x128xf32>, vector<24x128xf32> -> vector<24x128xf32>
      %cst_25 = arith.constant 2.000000e+00 : f32
      %35 = vector.broadcast %cst_25 : f32 to vector<24x128xf32>
      %36 = arith.mulf %35, %34 : vector<24x128xf32>
      %37 = arith.subf %36, %32 : vector<24x128xf32>
      %c0_26 = arith.constant 0 : index
      %c0_27 = arith.constant 0 : index
      %c0_28 = arith.constant 0 : index
      %38 = vector.load %arg3[%c0_26, %c0_27, %c0_28] : memref<3x64x24xf32, #tpu.memory_space<vmem>>, vector<1x64x24xf32>
      %39 = vector.shape_cast %38 : vector<1x64x24xf32> to vector<64x24xf32>
      %cst_29 = arith.constant dense<0.000000e+00> : vector<64x128xf32>
      %40 = tpu.matmul %39, %32, %cst_29 {dimension_numbers = #tpu.dot_dimension_numbers<[1], [0], [0], [1], [0, 0, 1, 1], [], []>} : vector<64x24xf32>, vector<24x128xf32>, vector<64x128xf32> -> vector<64x128xf32>
      %c1 = arith.constant 1 : index
      %c0_30 = arith.constant 0 : index
      %c0_31 = arith.constant 0 : index
      %41 = vector.load %arg3[%c1, %c0_30, %c0_31] : memref<3x64x24xf32, #tpu.memory_space<vmem>>, vector<1x64x24xf32>
      %42 = vector.shape_cast %41 : vector<1x64x24xf32> to vector<64x24xf32>
      %cst_32 = arith.constant dense<0.000000e+00> : vector<64x128xf32>
      %43 = tpu.matmul %42, %33, %cst_32 {dimension_numbers = #tpu.dot_dimension_numbers<[1], [0], [0], [1], [0, 0, 1, 1], [], []>} : vector<64x24xf32>, vector<24x128xf32>, vector<64x128xf32> -> vector<64x128xf32>
      %44 = arith.addf %40, %43 : vector<64x128xf32>
      %c2 = arith.constant 2 : index
      %c0_33 = arith.constant 0 : index
      %c0_34 = arith.constant 0 : index
      %45 = vector.load %arg3[%c2, %c0_33, %c0_34] : memref<3x64x24xf32, #tpu.memory_space<vmem>>, vector<1x64x24xf32>
      %46 = vector.shape_cast %45 : vector<1x64x24xf32> to vector<64x24xf32>
      %cst_35 = arith.constant dense<0.000000e+00> : vector<64x128xf32>
      %47 = tpu.matmul %46, %37, %cst_35 {dimension_numbers = #tpu.dot_dimension_numbers<[1], [0], [0], [1], [0, 0, 1, 1], [], []>} : vector<64x24xf32>, vector<24x128xf32>, vector<64x128xf32> -> vector<64x128xf32>
      %48 = arith.addf %44, %47 : vector<64x128xf32>
      %49 = vector.broadcast %4 : vector<64x1xf32> to vector<64x128xf32>
      %50 = arith.addf %48, %49 : vector<64x128xf32>
      %51 = vector.extract_strided_slice %50 {offsets = [0, 0], sizes = [16, 128], strides = [1, 1]} : vector<64x128xf32> to vector<16x128xf32>
      %52 = arith.negf %51 : vector<16x128xf32>
      %53 = math.exp %52 : vector<16x128xf32>
      %cst_36 = arith.constant 1.000000e+00 : f32
      %54 = vector.broadcast %cst_36 : f32 to vector<16x128xf32>
      %55 = arith.addf %54, %53 : vector<16x128xf32>
      %56 = arith.divf %54, %55 : vector<16x128xf32>
      %57 = vector.extract_strided_slice %50 {offsets = [16, 0], sizes = [16, 128], strides = [1, 1]} : vector<64x128xf32> to vector<16x128xf32>
      %58 = arith.negf %57 : vector<16x128xf32>
      %59 = math.exp %58 : vector<16x128xf32>
      %cst_37 = arith.constant 1.000000e+00 : f32
      %60 = vector.broadcast %cst_37 : f32 to vector<16x128xf32>
      %61 = arith.addf %60, %59 : vector<16x128xf32>
      %62 = arith.divf %60, %61 : vector<16x128xf32>
      %63 = vector.extract_strided_slice %50 {offsets = [32, 0], sizes = [16, 128], strides = [1, 1]} : vector<64x128xf32> to vector<16x128xf32>
      %64 = arith.negf %63 : vector<16x128xf32>
      %65 = math.exp %64 : vector<16x128xf32>
      %cst_38 = arith.constant 1.000000e+00 : f32
      %66 = vector.broadcast %cst_38 : f32 to vector<16x128xf32>
      %67 = arith.addf %66, %65 : vector<16x128xf32>
      %68 = arith.divf %66, %67 : vector<16x128xf32>
      %69 = vector.extract_strided_slice %50 {offsets = [48, 0], sizes = [16, 128], strides = [1, 1]} : vector<64x128xf32> to vector<16x128xf32>
      %70 = math.tanh %69 : vector<16x128xf32>
      %c0_39 = arith.constant 0 : index
      %c0_40 = arith.constant 0 : index
      %71 = vector.load %arg9[%c0_39, %c0_40] : memref<16x128xf32, #tpu.memory_space<vmem>>, vector<16x128xf32>
      %72 = arith.mulf %62, %71 : vector<16x128xf32>
      %73 = arith.mulf %56, %70 : vector<16x128xf32>
      %74 = arith.addf %72, %73 : vector<16x128xf32>
      %75 = math.tanh %74 : vector<16x128xf32>
      %76 = arith.mulf %68, %75 : vector<16x128xf32>
      %c0_41 = arith.constant 0 : index
      %c0_42 = arith.constant 0 : index
      %77 = vector.load %arg9[%c0_41, %c0_42] : memref<16x128xf32, #tpu.memory_space<vmem>>, vector<16x128xf32>
      tpu.vector_store %arg9[%c0_41, %c0_42], %74 {strides = array<i32>} : memref<16x128xf32, #tpu.memory_space<vmem>>, vector<16x128xf32>,
      %c8 = arith.constant 8 : index
      %c0_43 = arith.constant 0 : index
      %78 = vector.load %arg8[%c8, %c0_43] : memref<24x128xf32, #tpu.memory_space<vmem>>, vector<16x128xf32>
      tpu.vector_store %arg8[%c8, %c0_43], %76 {strides = array<i32>} : memref<24x128xf32, #tpu.memory_space<vmem>>, vector<16x128xf32>,
      %79 = vector.shape_cast %76 : vector<16x128xf32> to vector<2x1x8x128xf32>
      %c0_44 = arith.constant 0 : index
      %80 = arith.index_cast %c1_i32 : i32 to index
      %c0_45 = arith.constant 0 : index
      %c0_46 = arith.constant 0 : index
      %81 = vector.load %arg5[%c0_44, %80, %c0_45, %c0_46] : memref<2x4x8x128xf32, #tpu.memory_space<vmem>>, vector<2x1x8x128xf32>
      tpu.vector_store %arg5[%c0_44, %80, %c0_45, %c0_46], %79 {strides = array<i32>} : memref<2x4x8x128xf32, #tpu.memory_space<vmem>>, vector<2x1x8x128xf32>,
      %c0_47 = arith.constant 0 : index
      %c0_48 = arith.constant 0 : index
      %82 = vector.load %arg10[%c0_47, %c0_48] : memref<32x128xf32, #tpu.memory_space<vmem>>, vector<16x128xf32>
      %83 = arith.addf %82, %76 : vector<16x128xf32>
      %c0_49 = arith.constant 0 : index
      %c0_50 = arith.constant 0 : index
      %84 = vector.load %arg10[%c0_49, %c0_50] : memref<32x128xf32, #tpu.memory_space<vmem>>, vector<16x128xf32>
      tpu.vector_store %arg10[%c0_49, %c0_50], %83 {strides = array<i32>} : memref<32x128xf32, #tpu.memory_space<vmem>>, vector<16x128xf32>,
      %c16 = arith.constant 16 : index
      %c0_51 = arith.constant 0 : index
      %85 = vector.load %arg10[%c16, %c0_51] : memref<32x128xf32, #tpu.memory_space<vmem>>, vector<16x128xf32>
      %86 = arith.mulf %76, %76 : vector<16x128xf32>
      %87 = arith.addf %85, %86 : vector<16x128xf32>
      %c16_52 = arith.constant 16 : index
      %c0_53 = arith.constant 0 : index
      %88 = vector.load %arg10[%c16_52, %c0_53] : memref<32x128xf32, #tpu.memory_space<vmem>>, vector<16x128xf32>
      tpu.vector_store %arg10[%c16_52, %c0_53], %87 {strides = array<i32>} : memref<32x128xf32, #tpu.memory_space<vmem>>, vector<16x128xf32>,
    } else {
    }
    %c2_i32 = arith.constant 2 : i32
    %c4_i32_9 = arith.constant 4 : i32
    %15 = arith.muli %arg0, %c4_i32_9 : i32
    %16 = arith.addi %15, %c2_i32 : i32
    %c6_i32_10 = arith.constant 6 : i32
    %17 = arith.cmpi slt, %16, %c6_i32_10 : i32
    %18 = arith.extui %17 : i1 to i32
    %c0_i32_11 = arith.constant 0 : i32
    %19 = arith.cmpi ne, %18, %c0_i32_11 : i32
    scf.if %19 {
      %28 = arith.index_cast %c2_i32 : i32 to index
      %c0_18 = arith.constant 0 : index
      %c0_19 = arith.constant 0 : index
      %29 = vector.load %arg1[%28, %c0_18, %c0_19] : memref<4x8x128xf32, #tpu.memory_space<vmem>>, vector<1x8x128xf32>
      %30 = vector.shape_cast %29 : vector<1x8x128xf32> to vector<8x128xf32>
      %c0_20 = arith.constant 0 : index
      %c0_21 = arith.constant 0 : index
      %31 = vector.load %arg8[%c0_20, %c0_21] : memref<24x128xf32, #tpu.memory_space<vmem>>, vector<8x128xf32>
      tpu.vector_store %arg8[%c0_20, %c0_21], %30 {strides = array<i32>} : memref<24x128xf32, #tpu.memory_space<vmem>>, vector<8x128xf32>,
      %c0_22 = arith.constant 0 : index
      %c0_23 = arith.constant 0 : index
      %32 = vector.load %arg8[%c0_22, %c0_23] : memref<24x128xf32, #tpu.memory_space<vmem>>, vector<24x128xf32>
      %cst = arith.constant dense<0.000000e+00> : vector<24x128xf32>
      %33 = tpu.matmul %32, %3, %cst {dimension_numbers = #tpu.dot_dimension_numbers<[1], [0], [0], [1], [0, 0, 1, 1], [], []>} : vector<24x128xf32>, vector<128x128xf32>, vector<24x128xf32> -> vector<24x128xf32>
      %cst_24 = arith.constant dense<0.000000e+00> : vector<24x128xf32>
      %34 = tpu.matmul %33, %3, %cst_24 {dimension_numbers = #tpu.dot_dimension_numbers<[1], [0], [0], [1], [0, 0, 1, 1], [], []>} : vector<24x128xf32>, vector<128x128xf32>, vector<24x128xf32> -> vector<24x128xf32>
      %cst_25 = arith.constant 2.000000e+00 : f32
      %35 = vector.broadcast %cst_25 : f32 to vector<24x128xf32>
      %36 = arith.mulf %35, %34 : vector<24x128xf32>
      %37 = arith.subf %36, %32 : vector<24x128xf32>
      %c0_26 = arith.constant 0 : index
      %c0_27 = arith.constant 0 : index
      %c0_28 = arith.constant 0 : index
      %38 = vector.load %arg3[%c0_26, %c0_27, %c0_28] : memref<3x64x24xf32, #tpu.memory_space<vmem>>, vector<1x64x24xf32>
      %39 = vector.shape_cast %38 : vector<1x64x24xf32> to vector<64x24xf32>
      %cst_29 = arith.constant dense<0.000000e+00> : vector<64x128xf32>
      %40 = tpu.matmul %39, %32, %cst_29 {dimension_numbers = #tpu.dot_dimension_numbers<[1], [0], [0], [1], [0, 0, 1, 1], [], []>} : vector<64x24xf32>, vector<24x128xf32>, vector<64x128xf32> -> vector<64x128xf32>
      %c1 = arith.constant 1 : index
      %c0_30 = arith.constant 0 : index
      %c0_31 = arith.constant 0 : index
      %41 = vector.load %arg3[%c1, %c0_30, %c0_31] : memref<3x64x24xf32, #tpu.memory_space<vmem>>, vector<1x64x24xf32>
      %42 = vector.shape_cast %41 : vector<1x64x24xf32> to vector<64x24xf32>
      %cst_32 = arith.constant dense<0.000000e+00> : vector<64x128xf32>
      %43 = tpu.matmul %42, %33, %cst_32 {dimension_numbers = #tpu.dot_dimension_numbers<[1], [0], [0], [1], [0, 0, 1, 1], [], []>} : vector<64x24xf32>, vector<24x128xf32>, vector<64x128xf32> -> vector<64x128xf32>
      %44 = arith.addf %40, %43 : vector<64x128xf32>
      %c2 = arith.constant 2 : index
      %c0_33 = arith.constant 0 : index
      %c0_34 = arith.constant 0 : index
      %45 = vector.load %arg3[%c2, %c0_33, %c0_34] : memref<3x64x24xf32, #tpu.memory_space<vmem>>, vector<1x64x24xf32>
      %46 = vector.shape_cast %45 : vector<1x64x24xf32> to vector<64x24xf32>
      %cst_35 = arith.constant dense<0.000000e+00> : vector<64x128xf32>
      %47 = tpu.matmul %46, %37, %cst_35 {dimension_numbers = #tpu.dot_dimension_numbers<[1], [0], [0], [1], [0, 0, 1, 1], [], []>} : vector<64x24xf32>, vector<24x128xf32>, vector<64x128xf32> -> vector<64x128xf32>
      %48 = arith.addf %44, %47 : vector<64x128xf32>
      %49 = vector.broadcast %4 : vector<64x1xf32> to vector<64x128xf32>
      %50 = arith.addf %48, %49 : vector<64x128xf32>
      %51 = vector.extract_strided_slice %50 {offsets = [0, 0], sizes = [16, 128], strides = [1, 1]} : vector<64x128xf32> to vector<16x128xf32>
      %52 = arith.negf %51 : vector<16x128xf32>
      %53 = math.exp %52 : vector<16x128xf32>
      %cst_36 = arith.constant 1.000000e+00 : f32
      %54 = vector.broadcast %cst_36 : f32 to vector<16x128xf32>
      %55 = arith.addf %54, %53 : vector<16x128xf32>
      %56 = arith.divf %54, %55 : vector<16x128xf32>
      %57 = vector.extract_strided_slice %50 {offsets = [16, 0], sizes = [16, 128], strides = [1, 1]} : vector<64x128xf32> to vector<16x128xf32>
      %58 = arith.negf %57 : vector<16x128xf32>
      %59 = math.exp %58 : vector<16x128xf32>
      %cst_37 = arith.constant 1.000000e+00 : f32
      %60 = vector.broadcast %cst_37 : f32 to vector<16x128xf32>
      %61 = arith.addf %60, %59 : vector<16x128xf32>
      %62 = arith.divf %60, %61 : vector<16x128xf32>
      %63 = vector.extract_strided_slice %50 {offsets = [32, 0], sizes = [16, 128], strides = [1, 1]} : vector<64x128xf32> to vector<16x128xf32>
      %64 = arith.negf %63 : vector<16x128xf32>
      %65 = math.exp %64 : vector<16x128xf32>
      %cst_38 = arith.constant 1.000000e+00 : f32
      %66 = vector.broadcast %cst_38 : f32 to vector<16x128xf32>
      %67 = arith.addf %66, %65 : vector<16x128xf32>
      %68 = arith.divf %66, %67 : vector<16x128xf32>
      %69 = vector.extract_strided_slice %50 {offsets = [48, 0], sizes = [16, 128], strides = [1, 1]} : vector<64x128xf32> to vector<16x128xf32>
      %70 = math.tanh %69 : vector<16x128xf32>
      %c0_39 = arith.constant 0 : index
      %c0_40 = arith.constant 0 : index
      %71 = vector.load %arg9[%c0_39, %c0_40] : memref<16x128xf32, #tpu.memory_space<vmem>>, vector<16x128xf32>
      %72 = arith.mulf %62, %71 : vector<16x128xf32>
      %73 = arith.mulf %56, %70 : vector<16x128xf32>
      %74 = arith.addf %72, %73 : vector<16x128xf32>
      %75 = math.tanh %74 : vector<16x128xf32>
      %76 = arith.mulf %68, %75 : vector<16x128xf32>
      %c0_41 = arith.constant 0 : index
      %c0_42 = arith.constant 0 : index
      %77 = vector.load %arg9[%c0_41, %c0_42] : memref<16x128xf32, #tpu.memory_space<vmem>>, vector<16x128xf32>
      tpu.vector_store %arg9[%c0_41, %c0_42], %74 {strides = array<i32>} : memref<16x128xf32, #tpu.memory_space<vmem>>, vector<16x128xf32>,
      %c8 = arith.constant 8 : index
      %c0_43 = arith.constant 0 : index
      %78 = vector.load %arg8[%c8, %c0_43] : memref<24x128xf32, #tpu.memory_space<vmem>>, vector<16x128xf32>
      tpu.vector_store %arg8[%c8, %c0_43], %76 {strides = array<i32>} : memref<24x128xf32, #tpu.memory_space<vmem>>, vector<16x128xf32>,
      %79 = vector.shape_cast %76 : vector<16x128xf32> to vector<2x1x8x128xf32>
      %c0_44 = arith.constant 0 : index
      %80 = arith.index_cast %c2_i32 : i32 to index
      %c0_45 = arith.constant 0 : index
      %c0_46 = arith.constant 0 : index
      %81 = vector.load %arg5[%c0_44, %80, %c0_45, %c0_46] : memref<2x4x8x128xf32, #tpu.memory_space<vmem>>, vector<2x1x8x128xf32>
      tpu.vector_store %arg5[%c0_44, %80, %c0_45, %c0_46], %79 {strides = array<i32>} : memref<2x4x8x128xf32, #tpu.memory_space<vmem>>, vector<2x1x8x128xf32>,
      %c0_47 = arith.constant 0 : index
      %c0_48 = arith.constant 0 : index
      %82 = vector.load %arg10[%c0_47, %c0_48] : memref<32x128xf32, #tpu.memory_space<vmem>>, vector<16x128xf32>
      %83 = arith.addf %82, %76 : vector<16x128xf32>
      %c0_49 = arith.constant 0 : index
      %c0_50 = arith.constant 0 : index
      %84 = vector.load %arg10[%c0_49, %c0_50] : memref<32x128xf32, #tpu.memory_space<vmem>>, vector<16x128xf32>
      tpu.vector_store %arg10[%c0_49, %c0_50], %83 {strides = array<i32>} : memref<32x128xf32, #tpu.memory_space<vmem>>, vector<16x128xf32>,
      %c16 = arith.constant 16 : index
      %c0_51 = arith.constant 0 : index
      %85 = vector.load %arg10[%c16, %c0_51] : memref<32x128xf32, #tpu.memory_space<vmem>>, vector<16x128xf32>
      %86 = arith.mulf %76, %76 : vector<16x128xf32>
      %87 = arith.addf %85, %86 : vector<16x128xf32>
      %c16_52 = arith.constant 16 : index
      %c0_53 = arith.constant 0 : index
      %88 = vector.load %arg10[%c16_52, %c0_53] : memref<32x128xf32, #tpu.memory_space<vmem>>, vector<16x128xf32>
      tpu.vector_store %arg10[%c16_52, %c0_53], %87 {strides = array<i32>} : memref<32x128xf32, #tpu.memory_space<vmem>>, vector<16x128xf32>,
    } else {
    }
    %c3_i32 = arith.constant 3 : i32
    %c4_i32_12 = arith.constant 4 : i32
    %20 = arith.muli %arg0, %c4_i32_12 : i32
    %21 = arith.addi %20, %c3_i32 : i32
    %c6_i32_13 = arith.constant 6 : i32
    %22 = arith.cmpi slt, %21, %c6_i32_13 : i32
    %23 = arith.extui %22 : i1 to i32
    %c0_i32_14 = arith.constant 0 : i32
    %24 = arith.cmpi ne, %23, %c0_i32_14 : i32
    scf.if %24 {
      %28 = arith.index_cast %c3_i32 : i32 to index
      %c0_18 = arith.constant 0 : index
      %c0_19 = arith.constant 0 : index
      %29 = vector.load %arg1[%28, %c0_18, %c0_19] : memref<4x8x128xf32, #tpu.memory_space<vmem>>, vector<1x8x128xf32>
      %30 = vector.shape_cast %29 : vector<1x8x128xf32> to vector<8x128xf32>
      %c0_20 = arith.constant 0 : index
      %c0_21 = arith.constant 0 : index
      %31 = vector.load %arg8[%c0_20, %c0_21] : memref<24x128xf32, #tpu.memory_space<vmem>>, vector<8x128xf32>
      tpu.vector_store %arg8[%c0_20, %c0_21], %30 {strides = array<i32>} : memref<24x128xf32, #tpu.memory_space<vmem>>, vector<8x128xf32>,
      %c0_22 = arith.constant 0 : index
      %c0_23 = arith.constant 0 : index
      %32 = vector.load %arg8[%c0_22, %c0_23] : memref<24x128xf32, #tpu.memory_space<vmem>>, vector<24x128xf32>
      %cst = arith.constant dense<0.000000e+00> : vector<24x128xf32>
      %33 = tpu.matmul %32, %3, %cst {dimension_numbers = #tpu.dot_dimension_numbers<[1], [0], [0], [1], [0, 0, 1, 1], [], []>} : vector<24x128xf32>, vector<128x128xf32>, vector<24x128xf32> -> vector<24x128xf32>
      %cst_24 = arith.constant dense<0.000000e+00> : vector<24x128xf32>
      %34 = tpu.matmul %33, %3, %cst_24 {dimension_numbers = #tpu.dot_dimension_numbers<[1], [0], [0], [1], [0, 0, 1, 1], [], []>} : vector<24x128xf32>, vector<128x128xf32>, vector<24x128xf32> -> vector<24x128xf32>
      %cst_25 = arith.constant 2.000000e+00 : f32
      %35 = vector.broadcast %cst_25 : f32 to vector<24x128xf32>
      %36 = arith.mulf %35, %34 : vector<24x128xf32>
      %37 = arith.subf %36, %32 : vector<24x128xf32>
      %c0_26 = arith.constant 0 : index
      %c0_27 = arith.constant 0 : index
      %c0_28 = arith.constant 0 : index
      %38 = vector.load %arg3[%c0_26, %c0_27, %c0_28] : memref<3x64x24xf32, #tpu.memory_space<vmem>>, vector<1x64x24xf32>
      %39 = vector.shape_cast %38 : vector<1x64x24xf32> to vector<64x24xf32>
      %cst_29 = arith.constant dense<0.000000e+00> : vector<64x128xf32>
      %40 = tpu.matmul %39, %32, %cst_29 {dimension_numbers = #tpu.dot_dimension_numbers<[1], [0], [0], [1], [0, 0, 1, 1], [], []>} : vector<64x24xf32>, vector<24x128xf32>, vector<64x128xf32> -> vector<64x128xf32>
      %c1 = arith.constant 1 : index
      %c0_30 = arith.constant 0 : index
      %c0_31 = arith.constant 0 : index
      %41 = vector.load %arg3[%c1, %c0_30, %c0_31] : memref<3x64x24xf32, #tpu.memory_space<vmem>>, vector<1x64x24xf32>
      %42 = vector.shape_cast %41 : vector<1x64x24xf32> to vector<64x24xf32>
      %cst_32 = arith.constant dense<0.000000e+00> : vector<64x128xf32>
      %43 = tpu.matmul %42, %33, %cst_32 {dimension_numbers = #tpu.dot_dimension_numbers<[1], [0], [0], [1], [0, 0, 1, 1], [], []>} : vector<64x24xf32>, vector<24x128xf32>, vector<64x128xf32> -> vector<64x128xf32>
      %44 = arith.addf %40, %43 : vector<64x128xf32>
      %c2 = arith.constant 2 : index
      %c0_33 = arith.constant 0 : index
      %c0_34 = arith.constant 0 : index
      %45 = vector.load %arg3[%c2, %c0_33, %c0_34] : memref<3x64x24xf32, #tpu.memory_space<vmem>>, vector<1x64x24xf32>
      %46 = vector.shape_cast %45 : vector<1x64x24xf32> to vector<64x24xf32>
      %cst_35 = arith.constant dense<0.000000e+00> : vector<64x128xf32>
      %47 = tpu.matmul %46, %37, %cst_35 {dimension_numbers = #tpu.dot_dimension_numbers<[1], [0], [0], [1], [0, 0, 1, 1], [], []>} : vector<64x24xf32>, vector<24x128xf32>, vector<64x128xf32> -> vector<64x128xf32>
      %48 = arith.addf %44, %47 : vector<64x128xf32>
      %49 = vector.broadcast %4 : vector<64x1xf32> to vector<64x128xf32>
      %50 = arith.addf %48, %49 : vector<64x128xf32>
      %51 = vector.extract_strided_slice %50 {offsets = [0, 0], sizes = [16, 128], strides = [1, 1]} : vector<64x128xf32> to vector<16x128xf32>
      %52 = arith.negf %51 : vector<16x128xf32>
      %53 = math.exp %52 : vector<16x128xf32>
      %cst_36 = arith.constant 1.000000e+00 : f32
      %54 = vector.broadcast %cst_36 : f32 to vector<16x128xf32>
      %55 = arith.addf %54, %53 : vector<16x128xf32>
      %56 = arith.divf %54, %55 : vector<16x128xf32>
      %57 = vector.extract_strided_slice %50 {offsets = [16, 0], sizes = [16, 128], strides = [1, 1]} : vector<64x128xf32> to vector<16x128xf32>
      %58 = arith.negf %57 : vector<16x128xf32>
      %59 = math.exp %58 : vector<16x128xf32>
      %cst_37 = arith.constant 1.000000e+00 : f32
      %60 = vector.broadcast %cst_37 : f32 to vector<16x128xf32>
      %61 = arith.addf %60, %59 : vector<16x128xf32>
      %62 = arith.divf %60, %61 : vector<16x128xf32>
      %63 = vector.extract_strided_slice %50 {offsets = [32, 0], sizes = [16, 128], strides = [1, 1]} : vector<64x128xf32> to vector<16x128xf32>
      %64 = arith.negf %63 : vector<16x128xf32>
      %65 = math.exp %64 : vector<16x128xf32>
      %cst_38 = arith.constant 1.000000e+00 : f32
      %66 = vector.broadcast %cst_38 : f32 to vector<16x128xf32>
      %67 = arith.addf %66, %65 : vector<16x128xf32>
      %68 = arith.divf %66, %67 : vector<16x128xf32>
      %69 = vector.extract_strided_slice %50 {offsets = [48, 0], sizes = [16, 128], strides = [1, 1]} : vector<64x128xf32> to vector<16x128xf32>
      %70 = math.tanh %69 : vector<16x128xf32>
      %c0_39 = arith.constant 0 : index
      %c0_40 = arith.constant 0 : index
      %71 = vector.load %arg9[%c0_39, %c0_40] : memref<16x128xf32, #tpu.memory_space<vmem>>, vector<16x128xf32>
      %72 = arith.mulf %62, %71 : vector<16x128xf32>
      %73 = arith.mulf %56, %70 : vector<16x128xf32>
      %74 = arith.addf %72, %73 : vector<16x128xf32>
      %75 = math.tanh %74 : vector<16x128xf32>
      %76 = arith.mulf %68, %75 : vector<16x128xf32>
      %c0_41 = arith.constant 0 : index
      %c0_42 = arith.constant 0 : index
      %77 = vector.load %arg9[%c0_41, %c0_42] : memref<16x128xf32, #tpu.memory_space<vmem>>, vector<16x128xf32>
      tpu.vector_store %arg9[%c0_41, %c0_42], %74 {strides = array<i32>} : memref<16x128xf32, #tpu.memory_space<vmem>>, vector<16x128xf32>,
      %c8 = arith.constant 8 : index
      %c0_43 = arith.constant 0 : index
      %78 = vector.load %arg8[%c8, %c0_43] : memref<24x128xf32, #tpu.memory_space<vmem>>, vector<16x128xf32>
      tpu.vector_store %arg8[%c8, %c0_43], %76 {strides = array<i32>} : memref<24x128xf32, #tpu.memory_space<vmem>>, vector<16x128xf32>,
      %79 = vector.shape_cast %76 : vector<16x128xf32> to vector<2x1x8x128xf32>
      %c0_44 = arith.constant 0 : index
      %80 = arith.index_cast %c3_i32 : i32 to index
      %c0_45 = arith.constant 0 : index
      %c0_46 = arith.constant 0 : index
      %81 = vector.load %arg5[%c0_44, %80, %c0_45, %c0_46] : memref<2x4x8x128xf32, #tpu.memory_space<vmem>>, vector<2x1x8x128xf32>
      tpu.vector_store %arg5[%c0_44, %80, %c0_45, %c0_46], %79 {strides = array<i32>} : memref<2x4x8x128xf32, #tpu.memory_space<vmem>>, vector<2x1x8x128xf32>,
      %c0_47 = arith.constant 0 : index
      %c0_48 = arith.constant 0 : index
      %82 = vector.load %arg10[%c0_47, %c0_48] : memref<32x128xf32, #tpu.memory_space<vmem>>, vector<16x128xf32>
      %83 = arith.addf %82, %76 : vector<16x128xf32>
      %c0_49 = arith.constant 0 : index
      %c0_50 = arith.constant 0 : index
      %84 = vector.load %arg10[%c0_49, %c0_50] : memref<32x128xf32, #tpu.memory_space<vmem>>, vector<16x128xf32>
      tpu.vector_store %arg10[%c0_49, %c0_50], %83 {strides = array<i32>} : memref<32x128xf32, #tpu.memory_space<vmem>>, vector<16x128xf32>,
      %c16 = arith.constant 16 : index
      %c0_51 = arith.constant 0 : index
      %85 = vector.load %arg10[%c16, %c0_51] : memref<32x128xf32, #tpu.memory_space<vmem>>, vector<16x128xf32>
      %86 = arith.mulf %76, %76 : vector<16x128xf32>
      %87 = arith.addf %85, %86 : vector<16x128xf32>
      %c16_52 = arith.constant 16 : index
      %c0_53 = arith.constant 0 : index
      %88 = vector.load %arg10[%c16_52, %c0_53] : memref<32x128xf32, #tpu.memory_space<vmem>>, vector<16x128xf32>
      tpu.vector_store %arg10[%c16_52, %c0_53], %87 {strides = array<i32>} : memref<32x128xf32, #tpu.memory_space<vmem>>, vector<16x128xf32>,
    } else {
    }
    %c4_i32_15 = arith.constant 4 : i32
    %c1_i32_16 = arith.constant 1 : i32
    %25 = arith.cmpi eq, %arg0, %c1_i32_16 : i32
    %26 = arith.extui %25 : i1 to i32
    %c0_i32_17 = arith.constant 0 : i32
    %27 = arith.cmpi ne, %26, %c0_i32_17 : i32
    scf.if %27 {
      %c0_18 = arith.constant 0 : index
      %c0_19 = arith.constant 0 : index
      %28 = vector.load %arg10[%c0_18, %c0_19] : memref<32x128xf32, #tpu.memory_space<vmem>>, vector<32x128xf32>
      %29 = vector.shape_cast %28 : vector<32x128xf32> to vector<2x2x8x128xf32>
      %cst = arith.constant dense<0.000000e+00> : vector<2x8xf32>
      %30 = vector.multi_reduction <add>, %29, %cst [1, 3] : vector<2x2x8x128xf32> to vector<2x8xf32>
      %c0_20 = arith.constant 0 : index
      %c0_21 = arith.constant 0 : index
      %31 = vector.load %arg6[%c0_20, %c0_21] : memref<2x8xf32, #tpu.memory_space<vmem>>, vector<2x8xf32>
      tpu.vector_store %arg6[%c0_20, %c0_21], %30 {strides = array<i32>} : memref<2x8xf32, #tpu.memory_space<vmem>>, vector<2x8xf32>,
    } else {
    }
    return
  }
  func.func @transform_0(%arg0: i32) -> (i32, i32, i32) {
    %c0_i32 = arith.constant 0 : i32
    %c0_i32_0 = arith.constant 0 : i32
    %c0_i32_1 = arith.constant 0 : i32
    return %arg0, %c0_i32, %c0_i32_0 : i32, i32, i32
  }
  func.func @transform_2(%arg0: i32) -> (i32, i32, i32) {
    %c0_i32 = arith.constant 0 : i32
    %c0_i32_0 = arith.constant 0 : i32
    %c0_i32_1 = arith.constant 0 : i32
    %c0_i32_2 = arith.constant 0 : i32
    return %c0_i32, %c0_i32_0, %c0_i32_1 : i32, i32, i32
  }
  func.func @transform_3(%arg0: i32) -> (i32, i32) {
    %c0_i32 = arith.constant 0 : i32
    %c0_i32_0 = arith.constant 0 : i32
    %c0_i32_1 = arith.constant 0 : i32
    return %c0_i32, %c0_i32_0 : i32, i32
  }
  func.func @transform_4(%arg0: i32) -> (i32, i32, i32, i32) {
    %c0_i32 = arith.constant 0 : i32
    %c0_i32_0 = arith.constant 0 : i32
    %c0_i32_1 = arith.constant 0 : i32
    %c0_i32_2 = arith.constant 0 : i32
    return %c0_i32, %arg0, %c0_i32_0, %c0_i32_1 : i32, i32, i32, i32
  }
  func.func @transform_5(%arg0: i32) -> (i32, i32) {
    %c0_i32 = arith.constant 0 : i32
    %c0_i32_0 = arith.constant 0 : i32
    %c0_i32_1 = arith.constant 0 : i32
    return %c0_i32, %c0_i32_0 : i32, i32
  }
}

module attributes {stable_mosaic.version = 11 : i64} {
  func.func @_bn_relu_kernel(%arg0: i32, %arg1: memref<8x8x128xf32, #tpu.memory_space<vmem>>, %arg2: memref<8x1xf32, #tpu.memory_space<vmem>>, %arg3: memref<8x1xf32, #tpu.memory_space<vmem>>, %arg4: memref<8x8x128xf32, #tpu.memory_space<vmem>>) attributes {dimension_semantics = [#tpu.dimension_semantics<parallel>], iteration_bounds = array<i64: 2>, scalar_prefetch = 0 : i64, scratch_operands = 0 : i64, tpu.core_type = #tpu.core_type<tc>, window_params = [{transform_indices = @transform_0, window_bounds = array<i64: 8, 8, 128>}, {pipeline_mode = #tpu.pipeline_mode<synchronous>, transform_indices = @transform_1, window_bounds = array<i64: 8, 1>}, {pipeline_mode = #tpu.pipeline_mode<synchronous>, transform_indices = @transform_2, window_bounds = array<i64: 8, 1>}, {transform_indices = @transform_3, window_bounds = array<i64: 8, 8, 128>}]} {
    %c0 = arith.constant 0 : index
    %c0_0 = arith.constant 0 : index
    %c0_1 = arith.constant 0 : index
    %0 = vector.load %arg1[%c0, %c0_0, %c0_1] : memref<8x8x128xf32, #tpu.memory_space<vmem>>, vector<8x8x128xf32>
    %c0_2 = arith.constant 0 : index
    %c0_3 = arith.constant 0 : index
    %1 = vector.load %arg2[%c0_2, %c0_3] : memref<8x1xf32, #tpu.memory_space<vmem>>, vector<8x1xf32>
    %2 = vector.shape_cast %1 : vector<8x1xf32> to vector<1x8x1xf32>
    %c0_4 = arith.constant 0 : index
    %c0_5 = arith.constant 0 : index
    %3 = vector.load %arg3[%c0_4, %c0_5] : memref<8x1xf32, #tpu.memory_space<vmem>>, vector<8x1xf32>
    %4 = vector.shape_cast %3 : vector<8x1xf32> to vector<1x8x1xf32>
    %5 = vector.broadcast %2 : vector<1x8x1xf32> to vector<8x8x128xf32>
    %6 = arith.mulf %0, %5 : vector<8x8x128xf32>
    %7 = vector.broadcast %4 : vector<1x8x1xf32> to vector<8x8x128xf32>
    %8 = arith.addf %6, %7 : vector<8x8x128xf32>
    %cst = arith.constant 0.000000e+00 : f32
    %9 = vector.broadcast %cst : f32 to vector<8x8x128xf32>
    %10 = arith.maximumf %8, %9 : vector<8x8x128xf32>
    %c0_6 = arith.constant 0 : index
    %c0_7 = arith.constant 0 : index
    %c0_8 = arith.constant 0 : index
    %11 = vector.load %arg4[%c0_6, %c0_7, %c0_8] : memref<8x8x128xf32, #tpu.memory_space<vmem>>, vector<8x8x128xf32>
    tpu.vector_store %arg4[%c0_6, %c0_7, %c0_8], %10 {strides = array<i32>} : memref<8x8x128xf32, #tpu.memory_space<vmem>>, vector<8x8x128xf32>,
    return
  }
  func.func @transform_0(%arg0: i32) -> (i32, i32, i32) {
    %c0_i32 = arith.constant 0 : i32
    %c0_i32_0 = arith.constant 0 : i32
    %c0_i32_1 = arith.constant 0 : i32
    return %arg0, %c0_i32, %c0_i32_0 : i32, i32, i32
  }
  func.func @transform_1(%arg0: i32) -> (i32, i32) {
    %c0_i32 = arith.constant 0 : i32
    %c0_i32_0 = arith.constant 0 : i32
    %c0_i32_1 = arith.constant 0 : i32
    return %c0_i32, %c0_i32_0 : i32, i32
  }
  func.func @transform_2(%arg0: i32) -> (i32, i32) {
    %c0_i32 = arith.constant 0 : i32
    %c0_i32_0 = arith.constant 0 : i32
    %c0_i32_1 = arith.constant 0 : i32
    return %c0_i32, %c0_i32_0 : i32, i32
  }
  func.func @transform_3(%arg0: i32) -> (i32, i32, i32) {
    %c0_i32 = arith.constant 0 : i32
    %c0_i32_0 = arith.constant 0 : i32
    %c0_i32_1 = arith.constant 0 : i32
    return %arg0, %c0_i32, %c0_i32_0 : i32, i32, i32
  }
}

</mosaic_0001>

<bundles_post_ra>
// kernel: convlstm_spherical_cheb_bn.3
= control target key start
LH: loop header
LB: loop body
LE: loop exit
PB: predicated region body
PF: predicated region fallthrough
CT: control target
= control target key end

     0   :  { %s713_s12 = smov 0   ;;  %s715_s13 = smov 0   ;;  %s828_s0 = inlined_call_operand.vmem [shape: f32[12,8,128], index: 0, kind: input, shape index: {}, may-alias: {0,3}]   ;;  %s829_s1 = inlined_call_operand.vmem [shape: f32[8,1], index: 1, kind: input, shape index: {}]   ;;  %s830_s2 = inlined_call_operand.vmem [shape: f32[8,1], index: 2, kind: input, shape index: {}]   ;;  %s831_s3 = inlined_call_operand.vmem [shape: f32[12,8,128], index: 3, kind: output, shape index: {}, may-alias: {0,3}]  }
   0x1   :  { %s717_s14 = smov 0  }
   0x2 LB: > { %s726_s15 = sadd.s32 4294967295, %s658_s14   ;;  %s728_s16 = sadd.s32 1, %s658_s14   ;;  %s658_s14 = sphi %s717_s14, %s838_s14   ;;  %s654_s13 = sphi %s715_s13, %s837_s13   ;;  %s650_s12 = sphi %s713_s12, %s836_s12  }
   0x3   : > { %s85_s17 = ssub.s32 %s658_s14, %s728_s16  ;;  %s88_s18 = sadd.s32 1, %s654_s13 }
   0x4   : > { %p86_p0 = scmp.eq.s32.totalorder %s85_s17, 0  ;;  %p98_p1 = scmp.ne.s32.totalorder %s654_s13, %s650_s12 }
   0x5   : > { %p99_p2 = scmp.eq.s32.totalorder %s726_s15, 1  ;;  %p490_p3 = scmp.ge.s32.totalorder %s658_s14, 1 }
   0x6   : > { %s736_s19 = scalar_select %p86_p0, %s654_s13, %s88_s18  }
   0x7   : > { %p738_p4 = por %p99_p2, %p98_p1  ;;  %p146_p5 = scmp.lt.s32.totalorder %s658_s14, 3 }
   0x9   : > { %p147_p6 = pnand %p490_p3, %p146_p5 }
   0xa   : > { %v200_v0 = vld [vmem:[%s829_s1] sm:$0xff] (!%p147_p6)  ;;  %v692_v1 = vmov (!%p147_p6), 0   ;;  %s749_s25 = sshll.u32 (!%p147_p6), %s726_s15, 3  ;;  %s170_s4 = sand.u32 (!%p147_p6), 1, %s650_s12  }
   0xb   : > { %150 = sbr.rel (%p147_p6) target bundleno = 201 (0xc9), region = 32  ;;  %603 = vset.pattern.permute.xlu0 (!%p147_p6), %v692_v1  ;;  %v201_v2 = vld [vmem:[%s830_s2] sm:$0xff] (!%p147_p6)  ;;  %p178_p7 = scmp.lt.s32.totalorder (!%p147_p6), %s749_s25, 11 }
   0xc   : > { %204 = vperm.xlu0 (!%p147_p6), %603, %v200_v0   ;;  %s491_s5 = sshll.u32 (!%p147_p6), %s170_s4, 6 }
   0xd   : > { %s757_s6 = scalar_lea.vmem (!%p147_p6), [#allocation2], %s491_s5  }
  0x10   : > { %217 = vperm.xlu0 (!%p147_p6), %603, %v201_v2  }
  0x12   : > { %s179_s26 = scalar_select %p178_p7, %s749_s25, 11 }
  0x13   : > { %s252_s7 = ssub.s32 (%p738_p4), 12, %s749_s25  ;;  %s511_s8 = sshll.u32 (%p738_p4), %s726_s15, 6 }
  0x14   : > { %s493_s27 = sshll.u32 %s179_s26, 3  ;;  %p253_p8 = scmp.lt.s32.totalorder (%p738_p4), %s252_s7, 8 }
  0x15   : > { %s181_s30 = scalar_lea.vmem %s828_s0, %s493_s27  ;;  %s774_s11 = scalar_lea.vmem (%p738_p4), %s831_s3, %s511_s8  }
  0x16   : > { %v192_v3 = vld [vmem:[%s181_s30] sm:$0xff]  ;;  %v193_v4 = vld [vmem:[%s181_s30 + $0x8] sm:$0xff]  ;;  %v194_v6 = vld [vmem:[%s181_s30 + $0x10] sm:$0xff] }
  0x17   : > { %v195_v7 = vld [vmem:[%s181_s30 + $0x18] sm:$0xff]  ;;  %v196_v8 = vld [vmem:[%s181_s30 + $0x20] sm:$0xff]  ;;  %v197_v9 = vld [vmem:[%s181_s30 + $0x28] sm:$0xff] }
  0x18   : > { %v198_v10 = vld [vmem:[%s181_s30 + $0x30] sm:$0xff]  ;;  %v199_v11 = vld [vmem:[%s181_s30 + $0x38] sm:$0xff] }
  0x8b   : > { %v205_v5 = vpop.permute.xlu0 %204 }
  0x8c   : > { %v207_v12 = vmul.f32 %v205_v5, %v192_v3  ;;  %v208_v13 = vmul.f32 %v205_v5, %v193_v4  ;;  %v209_v14 = vmul.f32 %v205_v5, %v194_v6  ;;  %v210_v15 = vmul.f32 %v205_v5, %v195_v7 }
  0x8d   : > { %v211_v17 = vmul.f32 %v205_v5, %v196_v8  ;;  %v212_v18 = vmul.f32 %v205_v5, %v197_v9  ;;  %v213_v19 = vmul.f32 %v205_v5, %v198_v10  ;;  %v214_v20 = vmul.f32 %v205_v5, %v199_v11 }
  0x8f   : > { %v218_v16 = vpop.permute.xlu0 %217 }
  0x90   : > { %v220_v21 = vadd.f32 %v218_v16, %v207_v12  ;;  %v221_v22 = vadd.f32 %v218_v16, %v208_v13  ;;  %v222_v23 = vadd.f32 %v218_v16, %v209_v14  ;;  %v223_v24 = vadd.f32 %v218_v16, %v210_v15 }
  0x91   : > { %v224_v25 = vadd.f32 %v218_v16, %v211_v17  ;;  %v225_v26 = vadd.f32 %v218_v16, %v212_v18  ;;  %v226_v27 = vadd.f32 %v218_v16, %v213_v19  ;;  %v227_v28 = vadd.f32 %v218_v16, %v214_v20  ;;  %250 = sbr.rel (!%p738_p4) target bundleno = 201 (0xc9), region = 36 }
  0x92   : > { %v228_v29 = vmax.f32 %v220_v21, 0.0  ;;  %v229_v30 = vmax.f32 %v221_v22, 0.0  ;;  %v230_v31 = vmax.f32 %v222_v23, 0.0  ;;  %v231_v32 = vmax.f32 %v223_v24, 0.0 }
  0x93   : > { %v232_v33 = vmax.f32 %v224_v25, 0.0  ;;  %v233_v34 = vmax.f32 %v225_v26, 0.0  ;;  %v234_v35 = vmax.f32 %v226_v27, 0.0  ;;  %v235_v36 = vmax.f32 %v227_v28, 0.0 }
  0x94   : > { %236 = vst [vmem:[%s757_s6] sm:$0xff] %v228_v29  ;;  %237 = vst [vmem:[%s757_s6 + $0x8] sm:$0xff] %v229_v30 }
  0x95   : > { %238 = vst [vmem:[%s757_s6 + $0x10] sm:$0xff] %v230_v31  ;;  %239 = vst [vmem:[%s757_s6 + $0x18] sm:$0xff] %v231_v32 }
  0x96   : > { %240 = vst [vmem:[%s757_s6 + $0x20] sm:$0xff] %v232_v33  ;;  %241 = vst [vmem:[%s757_s6 + $0x28] sm:$0xff] %v233_v34 }
  0x97   : > { %242 = vst [vmem:[%s757_s6 + $0x30] sm:$0xff] %v234_v35  ;;  %243 = vst [vmem:[%s757_s6 + $0x38] sm:$0xff] %v235_v36 }
  0x98   : > { %s840_s7 = smov (!%p253_p8, %s252_s7), 8 }
  0x99   : > { %s496_s12 = sshll.u32 %s840_s7, 7 }
  0x9a   : > { %p499_p9 = scmp.eq.s32.totalorder %s496_s12, 0 }
  0x9b   : > { %s780_s14 = sshrl.u32 (!%p499_p9), %s840_s7, 3 }
  0x9c   : > { %261 = sbr.rel (%p499_p9) target bundleno = 201 (0xc9), region = 40  ;;  %p500_p10 = scmp.le.s32.totalorder (!%p499_p9), %s780_s14, 0 }
  0xa3   : > { %443 = sbr.rel (%p500_p10) target bundleno = 180 (0xb4), region = 116  ;;  %s833_s15 = smov (!%p500_p10), %s774_s11 }
  0xa4   : > { %s834_s17 = smov (!%p500_p10), %s757_s6  ;;  %s789_s18 = smov (!%p500_p10), 0  }
  0xa5   : > { %s791_s20 = smov (!%p500_p10), 0  }
  0xaa LB: >> { %v337_v37 = vld [vmem:[%s666_s17] sm:$0xff]  ;;  %v339_v38 = vld [vmem:[%s666_s17 + $0x8] sm:$0xff]  ;;  %v341_v39 = vld [vmem:[%s666_s17 + $0x10] sm:$0xff]  ;;  %s353_s21 = sadd.s32 1, %s670_s18  ;;  %s331_s20 = sadd.s32 1, %s674_s20   ;;  %s674_s20 = sphi %s791_s20, %s331_s20   ;;  %s670_s18 = sphi %s789_s18, %s835_s18   ;;  %s666_s17 = sphi %s834_s17, %s358_s17   ;;  %s662_s15 = sphi %s833_s15, %s359_s15  }
  0xab   : >> { %338 = vst [vmem:[%s662_s15] sm:$0xff] %v337_v37  ;;  %340 = vst [vmem:[%s662_s15 + $0x8] sm:$0xff] %v339_v38  ;;  %v343_v40 = vld [vmem:[%s666_s17 + $0x18] sm:$0xff]  ;;  %v345_v41 = vld [vmem:[%s666_s17 + $0x20] sm:$0xff]  ;;  %p354_p11 = scmp.ge.s32.totalorder %s353_s21, %s780_s14  ;;  %p330_p12 = scmp.ge.s32.totalorder %s331_s20, %s780_s14 }
  0xac   : >> { %342 = vst [vmem:[%s662_s15 + $0x10] sm:$0xff] %v341_v39  ;;  %v347_v42 = vld [vmem:[%s666_s17 + $0x28] sm:$0xff]  ;;  %344 = vst [vmem:[%s662_s15 + $0x18] sm:$0xff] %v343_v40  ;;  %v349_v43 = vld [vmem:[%s666_s17 + $0x30] sm:$0xff] }
  0xad   : >> { %346 = vst [vmem:[%s662_s15 + $0x20] sm:$0xff] %v345_v41  ;;  %348 = vst [vmem:[%s662_s15 + $0x28] sm:$0xff] %v347_v42  ;;  %v351_v44 = vld [vmem:[%s666_s17 + $0x38] sm:$0xff]  ;;  %s842_s21 = smov (%p354_p11, %s353_s21), 0  ;;  %333 = sbr.rel (!%p330_p12) target bundleno = 170 (0xaa), region = 122 }
  0xae   : >> { %350 = vst [vmem:[%s662_s15 + $0x30] sm:$0xff] %v349_v43  ;;  %352 = vst [vmem:[%s662_s15 + $0x38] sm:$0xff] %v351_v44  ;;  %s501_s22 = sshll.u32 %s842_s21, 6  ;;  %s835_s18 = smov %s842_s21 }
  0xaf   : >> { %s358_s17 = scalar_lea.vmem %s757_s6, %s501_s22 [#allocation2]   ;;  %s359_s15 = scalar_lea.vmem %s774_s11, %s501_s22  }
  0xb4 PF: > { %s810_s23 = sand.u32 7, %s840_s7   ;;  %s512_s24 = sshll.u32 %s780_s14, 6 }
  0xb5   : > { %s364_s25 = scalar_lea.vmem %s757_s6, %s512_s24 [#allocation2]   ;;  %s366_s26 = scalar_lea.vmem %s774_s11, %s512_s24  }
  0xb6   : > { %p506_p13 = scmp.le.s32.totalorder %s810_s23, 0 }
  0xb7   : > { %s676_s27 = smov (!%p506_p13), %s366_s26   ;;  %s680_s28 = smov (!%p506_p13), %s364_s25  }
  0xb8   : > { %457 = sbr.rel (%p506_p13) target bundleno = 201 (0xc9), region = 127  ;;  %s684_s29 = smov (!%p506_p13), 0  }
  0xb9   : > { %s688_s30 = smov (!%p506_p13), 0  }
  0xbf LB: >> { %v376_v45 = vld [vmem:[%s682_s28] sm:$0xff]  ;;  %s378_s4 = sadd.s32 1, %s686_s29  ;;  %s370_s30 = sadd.s32 1, %s690_s30   ;;  %s690_s30 = sphi %s688_s30, %s370_s30   ;;  %s686_s29 = sphi %s684_s29, %s685_s29   ;;  %s682_s28 = sphi %s680_s28, %s383_s28   ;;  %s678_s27 = sphi %s676_s27, %s384_s27  }
  0xc0   : >> { %377 = vst [vmem:[%s678_s27] sm:$0xff] %v376_v45  ;;  %p379_p0 = scmp.ge.s32.totalorder %s378_s4, %s810_s23  ;;  %p369_p1 = scmp.ge.s32.totalorder %s370_s30, %s810_s23 }
  0xc2   : >> { %s844_s4 = smov (%p379_p0, %s378_s4), 0  ;;  %372 = sbr.rel (!%p369_p1) target bundleno = 191 (0xbf), region = 133 }
  0xc3   : >> { %s507_s5 = sshll.u32 %s844_s4, 3  ;;  %s685_s29 = smov %s844_s4  }
  0xc4   : >> { %s383_s28 = scalar_lea.vmem %s364_s25, %s507_s5 [#allocation2]   ;;  %s384_s27 = scalar_lea.vmem %s366_s26, %s507_s5  }
  0xc9 PF: > { %p10_p2 = scmp.ge.s32.totalorder %s728_s16, 4   ;;  %s836_s12 = smov %s654_s13 }
  0xca   : > { %s837_s13 = smov %s736_s19  ;;  %s838_s14 = smov %s728_s16 }
  0xcb   :  { %12 = sbr.rel (!%p10_p2) target bundleno = 2 (0x2), region = 144 }

// kernel: convlstm_spherical_cheb_bn.2
= control target key start
LH: loop header
LB: loop body
LE: loop exit
PB: predicated region body
PF: predicated region fallthrough
CT: control target
= control target key end

     0   :  { %s5235_s18 = smov 0   ;;  %s5237_s19 = smov 0   ;;  %s6047_s0 = inlined_call_operand.vmem [shape: f32[6,8,128], index: 0, kind: input, shape index: {}]   ;;  %s6048_s1 = inlined_call_operand.vmem [shape: f32[128,128], index: 1, kind: input, shape index: {}]   ;;  %s6049_s2 = inlined_call_operand.vmem [shape: f32[3,64,24], index: 2, kind: input, shape index: {}]   ;;  %s6050_s3 = inlined_call_operand.vmem [shape: f32[64,1], index: 3, kind: input, shape index: {}]   ;;  %s6051_s4 = inlined_call_operand.vmem [shape: f32[2,6,8,128], index: 4, kind: output, shape index: {0}]   ;;  %s6052_s5 = inlined_call_operand.vmem [shape: f32[2,8], index: 5, kind: output, shape index: {1}]  }
   0x1   :  { %s5239_s20 = smov 0  }
   0x2 LB: > { %s5246_s21 = sadd.s32 4294967295, %s5154_s20   ;;  %s5248_s22 = sadd.s32 1, %s5154_s20   ;;  %s5154_s20 = sphi %s5239_s20, %s6059_s20   ;;  %s5150_s19 = sphi %s5237_s19, %s6058_s19   ;;  %s5146_s18 = sphi %s5235_s18, %s6057_s18  }
   0x3   : > { %s88_s23 = ssub.s32 %s5154_s20, %s5248_s22  ;;  %s91_s24 = sadd.s32 1, %s5150_s19 }
   0x4   : > { %p89_p0 = scmp.eq.s32.totalorder %s88_s23, 0  ;;  %p101_p1 = scmp.ne.s32.totalorder %s5150_s19, %s5146_s18 }
   0x5   : > { %p102_p2 = scmp.eq.s32.totalorder %s5246_s21, 1  ;;  %p3500_p3 = scmp.ge.s32.totalorder %s5154_s20, 1 }
   0x6   : > { %s5255_s25 = scalar_select %p89_p0, %s5150_s19, %s91_s24  }
   0x7   : > { %p5257_p4 = por %p102_p2, %p101_p1  ;;  %p170_p5 = scmp.lt.s32.totalorder %s5154_s20, 3 }
   0x9   : > { %p171_p6 = pnand %p3500_p3, %p170_p5 }
   0xa   : > { %s194_s27 = sand.u32 (!%p171_p6), 1, %s5146_s18   ;;  %s5262_s28 = sshll.u32 (!%p171_p6), %s5246_s21, 2 }
   0xb   : > { %174 = sbr.rel (%p171_p6) target bundleno = 3216 (0xc90), region = 32  ;;  %s3501_s29 = sshll.u32 (!%p171_p6), %s194_s27, 6 }
   0xc   : > { %p204_p7 = scmp.lt.s32.totalorder (!%p171_p6), %s5262_s28, 5  ;;  %s5271_s10 = scalar_lea.vmem (!%p171_p6), [#allocation7], %s3501_s29  }
   0xd   : > { %p3504_p8 = scmp.ne.s32.totalorder (!%p171_p6), %s5246_s21, 0 }
  0x12   : > { %s205_s30 = scalar_select %p204_p7, %s5262_s28, 5 }
  0x13   : > { %221 = sbr.rel (%p3504_p8) target bundleno = 35 (0x23), region = 36  ;;  %v254_v0 = vld [vmem:[%s6048_s1] sm:$0xff] (!%p3504_p8)  ;;  %v256_v1 = vld [vmem:[%s6048_s1 + $0x8] sm:$0xff] (!%p3504_p8)  ;;  %v258_v2 = vld [vmem:[%s6048_s1 + $0x10] sm:$0xff] (!%p3504_p8) }
  0x14   : > { %s3503_s6 = sshll.u32 %s205_s30, 3  ;;  %255 = vst [vmem:[#allocation2] sm:$0xff] (!%p3504_p8), %v254_v0  ;;  %257 = vst [vmem:[#allocation2 + $0x8] sm:$0xff] (!%p3504_p8), %v256_v1  ;;  %v260_v3 = vld [vmem:[%s6048_s1 + $0x18] sm:$0xff] (!%p3504_p8)  ;;  %v262_v4 = vld [vmem:[%s6048_s1 + $0x20] sm:$0xff] (!%p3504_p8) }
  0x15   : > { %s5269_s9 = scalar_lea.vmem %s6047_s0, %s3503_s6  ;;  %259 = vst [vmem:[#allocation2 + $0x10] sm:$0xff] (!%p3504_p8), %v258_v2  ;;  %v264_v5 = vld [vmem:[%s6048_s1 + $0x28] sm:$0xff] (!%p3504_p8)  ;;  %261 = vst [vmem:[#allocation2 + $0x18] sm:$0xff] (!%p3504_p8), %v260_v3  ;;  %v266_v6 = vld [vmem:[%s6048_s1 + $0x30] sm:$0xff] (!%p3504_p8) }
  0x16   : > { %263 = vst [vmem:[#allocation2 + $0x20] sm:$0xff] (!%p3504_p8), %v262_v4  ;;  %265 = vst [vmem:[#allocation2 + $0x28] sm:$0xff] (!%p3504_p8), %v264_v5  ;;  %v268_v7 = vld [vmem:[%s6048_s1 + $0x38] sm:$0xff] (!%p3504_p8)  ;;  %v270_v8 = vld [vmem:[%s6048_s1 + $0x40] sm:$0xff] (!%p3504_p8) }
  0x17   : > { %267 = vst [vmem:[#allocation2 + $0x30] sm:$0xff] (!%p3504_p8), %v266_v6  ;;  %269 = vst [vmem:[#allocation2 + $0x38] sm:$0xff] (!%p3504_p8), %v268_v7  ;;  %v272_v9 = vld [vmem:[%s6048_s1 + $0x48] sm:$0xff] (!%p3504_p8)  ;;  %v274_v10 = vld [vmem:[%s6048_s1 + $0x50] sm:$0xff] (!%p3504_p8) }
  0x18   : > { %271 = vst [vmem:[#allocation2 + $0x40] sm:$0xff] (!%p3504_p8), %v270_v8  ;;  %v276_v11 = vld [vmem:[%s6048_s1 + $0x58] sm:$0xff] (!%p3504_p8)  ;;  %273 = vst [vmem:[#allocation2 + $0x48] sm:$0xff] (!%p3504_p8), %v272_v9  ;;  %v278_v12 = vld [vmem:[%s6048_s1 + $0x60] sm:$0xff] (!%p3504_p8) }
  0x19   : > { %275 = vst [vmem:[#allocation2 + $0x50] sm:$0xff] (!%p3504_p8), %v274_v10  ;;  %277 = vst [vmem:[#allocation2 + $0x58] sm:$0xff] (!%p3504_p8), %v276_v11  ;;  %v280_v13 = vld [vmem:[%s6048_s1 + $0x68] sm:$0xff] (!%p3504_p8)  ;;  %v282_v14 = vld [vmem:[%s6048_s1 + $0x70] sm:$0xff] (!%p3504_p8) }
  0x1a   : > { %279 = vst [vmem:[#allocation2 + $0x60] sm:$0xff] %v278_v12  ;;  %281 = vst [vmem:[#allocation2 + $0x68] sm:$0xff] %v280_v13  ;;  %v284_v15 = vld [vmem:[%s6048_s1 + $0x78] sm:$0xff] }
  0x1b   : > { %283 = vst [vmem:[#allocation2 + $0x70] sm:$0xff] %v282_v14  ;;  %285 = vst [vmem:[#allocation2 + $0x78] sm:$0xff] %v284_v15 }
  0x1c   : > { %293 = vsyncadd [#allocation6], 2048 }
  0x1d   : > { %5142 = dma.done.wait [#allocation6], 2048 }
  0x1e   : > { %5143 = vsyncadd [#allocation6], 4294965248  ;;  %v5188_v16 = vmov 0.0  }
  0x1f   : > { %297 = vst [vmem:[#allocation3 + $0x8] sm:$0xff] %v5188_v16  ;;  %298 = vst [vmem:[#allocation3 + $0x10] sm:$0xff] %v5188_v16 }
  0x20   : > { %299 = vst [vmem:[#allocation4] sm:$0xff] %v5188_v16  ;;  %300 = vst [vmem:[#allocation4 + $0x8] sm:$0xff] %v5188_v16 }
  0x21   : > { %301 = vst [vmem:[#allocation5] sm:$0xff] %v5188_v16  ;;  %302 = vst [vmem:[#allocation5 + $0x8] sm:$0xff] %v5188_v16 }
  0x22   : > { %303 = vst [vmem:[#allocation5 + $0x10] sm:$0xff] %v5188_v16  ;;  %304 = vst [vmem:[#allocation5 + $0x18] sm:$0xff] %v5188_v16 }
  0x23 PF: > { %v5350_v31 = vld [vmem:[#allocation2 + $0x70] sm:$0xff]  ;;  %v5352_v32 = vld [vmem:[#allocation2 + $0x78] sm:$0xff]  ;;  %v5357_v33 = vld [vmem:[%s6050_s3] sm:$0xff]  ;;  %p3506_p9 = scmp.ge.s32.totalorder %s5262_s28, 6 }
  0x24   : > { %v5322_v17 = vld [vmem:[#allocation2] sm:$0xff]  ;;  %v5324_v18 = vld [vmem:[#allocation2 + $0x8] sm:$0xff]  ;;  %v5367_v35 = vld [vmem:[%s6050_s3 + $0x10] sm:$0xff]  ;;  %v5189_v43 = vmov (!%p3506_p9), 0.0|0.0   ;;  %vm5190_vm0 = vmmov (!%p3506_p9), 0   ;;  %v5191_v45 = vmov (!%p3506_p9), 0.0   ;;  %v4575_v51 = vpack.c.bf16 (!%p3506_p9), %v5352_v32, %v5350_v31 }
  0x25   : > { %v5326_v19 = vld [vmem:[#allocation2 + $0x10] sm:$0xff]  ;;  %v5328_v20 = vld [vmem:[#allocation2 + $0x18] sm:$0xff]  ;;  %v5362_v34 = vld [vmem:[%s6050_s3 + $0x8] sm:$0xff]  ;;  %333 = sbr.rel (%p3506_p9) target bundleno = 777 (0x309), region = 74  ;;  %v4554_v41 = vpack.c.bf16 (!%p3506_p9), %v5324_v18, %v5322_v17  ;;  %4553 = vmatprep.subr.bf16.mxu1 (!%p3506_p9), %v5189_v43  ;;  %4041 = vmatprep.mubr.msk.f32.mxu1 (!%p3506_p9), %vm5190_vm0, %v5191_v45  ;;  %vm522_vm1 = vcmask (!%p3506_p9), 195584   ;;  %v5192_v15 = vmov (!%p3506_p9), 0  }
  0x26   : > { %v5330_v21 = vld [vmem:[#allocation2 + $0x20] sm:$0xff]  ;;  %v5332_v22 = vld [vmem:[#allocation2 + $0x28] sm:$0xff]  ;;  %v5372_v36 = vld [vmem:[%s6050_s3 + $0x18] sm:$0xff]  ;;  %v4557_v44 = vpack.c.bf16 (!%p3506_p9), %v5328_v20, %v5326_v19  ;;  %4962 = vset.pattern.permute.xlu0 (!%p3506_p9), %v5192_v15  ;;  %4963 = vset.pattern.permute.xlu1 (!%p3506_p9), %v5192_v15 }
  0x27   : > { %v5334_v23 = vld [vmem:[#allocation2 + $0x30] sm:$0xff]  ;;  %v5336_v24 = vld [vmem:[#allocation2 + $0x38] sm:$0xff]  ;;  %v5377_v37 = vld [vmem:[%s6050_s3 + $0x20] sm:$0xff]  ;;  %4555 = vmatpush3.bf16.msra.mxu1 (!%p3506_p9), %v4554_v41  ;;  %v4560_v46 = vpack.c.bf16 (!%p3506_p9), %v5332_v22, %v5330_v21  ;;  %929 = vperm.xlu0 (!%p3506_p9), %4962, %v5357_v33  }
  0x28   : > { %v5338_v25 = vld [vmem:[#allocation2 + $0x40] sm:$0xff]  ;;  %v5340_v26 = vld [vmem:[#allocation2 + $0x48] sm:$0xff]  ;;  %v5387_v39 = vld [vmem:[%s6050_s3 + $0x30] sm:$0xff]  ;;  %4556 = vmatprep.subr.bf16.mxu1 (!%p3506_p9), %v5189_v43  ;;  %v4563_v47 = vpack.c.bf16 (!%p3506_p9), %v5336_v24, %v5334_v23  ;;  %939 = vperm.xlu1 (!%p3506_p9), %4963, %v5367_v35  }
  0x29   : > { %v5342_v27 = vld [vmem:[#allocation2 + $0x50] sm:$0xff]  ;;  %v5344_v28 = vld [vmem:[#allocation2 + $0x58] sm:$0xff]  ;;  %v5382_v38 = vld [vmem:[%s6050_s3 + $0x28] sm:$0xff]  ;;  %v4566_v48 = vpack.c.bf16 (!%p3506_p9), %v5340_v26, %v5338_v25 }
  0x2a   : > { %v5346_v29 = vld [vmem:[#allocation2 + $0x60] sm:$0xff]  ;;  %v5348_v30 = vld [vmem:[#allocation2 + $0x68] sm:$0xff]  ;;  %v5392_v40 = vld [vmem:[%s6050_s3 + $0x38] sm:$0xff]  ;;  %v4569_v49 = vpack.c.bf16 (!%p3506_p9), %v5344_v28, %v5342_v27 }
  0x2b   : > { %v5398_v42 = vld [vmem:[%s5269_s9] sm:$0xff] (!%p3506_p9)  ;;  %4558 = vmatpush3.bf16.msra.mxu1 (!%p3506_p9), %v4557_v44  ;;  %v4572_v50 = vpack.c.bf16 (!%p3506_p9), %v5348_v30, %v5346_v29  ;;  %v5417_v52 = vld [vmem:[#allocation3 + $0x8] sm:$0xff] (!%p3506_p9)  ;;  %v5421_v53 = vld [vmem:[#allocation3 + $0x10] sm:$0xff] (!%p3506_p9)  ;;  %934 = vperm.xlu0 (!%p3506_p9), %4962, %v5362_v34  }
  0x2c   : > { %4559 = vmatprep.subr.bf16.mxu1 %v5189_v43  ;;  %v3507_v54 = vld [vmem:[%s6049_s2 + $0x40] sm:$0xff]  ;;  %v4605_v62 = vpack.c.bf16 %v5417_v52, %v5398_v42  ;;  %v3508_v63 = vld [vmem:[%s6049_s2 + $0x48] sm:$0xff]  ;;  %v3509_v0 = vld [vmem:[%s6049_s2 + $0x50] sm:$0xff]  ;;  %944 = vperm.xlu1 %4963, %v5372_v36  }
  0x2d   : > { %4097 = vmatprep.mubr.msk.f32.mxu0 %vm522_vm1, %v3507_v54  ;;  %v3510_v1 = vld [vmem:[%s6049_s2 + $0x58] sm:$0xff]  ;;  %v3511_v2 = vld [vmem:[%s6049_s2 + $0x60] sm:$0xff]  ;;  %v3512_v3 = vld [vmem:[%s6049_s2 + $0x68] sm:$0xff] }
  0x2e   : > { %v3513_v4 = vld [vmem:[%s6049_s2 + $0x70] sm:$0xff]  ;;  %v3514_v5 = vld [vmem:[%s6049_s2 + $0x78] sm:$0xff]  ;;  %v505_v6 = vld [vmem:[%s6049_s2] sm:$0xff] }
  0x2f   : > { %4561 = vmatpush3.bf16.msra.mxu1 %v4560_v46  ;;  %v506_v7 = vld [vmem:[%s6049_s2 + $0x8] sm:$0xff]  ;;  %v507_v8 = vld [vmem:[%s6049_s2 + $0x10] sm:$0xff]  ;;  %v508_v9 = vld [vmem:[%s6049_s2 + $0x18] sm:$0xff]  ;;  %949 = vperm.xlu0 %4962, %v5377_v37  }
  0x30   : > { %4562 = vmatprep.subr.bf16.mxu1 %v5189_v43  ;;  %v509_v10 = vld [vmem:[%s6049_s2 + $0x20] sm:$0xff]  ;;  %v510_v11 = vld [vmem:[%s6049_s2 + $0x28] sm:$0xff]  ;;  %v511_v12 = vld [vmem:[%s6049_s2 + $0x30] sm:$0xff]  ;;  %954 = vperm.xlu1 %4963, %v5382_v38  }
  0x31   : > { %v512_v13 = vld [vmem:[%s6049_s2 + $0x38] sm:$0xff]  ;;  %v3531_v14 = vld [vmem:[%s6049_s2 + $0x80] sm:$0xff] }
  0x33   : > { %4564 = vmatpush3.bf16.msra.mxu1 %v4563_v47  ;;  %959 = vperm.xlu0 %4962, %v5387_v39  }
  0x34   : > { %4565 = vmatprep.subr.bf16.mxu1 %v5189_v43  ;;  %964 = vperm.xlu1 %4963, %v5392_v40  }
  0x37   : > { %4567 = vmatpush3.bf16.msra.mxu1 %v4566_v48 }
  0x38   : > { %4568 = vmatprep.subr.bf16.mxu1 %v5189_v43 }
  0x3b   : > { %4570 = vmatpush3.bf16.msra.mxu1 %v4569_v49 }
  0x3c   : > { %4571 = vmatprep.subr.bf16.mxu1 %v5189_v43 }
  0x3f   : > { %4573 = vmatpush3.bf16.msra.mxu1 %v4572_v50 }
  0x40   : > { %4574 = vmatprep.subr.bf16.mxu1 %v5189_v43 }
  0x43   : > { %4576 = vmatpush3.bf16.msra.mxu1 %v4575_v51 }
  0x44   : > { %4577 = vmatprep.subr.bf16.mxu1 %v5189_v43 }
  0x46   : > { %4042 = vmatmul.mubr.f32.vlgmr.msra.gmra.mrb[0].mxu1 %v5398_v42 }
  0x47   : > { %4044 = vmatprep.mubr.msk.f32.mxu1 %vm5190_vm0, %v5191_v45  ;;  %4579 = vmatpush3.bf16.msra.mxu1 %v4554_v41 }
  0x48   : > { %4580 = vmatprep.subr.bf16.mxu1 %v5189_v43 }
  0x4a   : > { %4045 = vmatmul.mubr.f32.gmra.mrb[2].mxu1 %v5417_v52 }
  0x4b   : > { %4047 = vmatprep.mubr.msk.f32.mxu1 %vm5190_vm0, %v5191_v45  ;;  %4582 = vmatpush3.bf16.msra.mxu1 %v4557_v44 }
  0x4c   : > { %4583 = vmatprep.subr.bf16.mxu1 %v5189_v43 }
  0x4e   : > { %4048 = vmatmul.mubr.f32.gmra.mrb[4].mxu1 %v5421_v53 }
  0x4f   : > { %4585 = vmatpush3.bf16.msra.mxu1 %v4560_v46  ;;  %4082 = vmatprep.mubr.msk.f32.mxu1 %vm5190_vm0, %v5191_v45 }
  0x50   : > { %4586 = vmatprep.subr.bf16.mxu1 %v5189_v43 }
  0x53   : > { %4588 = vmatpush3.bf16.msra.mxu1 %v4563_v47 }
  0x54   : > { %4589 = vmatprep.subr.bf16.mxu1 %v5189_v43 }
  0x57   : > { %4591 = vmatpush3.bf16.msra.mxu1 %v4566_v48 }
  0x58   : > { %4592 = vmatprep.subr.bf16.mxu1 %v5189_v43 }
  0x5b   : > { %4594 = vmatpush3.bf16.msra.mxu1 %v4569_v49 }
  0x5c   : > { %4595 = vmatprep.subr.bf16.mxu1 %v5189_v43 }
  0x5f   : > { %4597 = vmatpush3.bf16.msra.mxu1 %v4572_v50 }
  0x60   : > { %4598 = vmatprep.subr.bf16.mxu1 %v5189_v43 }
  0x63   : > { %4600 = vmatpush3.bf16.msra.mxu1 %v4575_v51 }
 0x119   : > { %v405_v55 = vpop.f32.mrb[0].mxu1 }
 0x11a   : > { %v4043_v56 = vpop.f32.mrb[1].mxu1  ;;  %4083 = vmatmul.mubr.f32.vlgmr.msra.gmra.mrb[6].mxu1 %v405_v55 }
 0x11b   : > { %4085 = vmatprep.mubr.msk.f32.mxu1 %vm5190_vm0, %v5191_v45  ;;  %v3532_v56 = vld [vmem:[%s6049_s2 + $0x88] sm:$0xff] }
 0x11d   : > { %v410_v57 = vpop.f32.mrb[2].mxu1 }
 0x11e   : > { %v4046_v58 = vpop.f32.mrb[3].mxu1  ;;  %4086 = vmatmul.mubr.f32.gmra.mrb[8].mxu1 %v410_v57  ;;  %v4601_v59 = vpack.c.bf16 %v410_v57, %v405_v55  ;;  %v3533_v57 = vld [vmem:[%s6049_s2 + $0x90] sm:$0xff] }
 0x11f   : > { %4088 = vmatprep.mubr.msk.f32.mxu1 %vm5190_vm0, %v5191_v45  ;;  %v3537_v58 = vld [vmem:[%s6049_s2 + $0xb0] sm:$0xff] }
 0x120   : > { %4602 = vmatprep.subr.bf16.mxu0 %v4601_v59 }
 0x121   : > { %4604 = vmatpush3.bf16.msra.mxu0 %v4601_v59  ;;  %v415_v60 = vpop.f32.mrb[4].mxu1  ;;  %v3538_v59 = vld [vmem:[%s6049_s2 + $0xb8] sm:$0xff] }
 0x122   : > { %4089 = vmatmul.mubr.f32.gmra.mrb[10].mxu1 %v415_v60  ;;  %v4049_v61 = vpop.f32.mrb[5].mxu1  ;;  %4095 = vmatprep.subr.mxu0 %v415_v60 }
 0x123   : > { %v940_v61 = vpop.permute.xlu1 %939 }
 0x125   : > { %4096 = vmatpush3.msra.mxu0 %v415_v60  ;;  %v930_v60 = vpop.permute.xlu0 %929 }
 0x126   : > { %4098 = vmatmul.mubr.msk.f32.vlgmr.msra.gmra.mrb[0].mxu0 %vm522_vm1, %v3508_v63  ;;  %4606 = vmatprep.subr.bf16.mxu0 %v4605_v62 }
 0x127   : > { %4100 = vmatprep.mubr.msk.f32.mxu0 %vm522_vm1, %v3509_v0  ;;  %4608 = vmatpush3.bf16.msra.mxu0 %v4605_v62  ;;  %v945_v0 = vpop.permute.xlu1 %944 }
 0x128   : > { %4113 = vmatprep.subr.mxu0 %v5421_v53 }
 0x129   : > { %v935_v62 = vpop.permute.xlu0 %934 }
 0x12a   : > { %4101 = vmatmul.mubr.msk.f32.gmra.mrb[2].mxu0 %vm522_vm1, %v3510_v1 }
 0x12b   : > { %4103 = vmatprep.mubr.msk.f32.mxu0 %vm522_vm1, %v3511_v2  ;;  %4114 = vmatpush3.msra.mxu0 %v5421_v53 }
 0x12e   : > { %4104 = vmatmul.mubr.msk.f32.gmra.mrb[4].mxu0 %vm522_vm1, %v3512_v3 }
 0x12f   : > { %4106 = vmatprep.mubr.msk.f32.mxu0 %vm522_vm1, %v3513_v4 }
 0x132   : > { %4107 = vmatmul.mubr.msk.f32.gmra.mrb[6].mxu0 %vm522_vm1, %v3514_v5 }
 0x133   : > { %4115 = vmatprep.mubr.msk.f32.mxu0 %vm522_vm1, %v505_v6 }
 0x136   : > { %4116 = vmatmul.mubr.msk.f32.vlgmr.msra.gmra.mrb[0].mxu0 %vm522_vm1, %v506_v7 }
 0x137   : > { %4118 = vmatprep.mubr.msk.f32.mxu0 %vm522_vm1, %v507_v8 }
 0x13a   : > { %4119 = vmatmul.mubr.msk.f32.gmra.mrb[2].mxu0 %vm522_vm1, %v508_v9 }
 0x13b   : > { %4121 = vmatprep.mubr.msk.f32.mxu0 %vm522_vm1, %v509_v10  ;;  %v955_v10 = vpop.permute.xlu1 %954 }
 0x13e   : > { %4122 = vmatmul.mubr.msk.f32.gmra.mrb[4].mxu0 %vm522_vm1, %v510_v11 }
 0x13f   : > { %4124 = vmatprep.mubr.msk.f32.mxu0 %vm522_vm1, %v511_v12  ;;  %v950_v12 = vpop.permute.xlu0 %949 }
 0x142   : > { %4125 = vmatmul.mubr.msk.f32.gmra.mrb[6].mxu0 %vm522_vm1, %v512_v13 }
 0x143   : > { %4133 = vmatprep.mubr.msk.f32.mxu0 %vm522_vm1, %v3531_v14 }
 0x1ed   : > { %v485_v16 = vpop.f32.mrb[6].mxu1 }
 0x1ee   : > { %v4084_v41 = vpop.f32.mrb[7].mxu1  ;;  %v499_v43 = vmul.f32 2.0, %v485_v16 }
 0x1f0   : > { %v502_v47 = vsub.f32 %v499_v43, %v5398_v42  ;;  %v3534_v42 = vld [vmem:[%s6049_s2 + $0x98] sm:$0xff] }
 0x1f1   : > { %v490_v44 = vpop.f32.mrb[8].mxu1 }
 0x1f2   : > { %v500_v45 = vmul.f32 2.0, %v490_v44  ;;  %v4087_v46 = vpop.f32.mrb[9].mxu1 }
 0x1f4   : > { %v503_v48 = vsub.f32 %v500_v45, %v5417_v52  ;;  %v3535_v52 = vld [vmem:[%s6049_s2 + $0xa0] sm:$0xff]  ;;  %v965_v45 = vpop.permute.xlu1 %964 }
 0x1f5   : > { %v495_v49 = vpop.f32.mrb[10].mxu1 }
 0x1f6   : > { %v501_v50 = vmul.f32 2.0, %v495_v49  ;;  %v4609_v51 = vpack.c.bf16 %v503_v48, %v502_v47  ;;  %v4090_v54 = vpop.f32.mrb[11].mxu1  ;;  %v960_v47 = vpop.permute.xlu0 %959 }
 0x1f8   : > { %v504_v55 = vsub.f32 %v501_v50, %v5421_v53  ;;  %4610 = vmatprep.subr.bf16.mxu0 %v4609_v51  ;;  %v3536_v53 = vld [vmem:[%s6049_s2 + $0xa8] sm:$0xff] }
 0x1f9   : > { %4612 = vmatpush3.bf16.msra.mxu0 %v4609_v51 }
 0x1fa   : > { %4131 = vmatprep.subr.mxu0 %v504_v55 }
 0x1fd   : > { %4132 = vmatpush3.msra.mxu0 %v504_v55 }
 0x1fe   : > { %4134 = vmatmul.mubr.msk.f32.vlgmr.msra.gmra.mrb[0].mxu0 %vm522_vm1, %v3532_v56 }
 0x1ff   : > { %4136 = vmatprep.mubr.msk.f32.mxu0 %vm522_vm1, %v3533_v57 }
 0x202   : > { %4137 = vmatmul.mubr.msk.f32.gmra.mrb[2].mxu0 %vm522_vm1, %v3534_v42 }
 0x203   : > { %4139 = vmatprep.mubr.msk.f32.mxu0 %vm522_vm1, %v3535_v52 }
 0x206   : > { %4140 = vmatmul.mubr.msk.f32.gmra.mrb[4].mxu0 %vm522_vm1, %v3536_v53 }
 0x207   : > { %4142 = vmatprep.mubr.msk.f32.mxu0 %vm522_vm1, %v3537_v58 }
 0x20a   : > { %4143 = vmatmul.mubr.msk.f32.gmra.mrb[6].mxu0 %vm522_vm1, %v3538_v59 }
 0x2d1   : > { %v4135_v63 = vpop.f32.mrb[0].mxu0 }
 0x2d2   : > { %v968_v1 = vadd.f32 %v4135_v63, %v935_v62  ;;  %v880_v2 = vpop.f32.mrb[1].mxu0 }
 0x2d3   : > { %v967_v3 = vadd.f32 %v930_v60, %v880_v2 }
 0x2d4   : > { %v3548_v4 = vmul.f32 -1.442695, %v968_v1  ;;  %v1014_v1 = vld [vmem:[#allocation4 + $0x8] sm:$0xff] }
 0x2d5   : > { %v3547_v5 = vmul.f32 -1.442695, %v967_v3  ;;  %v4138_v6 = vpop.f32.mrb[2].mxu0  ;;  %v1013_v3 = vld [vmem:[#allocation4] sm:$0xff] }
 0x2d6   : > { %4964 = vpow2.f32 %v3548_v4  ;;  %v970_v7 = vadd.f32 %v4138_v6, %v945_v0  ;;  %v890_v8 = vpop.f32.mrb[3].mxu0 }
 0x2d7   : > { %4966 = vpow2.f32 %v3547_v5  ;;  %v969_v9 = vadd.f32 %v940_v61, %v890_v8 }
 0x2d8   : > { %v3550_v11 = vmul.f32 -1.442695, %v970_v7 }
 0x2d9   : > { %v3549_v13 = vmul.f32 -1.442695, %v969_v9  ;;  %v4141_v14 = vpop.f32.mrb[4].mxu0 }
 0x2da   : > { %4968 = vpow2.f32 %v3550_v11  ;;  %v972_v15 = vadd.f32 %v4141_v14, %v955_v10  ;;  %v900_v16 = vpop.f32.mrb[5].mxu0 }
 0x2db   : > { %4970 = vpow2.f32 %v3549_v13  ;;  %v971_v41 = vadd.f32 %v950_v12, %v900_v16 }
 0x2dc   : > { %v3552_v43 = vmul.f32 -1.442695, %v972_v15  ;;  %v1032_v15 = vld [vmem:[#allocation5 + $0x8] sm:$0xff] }
 0x2dd   : > { %v3551_v44 = vmul.f32 -1.442695, %v971_v41  ;;  %v4144_v46 = vpop.f32.mrb[6].mxu0 }
 0x2de   : > { %v974_v48 = vadd.f32 %v4144_v46, %v965_v45  ;;  %v910_v49 = vpop.f32.mrb[7].mxu0  ;;  %4972 = vpow2.f32 %v3552_v43  ;;  %v1031_v43 = vld [vmem:[#allocation5] sm:$0xff] }
 0x2df   : > { %v973_v50 = vadd.f32 %v960_v47, %v910_v49  ;;  %4974 = vpow2.f32 %v3551_v44  ;;  %v1038_v44 = vld [vmem:[#allocation5 + $0x18] sm:$0xff] }
 0x2e0   : > { %v4965_v51 = vpop.eup %4964  ;;  %4976 = vtanh.f32 %v974_v48  ;;  %v1037_v48 = vld [vmem:[#allocation5 + $0x10] sm:$0xff] }
 0x2e1   : > { %v4967_v54 = vpop.eup %4966  ;;  %v982_v55 = vadd.f32 1.0, %v4965_v51  ;;  %4978 = vtanh.f32 %v973_v50 }
 0x2e2   : > { %v981_v56 = vadd.f32 1.0, %v4967_v54 }
 0x2e3   : > { %4980 = vrcp.f32 %v982_v55 }
 0x2e4   : > { %v4969_v57 = vpop.eup %4968  ;;  %4982 = vrcp.f32 %v981_v56 }
 0x2e5   : > { %v4971_v42 = vpop.eup %4970  ;;  %v994_v52 = vadd.f32 1.0, %v4969_v57 }
 0x2e6   : > { %v993_v53 = vadd.f32 1.0, %v4971_v42 }
 0x2e7   : > { %4984 = vrcp.f32 %v994_v52 }
 0x2e8   : > { %4986 = vrcp.f32 %v993_v53  ;;  %v4973_v58 = vpop.eup %4972 }
 0x2e9   : > { %v4975_v59 = vpop.eup %4974  ;;  %v1006_v4 = vadd.f32 1.0, %v4973_v58 }
 0x2ea   : > { %v4977_v60 = vpop.eup %4976  ;;  %v1005_v6 = vadd.f32 1.0, %v4975_v59 }
 0x2eb   : > { %v4979_v61 = vpop.eup %4978  ;;  %4988 = vrcp.f32 %v1006_v4 }
 0x2ec   : > { %4990 = vrcp.f32 %v1005_v6 }
 0x2ed   : > { %v4981_v62 = vpop.eup %4980 }
 0x2ee   : > { %v4983_v63 = vpop.eup %4982  ;;  %v1018_v0 = vmul.f32 %v4981_v62, %v4977_v60 }
 0x2ef   : > { %v1017_v2 = vmul.f32 %v4983_v63, %v4979_v61 }
 0x2f1   : > { %v4985_v5 = vpop.eup %4984 }
 0x2f2   : > { %v4987_v7 = vpop.eup %4986  ;;  %v1016_v8 = vmul.f32 %v4985_v5, %v1014_v1 }
 0x2f3   : > { %v1015_v9 = vmul.f32 %v4987_v7, %v1013_v3 }
 0x2f4   : > { %v1020_v10 = vadd.f32 %v1018_v0, %v1016_v8 }
 0x2f5   : > { %v1019_v11 = vadd.f32 %v1017_v2, %v1015_v9  ;;  %v4989_v12 = vpop.eup %4988 }
 0x2f6   : > { %4992 = vtanh.f32 %v1020_v10  ;;  %1026 = vst [vmem:[#allocation4 + $0x8] sm:$0xff] %v1020_v10  ;;  %v4991_v13 = vpop.eup %4990 }
 0x2f7   : > { %4994 = vtanh.f32 %v1019_v11  ;;  %1025 = vst [vmem:[#allocation4] sm:$0xff] %v1019_v11 }
 0x300   : > { %v4993_v14 = vpop.eup %4992 }
 0x301   : > { %v4995_v16 = vpop.eup %4994  ;;  %v1024_v41 = vmul.f32 %v4993_v14, %v4989_v12 }
 0x302   : > { %v1023_v45 = vmul.f32 %v4995_v16, %v4991_v13 }
 0x303   : > { %1028 = vst [vmem:[#allocation3 + $0x10] sm:$0xff] %v1024_v41  ;;  %1030 = vst [vmem:[%s5271_s10 + $0x20] sm:$0xff] %v1024_v41  ;;  %v1034_v46 = vadd.f32 %v1032_v15, %v1024_v41  ;;  %v1040_v47 = vmul.f32 %v1024_v41, %v1024_v41 }
 0x304   : > { %1027 = vst [vmem:[#allocation3 + $0x8] sm:$0xff] %v1023_v45  ;;  %1029 = vst [vmem:[%s5271_s10] sm:$0xff] %v1023_v45  ;;  %v1033_v49 = vadd.f32 %v1031_v43, %v1023_v45  ;;  %v1039_v50 = vmul.f32 %v1023_v45, %v1023_v45 }
 0x305   : > { %1036 = vst [vmem:[#allocation5 + $0x8] sm:$0xff] %v1034_v46  ;;  %v1042_v51 = vadd.f32 %v1040_v47, %v1038_v44 }
 0x306   : > { %1035 = vst [vmem:[#allocation5] sm:$0xff] %v1033_v49  ;;  %v1041_v54 = vadd.f32 %v1039_v50, %v1037_v48 }
 0x307   : > { %1044 = vst [vmem:[#allocation5 + $0x18] sm:$0xff] %v1042_v51 }
 0x308   : > { %1043 = vst [vmem:[#allocation5 + $0x10] sm:$0xff] %v1041_v54 }
 0x309 PF: > { %s1045_s27 = sadd.s32 1, %s5262_s28 }
 0x30a   : > { %p3553_p10 = scmp.ge.s32.totalorder %s1045_s27, 6 }
 0x30b   : > { %v4614_v55 = vpack.c.bf16 (!%p3553_p10), %v5324_v18, %v5322_v17  ;;  %v5544_v56 = vld [vmem:[%s5269_s9 + $0x8] sm:$0xff] (!%p3553_p10)  ;;  %v5193_v57 = vmov (!%p3553_p10), 0.0|0.0   ;;  %v4617_v42 = vpack.c.bf16 (!%p3553_p10), %v5328_v20, %v5326_v19  ;;  %vm5194_vm2 = vmmov (!%p3553_p10), 0   ;;  %v5567_v0 = vld [vmem:[#allocation3 + $0x10] sm:$0xff] (!%p3553_p10)  ;;  %v3555_v1 = vld [vmem:[%s6049_s2 + $0x40] sm:$0xff] (!%p3553_p10) }
 0x30c   : > { %1049 = sbr.rel (%p3553_p10) target bundleno = 1519 (0x5ef), region = 78  ;;  %4613 = vmatprep.subr.bf16.mxu1 (!%p3553_p10), %v5193_v57  ;;  %v5195_v52 = vmov (!%p3553_p10), 0.0   ;;  %v4620_v53 = vpack.c.bf16 (!%p3553_p10), %v5332_v22, %v5330_v21  ;;  %v4623_v58 = vpack.c.bf16 (!%p3553_p10), %v5336_v24, %v5334_v23  ;;  %v4626_v59 = vpack.c.bf16 (!%p3553_p10), %v5340_v26, %v5338_v25  ;;  %v5563_v63 = vld [vmem:[#allocation3 + $0x8] sm:$0xff] (!%p3553_p10)  ;;  %v3557_v11 = vld [vmem:[%s6049_s2 + $0x50] sm:$0xff] (!%p3553_p10)  ;;  %v3558_v12 = vld [vmem:[%s6049_s2 + $0x58] sm:$0xff] (!%p3553_p10) }
 0x30d   : > { %4615 = vmatpush3.bf16.msra.mxu1 (!%p3553_p10), %v4614_v55  ;;  %4177 = vmatprep.mubr.msk.f32.mxu1 (!%p3553_p10), %vm5194_vm2, %v5195_v52  ;;  %v4629_v60 = vpack.c.bf16 (!%p3553_p10), %v5344_v28, %v5342_v27  ;;  %v4632_v61 = vpack.c.bf16 (!%p3553_p10), %v5348_v30, %v5346_v29  ;;  %v4635_v62 = vpack.c.bf16 (!%p3553_p10), %v5352_v32, %v5350_v31  ;;  %vm1239_vm3 = vcmask (!%p3553_p10), 195584   ;;  %v3556_v10 = vld [vmem:[%s6049_s2 + $0x48] sm:$0xff] (!%p3553_p10)  ;;  %v3559_v13 = vld [vmem:[%s6049_s2 + $0x60] sm:$0xff] (!%p3553_p10)  ;;  %v3561_v15 = vld [vmem:[%s6049_s2 + $0x70] sm:$0xff] (!%p3553_p10) }
 0x30e   : > { %4616 = vmatprep.subr.bf16.mxu1 (!%p3553_p10), %v5193_v57  ;;  %4233 = vmatprep.mubr.msk.f32.mxu0 (!%p3553_p10), %vm1239_vm3, %v3555_v1  ;;  %v4665_v9 = vpack.c.bf16 (!%p3553_p10), %v5563_v63, %v5544_v56  ;;  %v3560_v14 = vld [vmem:[%s6049_s2 + $0x68] sm:$0xff] (!%p3553_p10)  ;;  %v3562_v16 = vld [vmem:[%s6049_s2 + $0x78] sm:$0xff] (!%p3553_p10)  ;;  %v1222_v41 = vld [vmem:[%s6049_s2] sm:$0xff] (!%p3553_p10)  ;;  %v5196_v51 = vmov (!%p3553_p10), 0  }
 0x30f   : > { %v1223_v43 = vld [vmem:[%s6049_s2 + $0x8] sm:$0xff] (!%p3553_p10)  ;;  %v1224_v44 = vld [vmem:[%s6049_s2 + $0x10] sm:$0xff] (!%p3553_p10)  ;;  %v1225_v45 = vld [vmem:[%s6049_s2 + $0x18] sm:$0xff] (!%p3553_p10)  ;;  %4996 = vset.pattern.permute.xlu0 (!%p3553_p10), %v5196_v51  ;;  %4997 = vset.pattern.permute.xlu1 (!%p3553_p10), %v5196_v51 }
 0x310   : > { %v1226_v46 = vld [vmem:[%s6049_s2 + $0x20] sm:$0xff] (!%p3553_p10)  ;;  %v1227_v47 = vld [vmem:[%s6049_s2 + $0x28] sm:$0xff] (!%p3553_p10)  ;;  %v1228_v48 = vld [vmem:[%s6049_s2 + $0x30] sm:$0xff] (!%p3553_p10)  ;;  %1646 = vperm.xlu0 (!%p3553_p10), %4996, %v5357_v33   ;;  %1656 = vperm.xlu1 (!%p3553_p10), %4997, %v5367_v35  }
 0x311   : > { %4618 = vmatpush3.bf16.msra.mxu1 (!%p3553_p10), %v4617_v42  ;;  %v1229_v49 = vld [vmem:[%s6049_s2 + $0x38] sm:$0xff] (!%p3553_p10)  ;;  %v3579_v50 = vld [vmem:[%s6049_s2 + $0x80] sm:$0xff] (!%p3553_p10) }
 0x312   : > { %4619 = vmatprep.subr.bf16.mxu1 (!%p3553_p10), %v5193_v57 }
 0x314   : > { %1651 = vperm.xlu0 %4996, %v5362_v34   ;;  %1661 = vperm.xlu1 %4997, %v5372_v36  }
 0x315   : > { %4621 = vmatpush3.bf16.msra.mxu1 %v4620_v53 }
 0x316   : > { %4622 = vmatprep.subr.bf16.mxu1 %v5193_v57 }
 0x318   : > { %1671 = vperm.xlu1 %4997, %v5382_v38   ;;  %1666 = vperm.xlu0 %4996, %v5377_v37  }
 0x319   : > { %4624 = vmatpush3.bf16.msra.mxu1 %v4623_v58 }
 0x31a   : > { %4625 = vmatprep.subr.bf16.mxu1 %v5193_v57 }
 0x31c   : > { %1681 = vperm.xlu1 %4997, %v5392_v40   ;;  %1676 = vperm.xlu0 %4996, %v5387_v39  }
 0x31d   : > { %4627 = vmatpush3.bf16.msra.mxu1 %v4626_v59 }
 0x31e   : > { %4628 = vmatprep.subr.bf16.mxu1 %v5193_v57 }
 0x321   : > { %4630 = vmatpush3.bf16.msra.mxu1 %v4629_v60 }
 0x322   : > { %4631 = vmatprep.subr.bf16.mxu1 %v5193_v57 }
 0x325   : > { %4633 = vmatpush3.bf16.msra.mxu1 %v4632_v61 }
 0x326   : > { %4634 = vmatprep.subr.bf16.mxu1 %v5193_v57 }
 0x329   : > { %4636 = vmatpush3.bf16.msra.mxu1 %v4635_v62 }
 0x32a   : > { %4637 = vmatprep.subr.bf16.mxu1 %v5193_v57 }
 0x32c   : > { %4178 = vmatmul.mubr.f32.vlgmr.msra.gmra.mrb[0].mxu1 %v5544_v56 }
 0x32d   : > { %4180 = vmatprep.mubr.msk.f32.mxu1 %vm5194_vm2, %v5195_v52  ;;  %4639 = vmatpush3.bf16.msra.mxu1 %v4614_v55 }
 0x32e   : > { %4640 = vmatprep.subr.bf16.mxu1 %v5193_v57 }
 0x330   : > { %4181 = vmatmul.mubr.f32.gmra.mrb[2].mxu1 %v5563_v63 }
 0x331   : > { %4183 = vmatprep.mubr.msk.f32.mxu1 %vm5194_vm2, %v5195_v52  ;;  %4642 = vmatpush3.bf16.msra.mxu1 %v4617_v42 }
 0x332   : > { %4643 = vmatprep.subr.bf16.mxu1 %v5193_v57 }
 0x334   : > { %4184 = vmatmul.mubr.f32.gmra.mrb[4].mxu1 %v5567_v0 }
 0x335   : > { %4645 = vmatpush3.bf16.msra.mxu1 %v4620_v53  ;;  %4218 = vmatprep.mubr.msk.f32.mxu1 %vm5194_vm2, %v5195_v52 }
 0x336   : > { %4646 = vmatprep.subr.bf16.mxu1 %v5193_v57 }
 0x339   : > { %4648 = vmatpush3.bf16.msra.mxu1 %v4623_v58 }
 0x33a   : > { %4649 = vmatprep.subr.bf16.mxu1 %v5193_v57 }
 0x33d   : > { %4651 = vmatpush3.bf16.msra.mxu1 %v4626_v59 }
 0x33e   : > { %4652 = vmatprep.subr.bf16.mxu1 %v5193_v57 }
 0x341   : > { %4654 = vmatpush3.bf16.msra.mxu1 %v4629_v60 }
 0x342   : > { %4655 = vmatprep.subr.bf16.mxu1 %v5193_v57 }
 0x345   : > { %4657 = vmatpush3.bf16.msra.mxu1 %v4632_v61 }
 0x346   : > { %4658 = vmatprep.subr.bf16.mxu1 %v5193_v57 }
 0x349   : > { %4660 = vmatpush3.bf16.msra.mxu1 %v4635_v62 }
 0x3ff   : > { %v1122_v2 = vpop.f32.mrb[0].mxu1 }
 0x400   : > { %v4179_v3 = vpop.f32.mrb[1].mxu1  ;;  %4219 = vmatmul.mubr.f32.vlgmr.msra.gmra.mrb[6].mxu1 %v1122_v2 }
 0x401   : > { %4221 = vmatprep.mubr.msk.f32.mxu1 %vm5194_vm2, %v5195_v52  ;;  %v3580_v3 = vld [vmem:[%s6049_s2 + $0x88] sm:$0xff] }
 0x403   : > { %v1127_v4 = vpop.f32.mrb[2].mxu1 }
 0x404   : > { %v4182_v5 = vpop.f32.mrb[3].mxu1  ;;  %4222 = vmatmul.mubr.f32.gmra.mrb[8].mxu1 %v1127_v4  ;;  %v4661_v6 = vpack.c.bf16 %v1127_v4, %v1122_v2  ;;  %v3581_v4 = vld [vmem:[%s6049_s2 + $0x90] sm:$0xff] }
 0x405   : > { %4224 = vmatprep.mubr.msk.f32.mxu1 %vm5194_vm2, %v5195_v52  ;;  %v3585_v5 = vld [vmem:[%s6049_s2 + $0xb0] sm:$0xff] }
 0x406   : > { %4662 = vmatprep.subr.bf16.mxu0 %v4661_v6 }
 0x407   : > { %4664 = vmatpush3.bf16.msra.mxu0 %v4661_v6  ;;  %v1132_v7 = vpop.f32.mrb[4].mxu1  ;;  %v3586_v6 = vld [vmem:[%s6049_s2 + $0xb8] sm:$0xff] }
 0x408   : > { %4225 = vmatmul.mubr.f32.gmra.mrb[10].mxu1 %v1132_v7  ;;  %v4185_v8 = vpop.f32.mrb[5].mxu1  ;;  %4231 = vmatprep.subr.mxu0 %v1132_v7 }
 0x409   : > { %v1657_v8 = vpop.permute.xlu1 %1656 }
 0x40b   : > { %4232 = vmatpush3.msra.mxu0 %v1132_v7  ;;  %v1647_v7 = vpop.permute.xlu0 %1646 }
 0x40c   : > { %4234 = vmatmul.mubr.msk.f32.vlgmr.msra.gmra.mrb[0].mxu0 %vm1239_vm3, %v3556_v10  ;;  %4666 = vmatprep.subr.bf16.mxu0 %v4665_v9 }
 0x40d   : > { %4236 = vmatprep.mubr.msk.f32.mxu0 %vm1239_vm3, %v3557_v11  ;;  %4668 = vmatpush3.bf16.msra.mxu0 %v4665_v9  ;;  %v1662_v11 = vpop.permute.xlu1 %1661 }
 0x40e   : > { %4249 = vmatprep.subr.mxu0 %v5567_v0 }
 0x40f   : > { %v1652_v9 = vpop.permute.xlu0 %1651 }
 0x410   : > { %4237 = vmatmul.mubr.msk.f32.gmra.mrb[2].mxu0 %vm1239_vm3, %v3558_v12 }
 0x411   : > { %4239 = vmatprep.mubr.msk.f32.mxu0 %vm1239_vm3, %v3559_v13  ;;  %4250 = vmatpush3.msra.mxu0 %v5567_v0 }
 0x414   : > { %4240 = vmatmul.mubr.msk.f32.gmra.mrb[4].mxu0 %vm1239_vm3, %v3560_v14 }
 0x415   : > { %4242 = vmatprep.mubr.msk.f32.mxu0 %vm1239_vm3, %v3561_v15 }
 0x418   : > { %4243 = vmatmul.mubr.msk.f32.gmra.mrb[6].mxu0 %vm1239_vm3, %v3562_v16 }
 0x419   : > { %4251 = vmatprep.mubr.msk.f32.mxu0 %vm1239_vm3, %v1222_v41 }
 0x41c   : > { %4252 = vmatmul.mubr.msk.f32.vlgmr.msra.gmra.mrb[0].mxu0 %vm1239_vm3, %v1223_v43 }
 0x41d   : > { %4254 = vmatprep.mubr.msk.f32.mxu0 %vm1239_vm3, %v1224_v44 }
 0x420   : > { %4255 = vmatmul.mubr.msk.f32.gmra.mrb[2].mxu0 %vm1239_vm3, %v1225_v45 }
 0x421   : > { %4257 = vmatprep.mubr.msk.f32.mxu0 %vm1239_vm3, %v1226_v46  ;;  %v1672_v46 = vpop.permute.xlu1 %1671 }
 0x424   : > { %4258 = vmatmul.mubr.msk.f32.gmra.mrb[4].mxu0 %vm1239_vm3, %v1227_v47 }
 0x425   : > { %4260 = vmatprep.mubr.msk.f32.mxu0 %vm1239_vm3, %v1228_v48  ;;  %v1667_v48 = vpop.permute.xlu0 %1666 }
 0x428   : > { %4261 = vmatmul.mubr.msk.f32.gmra.mrb[6].mxu0 %vm1239_vm3, %v1229_v49 }
 0x429   : > { %4269 = vmatprep.mubr.msk.f32.mxu0 %vm1239_vm3, %v3579_v50 }
 0x4d3   : > { %v1202_v54 = vpop.f32.mrb[6].mxu1 }
 0x4d4   : > { %v4220_v55 = vpop.f32.mrb[7].mxu1  ;;  %v1216_v57 = vmul.f32 2.0, %v1202_v54 }
 0x4d6   : > { %v1219_v58 = vsub.f32 %v1216_v57, %v5544_v56  ;;  %v3582_v56 = vld [vmem:[%s6049_s2 + $0x98] sm:$0xff] }
 0x4d7   : > { %v1207_v42 = vpop.f32.mrb[8].mxu1 }
 0x4d8   : > { %v1217_v52 = vmul.f32 2.0, %v1207_v42  ;;  %v4223_v53 = vpop.f32.mrb[9].mxu1 }
 0x4da   : > { %v1220_v59 = vsub.f32 %v1217_v52, %v5563_v63  ;;  %v3583_v63 = vld [vmem:[%s6049_s2 + $0xa0] sm:$0xff]  ;;  %v1682_v52 = vpop.permute.xlu1 %1681 }
 0x4db   : > { %v1212_v60 = vpop.f32.mrb[10].mxu1 }
 0x4dc   : > { %v1218_v61 = vmul.f32 2.0, %v1212_v60  ;;  %v4669_v62 = vpack.c.bf16 %v1220_v59, %v1219_v58  ;;  %v4226_v1 = vpop.f32.mrb[11].mxu1  ;;  %v1677_v58 = vpop.permute.xlu0 %1676 }
 0x4de   : > { %v1221_v2 = vsub.f32 %v1218_v61, %v5567_v0  ;;  %4670 = vmatprep.subr.bf16.mxu0 %v4669_v62  ;;  %v3584_v0 = vld [vmem:[%s6049_s2 + $0xa8] sm:$0xff] }
 0x4df   : > { %4672 = vmatpush3.bf16.msra.mxu0 %v4669_v62 }
 0x4e0   : > { %4267 = vmatprep.subr.mxu0 %v1221_v2 }
 0x4e3   : > { %4268 = vmatpush3.msra.mxu0 %v1221_v2 }
 0x4e4   : > { %4270 = vmatmul.mubr.msk.f32.vlgmr.msra.gmra.mrb[0].mxu0 %vm1239_vm3, %v3580_v3 }
 0x4e5   : > { %4272 = vmatprep.mubr.msk.f32.mxu0 %vm1239_vm3, %v3581_v4 }
 0x4e8   : > { %4273 = vmatmul.mubr.msk.f32.gmra.mrb[2].mxu0 %vm1239_vm3, %v3582_v56 }
 0x4e9   : > { %4275 = vmatprep.mubr.msk.f32.mxu0 %vm1239_vm3, %v3583_v63 }
 0x4ec   : > { %4276 = vmatmul.mubr.msk.f32.gmra.mrb[4].mxu0 %vm1239_vm3, %v3584_v0 }
 0x4ed   : > { %4278 = vmatprep.mubr.msk.f32.mxu0 %vm1239_vm3, %v3585_v5 }
 0x4f0   : > { %4279 = vmatmul.mubr.msk.f32.gmra.mrb[6].mxu0 %vm1239_vm3, %v3586_v6 }
 0x5b7   : > { %v4271_v10 = vpop.f32.mrb[0].mxu0 }
 0x5b8   : > { %v1685_v12 = vadd.f32 %v4271_v10, %v1652_v9  ;;  %v1597_v13 = vpop.f32.mrb[1].mxu0 }
 0x5b9   : > { %v1684_v14 = vadd.f32 %v1647_v7, %v1597_v13 }
 0x5ba   : > { %v3596_v15 = vmul.f32 -1.442695, %v1685_v12  ;;  %v1731_v12 = vld [vmem:[#allocation4 + $0x8] sm:$0xff] }
 0x5bb   : > { %v3595_v16 = vmul.f32 -1.442695, %v1684_v14  ;;  %v4274_v41 = vpop.f32.mrb[2].mxu0  ;;  %v1730_v14 = vld [vmem:[#allocation4] sm:$0xff] }
 0x5bc   : > { %4998 = vpow2.f32 %v3596_v15  ;;  %v1687_v43 = vadd.f32 %v4274_v41, %v1662_v11  ;;  %v1607_v44 = vpop.f32.mrb[3].mxu0 }
 0x5bd   : > { %5000 = vpow2.f32 %v3595_v16  ;;  %v1686_v45 = vadd.f32 %v1657_v8, %v1607_v44 }
 0x5be   : > { %v3598_v47 = vmul.f32 -1.442695, %v1687_v43 }
 0x5bf   : > { %v3597_v49 = vmul.f32 -1.442695, %v1686_v45  ;;  %v4277_v50 = vpop.f32.mrb[4].mxu0 }
 0x5c0   : > { %5002 = vpow2.f32 %v3598_v47  ;;  %v1689_v51 = vadd.f32 %v4277_v50, %v1672_v46  ;;  %v1617_v54 = vpop.f32.mrb[5].mxu0 }
 0x5c1   : > { %5004 = vpow2.f32 %v3597_v49  ;;  %v1688_v55 = vadd.f32 %v1667_v48, %v1617_v54 }
 0x5c2   : > { %v3600_v57 = vmul.f32 -1.442695, %v1689_v51  ;;  %v1750_v51 = vld [vmem:[#allocation5 + $0x8] sm:$0xff] }
 0x5c3   : > { %v3599_v42 = vmul.f32 -1.442695, %v1688_v55  ;;  %v4280_v53 = vpop.f32.mrb[6].mxu0 }
 0x5c4   : > { %v1691_v59 = vadd.f32 %v4280_v53, %v1682_v52  ;;  %v1627_v60 = vpop.f32.mrb[7].mxu0  ;;  %5006 = vpow2.f32 %v3600_v57  ;;  %v1749_v57 = vld [vmem:[#allocation5] sm:$0xff] }
 0x5c5   : > { %v1690_v61 = vadd.f32 %v1677_v58, %v1627_v60  ;;  %5008 = vpow2.f32 %v3599_v42  ;;  %v1756_v42 = vld [vmem:[#allocation5 + $0x18] sm:$0xff] }
 0x5c6   : > { %v4999_v62 = vpop.eup %4998  ;;  %5010 = vtanh.f32 %v1691_v59  ;;  %v1755_v59 = vld [vmem:[#allocation5 + $0x10] sm:$0xff] }
 0x5c7   : > { %v5001_v1 = vpop.eup %5000  ;;  %v1699_v2 = vadd.f32 1.0, %v4999_v62  ;;  %5012 = vtanh.f32 %v1690_v61 }
 0x5c8   : > { %v1698_v3 = vadd.f32 1.0, %v5001_v1 }
 0x5c9   : > { %5014 = vrcp.f32 %v1699_v2 }
 0x5ca   : > { %v5003_v4 = vpop.eup %5002  ;;  %5016 = vrcp.f32 %v1698_v3 }
 0x5cb   : > { %v5005_v56 = vpop.eup %5004  ;;  %v1711_v63 = vadd.f32 1.0, %v5003_v4 }
 0x5cc   : > { %v1710_v0 = vadd.f32 1.0, %v5005_v56 }
 0x5cd   : > { %5018 = vrcp.f32 %v1711_v63 }
 0x5ce   : > { %5020 = vrcp.f32 %v1710_v0  ;;  %v5007_v5 = vpop.eup %5006 }
 0x5cf   : > { %v5009_v6 = vpop.eup %5008  ;;  %v1723_v15 = vadd.f32 1.0, %v5007_v5 }
 0x5d0   : > { %v5011_v7 = vpop.eup %5010  ;;  %v1722_v41 = vadd.f32 1.0, %v5009_v6 }
 0x5d1   : > { %v5013_v8 = vpop.eup %5012  ;;  %5022 = vrcp.f32 %v1723_v15 }
 0x5d2   : > { %5024 = vrcp.f32 %v1722_v41 }
 0x5d3   : > { %v5015_v9 = vpop.eup %5014 }
 0x5d4   : > { %v5017_v10 = vpop.eup %5016  ;;  %v1735_v11 = vmul.f32 %v5015_v9, %v5011_v7 }
 0x5d5   : > { %v1734_v13 = vmul.f32 %v5017_v10, %v5013_v8 }
 0x5d7   : > { %v5019_v16 = vpop.eup %5018 }
 0x5d8   : > { %v5021_v43 = vpop.eup %5020  ;;  %v1733_v44 = vmul.f32 %v5019_v16, %v1731_v12 }
 0x5d9   : > { %v1732_v45 = vmul.f32 %v5021_v43, %v1730_v14 }
 0x5da   : > { %v1737_v46 = vadd.f32 %v1735_v11, %v1733_v44 }
 0x5db   : > { %v1736_v47 = vadd.f32 %v1734_v13, %v1732_v45  ;;  %v5023_v48 = vpop.eup %5022 }
 0x5dc   : > { %5026 = vtanh.f32 %v1737_v46  ;;  %1743 = vst [vmem:[#allocation4 + $0x8] sm:$0xff] %v1737_v46  ;;  %v5025_v49 = vpop.eup %5024 }
 0x5dd   : > { %5028 = vtanh.f32 %v1736_v47  ;;  %1742 = vst [vmem:[#allocation4] sm:$0xff] %v1736_v47 }
 0x5e6   : > { %v5027_v50 = vpop.eup %5026 }
 0x5e7   : > { %v5029_v54 = vpop.eup %5028  ;;  %v1741_v55 = vmul.f32 %v5027_v50, %v5023_v48 }
 0x5e8   : > { %v1740_v52 = vmul.f32 %v5029_v54, %v5025_v49 }
 0x5e9   : > { %1745 = vst [vmem:[#allocation3 + $0x10] sm:$0xff] %v1741_v55  ;;  %3602 = vst [vmem:[%s5271_s10 + $0x28] sm:$0xff] %v1741_v55  ;;  %v1752_v53 = vadd.f32 %v1750_v51, %v1741_v55  ;;  %v1758_v58 = vmul.f32 %v1741_v55, %v1741_v55 }
 0x5ea   : > { %1744 = vst [vmem:[#allocation3 + $0x8] sm:$0xff] %v1740_v52  ;;  %3601 = vst [vmem:[%s5271_s10 + $0x8] sm:$0xff] %v1740_v52  ;;  %v1751_v60 = vadd.f32 %v1749_v57, %v1740_v52  ;;  %v1757_v61 = vmul.f32 %v1740_v52, %v1740_v52 }
 0x5eb   : > { %1754 = vst [vmem:[#allocation5 + $0x8] sm:$0xff] %v1752_v53  ;;  %v1760_v62 = vadd.f32 %v1758_v58, %v1756_v42 }
 0x5ec   : > { %1753 = vst [vmem:[#allocation5] sm:$0xff] %v1751_v60  ;;  %v1759_v1 = vadd.f32 %v1757_v61, %v1755_v59 }
 0x5ed   : > { %1762 = vst [vmem:[#allocation5 + $0x18] sm:$0xff] %v1760_v62 }
 0x5ee   : > { %1761 = vst [vmem:[#allocation5 + $0x10] sm:$0xff] %v1759_v1 }
 0x5ef PF: > { %s1763_s23 = sadd.s32 2, %s5262_s28 }
 0x5f0   : > { %p3603_p11 = scmp.ge.s32.totalorder %s1763_s23, 6 }
 0x5f1   : > { %v4674_v2 = vpack.c.bf16 (!%p3603_p11), %v5324_v18, %v5322_v17  ;;  %v5690_v3 = vld [vmem:[%s5269_s9 + $0x10] sm:$0xff] (!%p3603_p11)  ;;  %v5197_v4 = vmov (!%p3603_p11), 0.0|0.0   ;;  %v4677_v56 = vpack.c.bf16 (!%p3603_p11), %v5328_v20, %v5326_v19  ;;  %vm5198_vm4 = vmmov (!%p3603_p11), 0   ;;  %v5709_v10 = vld [vmem:[#allocation3 + $0x8] sm:$0xff] (!%p3603_p11)  ;;  %v3605_v12 = vld [vmem:[%s6049_s2 + $0x40] sm:$0xff] (!%p3603_p11) }
 0x5f2   : > { %1767 = sbr.rel (%p3603_p11) target bundleno = 2261 (0x8d5), region = 82  ;;  %4673 = vmatprep.subr.bf16.mxu1 (!%p3603_p11), %v5197_v4  ;;  %v5199_v63 = vmov (!%p3603_p11), 0.0   ;;  %v4680_v0 = vpack.c.bf16 (!%p3603_p11), %v5332_v22, %v5330_v21  ;;  %v4683_v5 = vpack.c.bf16 (!%p3603_p11), %v5336_v24, %v5334_v23  ;;  %v4686_v6 = vpack.c.bf16 (!%p3603_p11), %v5340_v26, %v5338_v25  ;;  %v5713_v11 = vld [vmem:[#allocation3 + $0x10] sm:$0xff] (!%p3603_p11)  ;;  %v3606_v46 = vld [vmem:[%s6049_s2 + $0x48] sm:$0xff] (!%p3603_p11)  ;;  %v3608_v48 = vld [vmem:[%s6049_s2 + $0x58] sm:$0xff] (!%p3603_p11) }
 0x5f3   : > { %4675 = vmatpush3.bf16.msra.mxu1 (!%p3603_p11), %v4674_v2  ;;  %4313 = vmatprep.mubr.msk.f32.mxu1 (!%p3603_p11), %vm5198_vm4, %v5199_v63  ;;  %v4689_v7 = vpack.c.bf16 (!%p3603_p11), %v5344_v28, %v5342_v27  ;;  %v4692_v8 = vpack.c.bf16 (!%p3603_p11), %v5348_v30, %v5346_v29  ;;  %v4695_v9 = vpack.c.bf16 (!%p3603_p11), %v5352_v32, %v5350_v31  ;;  %vm1957_vm5 = vcmask (!%p3603_p11), 195584   ;;  %v3607_v47 = vld [vmem:[%s6049_s2 + $0x50] sm:$0xff] (!%p3603_p11)  ;;  %v3609_v49 = vld [vmem:[%s6049_s2 + $0x60] sm:$0xff] (!%p3603_p11)  ;;  %v3610_v50 = vld [vmem:[%s6049_s2 + $0x68] sm:$0xff] (!%p3603_p11) }
 0x5f4   : > { %4676 = vmatprep.subr.bf16.mxu1 (!%p3603_p11), %v5197_v4  ;;  %4369 = vmatprep.mubr.msk.f32.mxu0 (!%p3603_p11), %vm1957_vm5, %v3605_v12  ;;  %v4725_v45 = vpack.c.bf16 (!%p3603_p11), %v5709_v10, %v5690_v3  ;;  %v3611_v51 = vld [vmem:[%s6049_s2 + $0x70] sm:$0xff] (!%p3603_p11)  ;;  %v3612_v54 = vld [vmem:[%s6049_s2 + $0x78] sm:$0xff] (!%p3603_p11)  ;;  %v1940_v55 = vld [vmem:[%s6049_s2] sm:$0xff] (!%p3603_p11)  ;;  %v5200_v62 = vmov (!%p3603_p11), 0  }
 0x5f5   : > { %v1941_v57 = vld [vmem:[%s6049_s2 + $0x8] sm:$0xff] (!%p3603_p11)  ;;  %v1942_v42 = vld [vmem:[%s6049_s2 + $0x10] sm:$0xff] (!%p3603_p11)  ;;  %v1943_v52 = vld [vmem:[%s6049_s2 + $0x18] sm:$0xff] (!%p3603_p11)  ;;  %5030 = vset.pattern.permute.xlu0 (!%p3603_p11), %v5200_v62  ;;  %5031 = vset.pattern.permute.xlu1 (!%p3603_p11), %v5200_v62 }
 0x5f6   : > { %v1944_v53 = vld [vmem:[%s6049_s2 + $0x20] sm:$0xff] (!%p3603_p11)  ;;  %v1945_v58 = vld [vmem:[%s6049_s2 + $0x28] sm:$0xff] (!%p3603_p11)  ;;  %v1946_v59 = vld [vmem:[%s6049_s2 + $0x30] sm:$0xff] (!%p3603_p11)  ;;  %2364 = vperm.xlu0 (!%p3603_p11), %5030, %v5357_v33   ;;  %2374 = vperm.xlu1 (!%p3603_p11), %5031, %v5367_v35  }
 0x5f7   : > { %4678 = vmatpush3.bf16.msra.mxu1 (!%p3603_p11), %v4677_v56  ;;  %v1947_v60 = vld [vmem:[%s6049_s2 + $0x38] sm:$0xff] (!%p3603_p11)  ;;  %v3629_v61 = vld [vmem:[%s6049_s2 + $0x80] sm:$0xff] (!%p3603_p11) }
 0x5f8   : > { %4679 = vmatprep.subr.bf16.mxu1 (!%p3603_p11), %v5197_v4 }
 0x5fa   : > { %2369 = vperm.xlu0 %5030, %v5362_v34   ;;  %2379 = vperm.xlu1 %5031, %v5372_v36  }
 0x5fb   : > { %4681 = vmatpush3.bf16.msra.mxu1 %v4680_v0 }
 0x5fc   : > { %4682 = vmatprep.subr.bf16.mxu1 %v5197_v4 }
 0x5fe   : > { %2389 = vperm.xlu1 %5031, %v5382_v38   ;;  %2384 = vperm.xlu0 %5030, %v5377_v37  }
 0x5ff   : > { %4684 = vmatpush3.bf16.msra.mxu1 %v4683_v5 }
 0x600   : > { %4685 = vmatprep.subr.bf16.mxu1 %v5197_v4 }
 0x602   : > { %2399 = vperm.xlu1 %5031, %v5392_v40   ;;  %2394 = vperm.xlu0 %5030, %v5387_v39  }
 0x603   : > { %4687 = vmatpush3.bf16.msra.mxu1 %v4686_v6 }
 0x604   : > { %4688 = vmatprep.subr.bf16.mxu1 %v5197_v4 }
 0x607   : > { %4690 = vmatpush3.bf16.msra.mxu1 %v4689_v7 }
 0x608   : > { %4691 = vmatprep.subr.bf16.mxu1 %v5197_v4 }
 0x60b   : > { %4693 = vmatpush3.bf16.msra.mxu1 %v4692_v8 }
 0x60c   : > { %4694 = vmatprep.subr.bf16.mxu1 %v5197_v4 }
 0x60f   : > { %4696 = vmatpush3.bf16.msra.mxu1 %v4695_v9 }
 0x610   : > { %4697 = vmatprep.subr.bf16.mxu1 %v5197_v4 }
 0x612   : > { %4314 = vmatmul.mubr.f32.vlgmr.msra.gmra.mrb[0].mxu1 %v5690_v3 }
 0x613   : > { %4316 = vmatprep.mubr.msk.f32.mxu1 %vm5198_vm4, %v5199_v63  ;;  %4699 = vmatpush3.bf16.msra.mxu1 %v4674_v2 }
 0x614   : > { %4700 = vmatprep.subr.bf16.mxu1 %v5197_v4 }
 0x616   : > { %4317 = vmatmul.mubr.f32.gmra.mrb[2].mxu1 %v5709_v10 }
 0x617   : > { %4319 = vmatprep.mubr.msk.f32.mxu1 %vm5198_vm4, %v5199_v63  ;;  %4702 = vmatpush3.bf16.msra.mxu1 %v4677_v56 }
 0x618   : > { %4703 = vmatprep.subr.bf16.mxu1 %v5197_v4 }
 0x61a   : > { %4320 = vmatmul.mubr.f32.gmra.mrb[4].mxu1 %v5713_v11 }
 0x61b   : > { %4705 = vmatpush3.bf16.msra.mxu1 %v4680_v0  ;;  %4354 = vmatprep.mubr.msk.f32.mxu1 %vm5198_vm4, %v5199_v63 }
 0x61c   : > { %4706 = vmatprep.subr.bf16.mxu1 %v5197_v4 }
 0x61f   : > { %4708 = vmatpush3.bf16.msra.mxu1 %v4683_v5 }
 0x620   : > { %4709 = vmatprep.subr.bf16.mxu1 %v5197_v4 }
 0x623   : > { %4711 = vmatpush3.bf16.msra.mxu1 %v4686_v6 }
 0x624   : > { %4712 = vmatprep.subr.bf16.mxu1 %v5197_v4 }
 0x627   : > { %4714 = vmatpush3.bf16.msra.mxu1 %v4689_v7 }
 0x628   : > { %4715 = vmatprep.subr.bf16.mxu1 %v5197_v4 }
 0x62b   : > { %4717 = vmatpush3.bf16.msra.mxu1 %v4692_v8 }
 0x62c   : > { %4718 = vmatprep.subr.bf16.mxu1 %v5197_v4 }
 0x62f   : > { %4720 = vmatpush3.bf16.msra.mxu1 %v4695_v9 }
 0x6e5   : > { %v1840_v13 = vpop.f32.mrb[0].mxu1 }
 0x6e6   : > { %v4315_v14 = vpop.f32.mrb[1].mxu1  ;;  %4355 = vmatmul.mubr.f32.vlgmr.msra.gmra.mrb[6].mxu1 %v1840_v13 }
 0x6e7   : > { %4357 = vmatprep.mubr.msk.f32.mxu1 %vm5198_vm4, %v5199_v63  ;;  %v3630_v14 = vld [vmem:[%s6049_s2 + $0x88] sm:$0xff] }
 0x6e9   : > { %v1845_v15 = vpop.f32.mrb[2].mxu1 }
 0x6ea   : > { %v4318_v16 = vpop.f32.mrb[3].mxu1  ;;  %4358 = vmatmul.mubr.f32.gmra.mrb[8].mxu1 %v1845_v15  ;;  %v4721_v41 = vpack.c.bf16 %v1845_v15, %v1840_v13  ;;  %v3631_v15 = vld [vmem:[%s6049_s2 + $0x90] sm:$0xff] }
 0x6eb   : > { %4360 = vmatprep.mubr.msk.f32.mxu1 %vm5198_vm4, %v5199_v63  ;;  %v3635_v16 = vld [vmem:[%s6049_s2 + $0xb0] sm:$0xff] }
 0x6ec   : > { %4722 = vmatprep.subr.bf16.mxu0 %v4721_v41 }
 0x6ed   : > { %4724 = vmatpush3.bf16.msra.mxu0 %v4721_v41  ;;  %v1850_v43 = vpop.f32.mrb[4].mxu1  ;;  %v3636_v41 = vld [vmem:[%s6049_s2 + $0xb8] sm:$0xff] }
 0x6ee   : > { %4361 = vmatmul.mubr.f32.gmra.mrb[10].mxu1 %v1850_v43  ;;  %v4321_v44 = vpop.f32.mrb[5].mxu1  ;;  %4367 = vmatprep.subr.mxu0 %v1850_v43 }
 0x6ef   : > { %v2375_v44 = vpop.permute.xlu1 %2374 }
 0x6f1   : > { %4368 = vmatpush3.msra.mxu0 %v1850_v43  ;;  %v2365_v43 = vpop.permute.xlu0 %2364 }
 0x6f2   : > { %4370 = vmatmul.mubr.msk.f32.vlgmr.msra.gmra.mrb[0].mxu0 %vm1957_vm5, %v3606_v46  ;;  %4726 = vmatprep.subr.bf16.mxu0 %v4725_v45 }
 0x6f3   : > { %4372 = vmatprep.mubr.msk.f32.mxu0 %vm1957_vm5, %v3607_v47  ;;  %4728 = vmatpush3.bf16.msra.mxu0 %v4725_v45  ;;  %v2380_v47 = vpop.permute.xlu1 %2379 }
 0x6f4   : > { %4385 = vmatprep.subr.mxu0 %v5713_v11 }
 0x6f5   : > { %v2370_v45 = vpop.permute.xlu0 %2369 }
 0x6f6   : > { %4373 = vmatmul.mubr.msk.f32.gmra.mrb[2].mxu0 %vm1957_vm5, %v3608_v48 }
 0x6f7   : > { %4375 = vmatprep.mubr.msk.f32.mxu0 %vm1957_vm5, %v3609_v49  ;;  %4386 = vmatpush3.msra.mxu0 %v5713_v11 }
 0x6fa   : > { %4376 = vmatmul.mubr.msk.f32.gmra.mrb[4].mxu0 %vm1957_vm5, %v3610_v50 }
 0x6fb   : > { %4378 = vmatprep.mubr.msk.f32.mxu0 %vm1957_vm5, %v3611_v51 }
 0x6fe   : > { %4379 = vmatmul.mubr.msk.f32.gmra.mrb[6].mxu0 %vm1957_vm5, %v3612_v54 }
 0x6ff   : > { %4387 = vmatprep.mubr.msk.f32.mxu0 %vm1957_vm5, %v1940_v55 }
 0x702   : > { %4388 = vmatmul.mubr.msk.f32.vlgmr.msra.gmra.mrb[0].mxu0 %vm1957_vm5, %v1941_v57 }
 0x703   : > { %4390 = vmatprep.mubr.msk.f32.mxu0 %vm1957_vm5, %v1942_v42 }
 0x706   : > { %4391 = vmatmul.mubr.msk.f32.gmra.mrb[2].mxu0 %vm1957_vm5, %v1943_v52 }
 0x707   : > { %4393 = vmatprep.mubr.msk.f32.mxu0 %vm1957_vm5, %v1944_v53  ;;  %v2390_v53 = vpop.permute.xlu1 %2389 }
 0x70a   : > { %4394 = vmatmul.mubr.msk.f32.gmra.mrb[4].mxu0 %vm1957_vm5, %v1945_v58 }
 0x70b   : > { %4396 = vmatprep.mubr.msk.f32.mxu0 %vm1957_vm5, %v1946_v59  ;;  %v2385_v59 = vpop.permute.xlu0 %2384 }
 0x70e   : > { %4397 = vmatmul.mubr.msk.f32.gmra.mrb[6].mxu0 %vm1957_vm5, %v1947_v60 }
 0x70f   : > { %4405 = vmatprep.mubr.msk.f32.mxu0 %vm1957_vm5, %v3629_v61 }
 0x7b9   : > { %v1920_v1 = vpop.f32.mrb[6].mxu1 }
 0x7ba   : > { %v4356_v2 = vpop.f32.mrb[7].mxu1  ;;  %v1934_v4 = vmul.f32 2.0, %v1920_v1 }
 0x7bc   : > { %v1937_v5 = vsub.f32 %v1934_v4, %v5690_v3  ;;  %v3632_v3 = vld [vmem:[%s6049_s2 + $0x98] sm:$0xff] }
 0x7bd   : > { %v1925_v56 = vpop.f32.mrb[8].mxu1 }
 0x7be   : > { %v1935_v63 = vmul.f32 2.0, %v1925_v56  ;;  %v4359_v0 = vpop.f32.mrb[9].mxu1 }
 0x7c0   : > { %v1938_v6 = vsub.f32 %v1935_v63, %v5709_v10  ;;  %v3633_v10 = vld [vmem:[%s6049_s2 + $0xa0] sm:$0xff]  ;;  %v2400_v63 = vpop.permute.xlu1 %2399 }
 0x7c1   : > { %v1930_v7 = vpop.f32.mrb[10].mxu1 }
 0x7c2   : > { %v1936_v8 = vmul.f32 2.0, %v1930_v7  ;;  %v4729_v9 = vpack.c.bf16 %v1938_v6, %v1937_v5  ;;  %v4362_v12 = vpop.f32.mrb[11].mxu1  ;;  %v2395_v5 = vpop.permute.xlu0 %2394 }
 0x7c4   : > { %v1939_v13 = vsub.f32 %v1936_v8, %v5713_v11  ;;  %4730 = vmatprep.subr.bf16.mxu0 %v4729_v9  ;;  %v3634_v11 = vld [vmem:[%s6049_s2 + $0xa8] sm:$0xff] }
 0x7c5   : > { %4732 = vmatpush3.bf16.msra.mxu0 %v4729_v9 }
 0x7c6   : > { %4403 = vmatprep.subr.mxu0 %v1939_v13 }
 0x7c9   : > { %4404 = vmatpush3.msra.mxu0 %v1939_v13 }
 0x7ca   : > { %4406 = vmatmul.mubr.msk.f32.vlgmr.msra.gmra.mrb[0].mxu0 %vm1957_vm5, %v3630_v14 }
 0x7cb   : > { %4408 = vmatprep.mubr.msk.f32.mxu0 %vm1957_vm5, %v3631_v15 }
 0x7ce   : > { %4409 = vmatmul.mubr.msk.f32.gmra.mrb[2].mxu0 %vm1957_vm5, %v3632_v3 }
 0x7cf   : > { %4411 = vmatprep.mubr.msk.f32.mxu0 %vm1957_vm5, %v3633_v10 }
 0x7d2   : > { %4412 = vmatmul.mubr.msk.f32.gmra.mrb[4].mxu0 %vm1957_vm5, %v3634_v11 }
 0x7d3   : > { %4414 = vmatprep.mubr.msk.f32.mxu0 %vm1957_vm5, %v3635_v16 }
 0x7d6   : > { %4415 = vmatmul.mubr.msk.f32.gmra.mrb[6].mxu0 %vm1957_vm5, %v3636_v41 }
 0x89d   : > { %v4407_v46 = vpop.f32.mrb[0].mxu0 }
 0x89e   : > { %v2403_v48 = vadd.f32 %v4407_v46, %v2370_v45  ;;  %v2315_v49 = vpop.f32.mrb[1].mxu0 }
 0x89f   : > { %v2402_v50 = vadd.f32 %v2365_v43, %v2315_v49 }
 0x8a0   : > { %v3646_v51 = vmul.f32 -1.442695, %v2403_v48  ;;  %v2449_v48 = vld [vmem:[#allocation4 + $0x8] sm:$0xff] }
 0x8a1   : > { %v3645_v54 = vmul.f32 -1.442695, %v2402_v50  ;;  %v4410_v55 = vpop.f32.mrb[2].mxu0  ;;  %v2448_v50 = vld [vmem:[#allocation4] sm:$0xff] }
 0x8a2   : > { %5032 = vpow2.f32 %v3646_v51  ;;  %v2405_v57 = vadd.f32 %v4410_v55, %v2380_v47  ;;  %v2325_v42 = vpop.f32.mrb[3].mxu0 }
 0x8a3   : > { %5034 = vpow2.f32 %v3645_v54  ;;  %v2404_v52 = vadd.f32 %v2375_v44, %v2325_v42 }
 0x8a4   : > { %v3648_v58 = vmul.f32 -1.442695, %v2405_v57 }
 0x8a5   : > { %v3647_v60 = vmul.f32 -1.442695, %v2404_v52  ;;  %v4413_v61 = vpop.f32.mrb[4].mxu0 }
 0x8a6   : > { %5036 = vpow2.f32 %v3648_v58  ;;  %v2407_v62 = vadd.f32 %v4413_v61, %v2390_v53  ;;  %v2335_v1 = vpop.f32.mrb[5].mxu0 }
 0x8a7   : > { %5038 = vpow2.f32 %v3647_v60  ;;  %v2406_v2 = vadd.f32 %v2385_v59, %v2335_v1 }
 0x8a8   : > { %v3650_v4 = vmul.f32 -1.442695, %v2407_v62  ;;  %v2468_v62 = vld [vmem:[#allocation5 + $0x8] sm:$0xff] }
 0x8a9   : > { %v3649_v56 = vmul.f32 -1.442695, %v2406_v2  ;;  %v4416_v0 = vpop.f32.mrb[6].mxu0 }
 0x8aa   : > { %v2409_v6 = vadd.f32 %v4416_v0, %v2400_v63  ;;  %v2345_v7 = vpop.f32.mrb[7].mxu0  ;;  %5040 = vpow2.f32 %v3650_v4  ;;  %v2467_v4 = vld [vmem:[#allocation5] sm:$0xff] }
 0x8ab   : > { %v2408_v8 = vadd.f32 %v2395_v5, %v2345_v7  ;;  %5042 = vpow2.f32 %v3649_v56  ;;  %v2474_v56 = vld [vmem:[#allocation5 + $0x18] sm:$0xff] }
 0x8ac   : > { %v5033_v9 = vpop.eup %5032  ;;  %5044 = vtanh.f32 %v2409_v6  ;;  %v2473_v6 = vld [vmem:[#allocation5 + $0x10] sm:$0xff] }
 0x8ad   : > { %v5035_v12 = vpop.eup %5034  ;;  %v2417_v13 = vadd.f32 1.0, %v5033_v9  ;;  %5046 = vtanh.f32 %v2408_v8 }
 0x8ae   : > { %v2416_v14 = vadd.f32 1.0, %v5035_v12 }
 0x8af   : > { %5048 = vrcp.f32 %v2417_v13 }
 0x8b0   : > { %v5037_v15 = vpop.eup %5036  ;;  %5050 = vrcp.f32 %v2416_v14 }
 0x8b1   : > { %v5039_v3 = vpop.eup %5038  ;;  %v2429_v10 = vadd.f32 1.0, %v5037_v15 }
 0x8b2   : > { %v2428_v11 = vadd.f32 1.0, %v5039_v3 }
 0x8b3   : > { %5052 = vrcp.f32 %v2429_v10 }
 0x8b4   : > { %5054 = vrcp.f32 %v2428_v11  ;;  %v5041_v16 = vpop.eup %5040 }
 0x8b5   : > { %v5043_v41 = vpop.eup %5042  ;;  %v2441_v51 = vadd.f32 1.0, %v5041_v16 }
 0x8b6   : > { %v5045_v43 = vpop.eup %5044  ;;  %v2440_v55 = vadd.f32 1.0, %v5043_v41 }
 0x8b7   : > { %v5047_v44 = vpop.eup %5046  ;;  %5056 = vrcp.f32 %v2441_v51 }
 0x8b8   : > { %5058 = vrcp.f32 %v2440_v55 }
 0x8b9   : > { %v5049_v45 = vpop.eup %5048 }
 0x8ba   : > { %v5051_v46 = vpop.eup %5050  ;;  %v2453_v47 = vmul.f32 %v5049_v45, %v5045_v43 }
 0x8bb   : > { %v2452_v49 = vmul.f32 %v5051_v46, %v5047_v44 }
 0x8bd   : > { %v5053_v54 = vpop.eup %5052 }
 0x8be   : > { %v5055_v57 = vpop.eup %5054  ;;  %v2451_v42 = vmul.f32 %v5053_v54, %v2449_v48 }
 0x8bf   : > { %v2450_v52 = vmul.f32 %v5055_v57, %v2448_v50 }
 0x8c0   : > { %v2455_v53 = vadd.f32 %v2453_v47, %v2451_v42 }
 0x8c1   : > { %v2454_v58 = vadd.f32 %v2452_v49, %v2450_v52  ;;  %v5057_v59 = vpop.eup %5056 }
 0x8c2   : > { %5060 = vtanh.f32 %v2455_v53  ;;  %2461 = vst [vmem:[#allocation4 + $0x8] sm:$0xff] %v2455_v53  ;;  %v5059_v60 = vpop.eup %5058 }
 0x8c3   : > { %5062 = vtanh.f32 %v2454_v58  ;;  %2460 = vst [vmem:[#allocation4] sm:$0xff] %v2454_v58 }
 0x8cc   : > { %v5061_v61 = vpop.eup %5060 }
 0x8cd   : > { %v5063_v1 = vpop.eup %5062  ;;  %v2459_v2 = vmul.f32 %v5061_v61, %v5057_v59 }
 0x8ce   : > { %v2458_v63 = vmul.f32 %v5063_v1, %v5059_v60 }
 0x8cf   : > { %2463 = vst [vmem:[#allocation3 + $0x10] sm:$0xff] %v2459_v2  ;;  %3652 = vst [vmem:[%s5271_s10 + $0x30] sm:$0xff] %v2459_v2  ;;  %v2470_v0 = vadd.f32 %v2468_v62, %v2459_v2  ;;  %v2476_v5 = vmul.f32 %v2459_v2, %v2459_v2 }
 0x8d0   : > { %2462 = vst [vmem:[#allocation3 + $0x8] sm:$0xff] %v2458_v63  ;;  %3651 = vst [vmem:[%s5271_s10 + $0x10] sm:$0xff] %v2458_v63  ;;  %v2469_v7 = vadd.f32 %v2467_v4, %v2458_v63  ;;  %v2475_v8 = vmul.f32 %v2458_v63, %v2458_v63 }
 0x8d1   : > { %2472 = vst [vmem:[#allocation5 + $0x8] sm:$0xff] %v2470_v0  ;;  %v2478_v9 = vadd.f32 %v2476_v5, %v2474_v56 }
 0x8d2   : > { %2471 = vst [vmem:[#allocation5] sm:$0xff] %v2469_v7  ;;  %v2477_v12 = vadd.f32 %v2475_v8, %v2473_v6 }
 0x8d3   : > { %2480 = vst [vmem:[#allocation5 + $0x18] sm:$0xff] %v2478_v9 }
 0x8d4   : > { %2479 = vst [vmem:[#allocation5 + $0x10] sm:$0xff] %v2477_v12 }
 0x8d5 PF: > { %s2481_s18 = sadd.s32 3, %s5262_s28 }
 0x8d6   : > { %p3653_p12 = scmp.ge.s32.totalorder %s2481_s18, 6 }
 0x8d7   : > { %v4734_v13 = vpack.c.bf16 (!%p3653_p12), %v5324_v18, %v5322_v17  ;;  %v5836_v14 = vld [vmem:[%s5269_s9 + $0x18] sm:$0xff] (!%p3653_p12)  ;;  %v5201_v15 = vmov (!%p3653_p12), 0.0|0.0   ;;  %v4737_v3 = vpack.c.bf16 (!%p3653_p12), %v5328_v20, %v5326_v19  ;;  %vm5202_vm6 = vmmov (!%p3653_p12), 0   ;;  %v3656_v16 = vld [vmem:[%s6049_s2 + $0x48] sm:$0xff] (!%p3653_p12)  ;;  %v3657_v41 = vld [vmem:[%s6049_s2 + $0x50] sm:$0xff] (!%p3653_p12) }
 0x8d8   : > { %2485 = sbr.rel (%p3653_p12) target bundleno = 3003 (0xbbb), region = 86  ;;  %4733 = vmatprep.subr.bf16.mxu1 (!%p3653_p12), %v5201_v15  ;;  %v5203_v10 = vmov (!%p3653_p12), 0.0   ;;  %v4740_v11 = vpack.c.bf16 (!%p3653_p12), %v5332_v22, %v5330_v21  ;;  %v4743_v17 = vpack.c.bf16 (!%p3653_p12), %v5336_v24, %v5334_v23  ;;  %v4746_v18 = vpack.c.bf16 (!%p3653_p12), %v5340_v26, %v5338_v25  ;;  %v5855_v22 = vld [vmem:[#allocation3 + $0x8] sm:$0xff] (!%p3653_p12)  ;;  %v5859_v23 = vld [vmem:[#allocation3 + $0x10] sm:$0xff] (!%p3653_p12)  ;;  %v3655_v24 = vld [vmem:[%s6049_s2 + $0x40] sm:$0xff] (!%p3653_p12) }
 0x8d9   : > { %4735 = vmatpush3.bf16.msra.mxu1 (!%p3653_p12), %v4734_v13  ;;  %4449 = vmatprep.mubr.msk.f32.mxu1 (!%p3653_p12), %vm5202_vm6, %v5203_v10  ;;  %v4749_v19 = vpack.c.bf16 (!%p3653_p12), %v5344_v28, %v5342_v27  ;;  %v4752_v20 = vpack.c.bf16 (!%p3653_p12), %v5348_v30, %v5346_v29  ;;  %v4755_v21 = vpack.c.bf16 (!%p3653_p12), %v5352_v32, %v5350_v31  ;;  %vm2675_vm7 = vcmask (!%p3653_p12), 195584   ;;  %v3658_v43 = vld [vmem:[%s6049_s2 + $0x58] sm:$0xff] (!%p3653_p12)  ;;  %v3659_v44 = vld [vmem:[%s6049_s2 + $0x60] sm:$0xff] (!%p3653_p12)  ;;  %v3660_v45 = vld [vmem:[%s6049_s2 + $0x68] sm:$0xff] (!%p3653_p12) }
 0x8da   : > { %4736 = vmatprep.subr.bf16.mxu1 (!%p3653_p12), %v5201_v15  ;;  %4505 = vmatprep.mubr.msk.f32.mxu0 (!%p3653_p12), %vm2675_vm7, %v3655_v24  ;;  %v4785_v32 = vpack.c.bf16 (!%p3653_p12), %v5855_v22, %v5836_v14  ;;  %v3661_v46 = vld [vmem:[%s6049_s2 + $0x70] sm:$0xff] (!%p3653_p12)  ;;  %v3662_v47 = vld [vmem:[%s6049_s2 + $0x78] sm:$0xff] (!%p3653_p12)  ;;  %v2658_v48 = vld [vmem:[%s6049_s2] sm:$0xff] (!%p3653_p12)  ;;  %v5204_v53 = vmov (!%p3653_p12), 0  }
 0x8db   : > { %v2659_v49 = vld [vmem:[%s6049_s2 + $0x8] sm:$0xff] (!%p3653_p12)  ;;  %v2660_v50 = vld [vmem:[%s6049_s2 + $0x10] sm:$0xff] (!%p3653_p12)  ;;  %v2661_v51 = vld [vmem:[%s6049_s2 + $0x18] sm:$0xff] (!%p3653_p12)  ;;  %5064 = vset.pattern.permute.xlu0 (!%p3653_p12), %v5204_v53  ;;  %5065 = vset.pattern.permute.xlu1 (!%p3653_p12), %v5204_v53 }
 0x8dc   : > { %v2662_v54 = vld [vmem:[%s6049_s2 + $0x20] sm:$0xff] (!%p3653_p12)  ;;  %v2663_v55 = vld [vmem:[%s6049_s2 + $0x28] sm:$0xff] (!%p3653_p12)  ;;  %v2664_v57 = vld [vmem:[%s6049_s2 + $0x30] sm:$0xff] (!%p3653_p12)  ;;  %3082 = vperm.xlu0 (!%p3653_p12), %5064, %v5357_v33   ;;  %3092 = vperm.xlu1 (!%p3653_p12), %5065, %v5367_v35  }
 0x8dd   : > { %4738 = vmatpush3.bf16.msra.mxu1 (!%p3653_p12), %v4737_v3  ;;  %v2665_v42 = vld [vmem:[%s6049_s2 + $0x38] sm:$0xff] (!%p3653_p12)  ;;  %v3679_v52 = vld [vmem:[%s6049_s2 + $0x80] sm:$0xff] (!%p3653_p12)  ;;  %v3684_v63 = vld [vmem:[%s6049_s2 + $0xa8] sm:$0xff] (!%p3653_p12) }
 0x8de   : > { %4739 = vmatprep.subr.bf16.mxu1 (!%p3653_p12), %v5201_v15  ;;  %v3682_v4 = vld [vmem:[%s6049_s2 + $0x98] sm:$0xff] (!%p3653_p12)  ;;  %v3683_v56 = vld [vmem:[%s6049_s2 + $0xa0] sm:$0xff] (!%p3653_p12)  ;;  %v3685_v0 = vld [vmem:[%s6049_s2 + $0xb0] sm:$0xff] (!%p3653_p12) }
 0x8df   : > { %v3686_v5 = vld [vmem:[%s6049_s2 + $0xb8] sm:$0xff] }
 0x8e0   : > { %3087 = vperm.xlu0 %5064, %v5362_v34   ;;  %3097 = vperm.xlu1 %5065, %v5372_v36  }
 0x8e1   : > { %4741 = vmatpush3.bf16.msra.mxu1 %v4740_v11 }
 0x8e2   : > { %4742 = vmatprep.subr.bf16.mxu1 %v5201_v15 }
 0x8e4   : > { %3107 = vperm.xlu1 %5065, %v5382_v38   ;;  %3102 = vperm.xlu0 %5064, %v5377_v37  }
 0x8e5   : > { %4744 = vmatpush3.bf16.msra.mxu1 %v4743_v17 }
 0x8e6   : > { %4745 = vmatprep.subr.bf16.mxu1 %v5201_v15 }
 0x8e8   : > { %3117 = vperm.xlu1 %5065, %v5392_v40   ;;  %3112 = vperm.xlu0 %5064, %v5387_v39   ;;  %v3680_v39 = vld [vmem:[%s6049_s2 + $0x88] sm:$0xff]  ;;  %v3681_v40 = vld [vmem:[%s6049_s2 + $0x90] sm:$0xff] }
 0x8e9   : > { %4747 = vmatpush3.bf16.msra.mxu1 %v4746_v18 }
 0x8ea   : > { %4748 = vmatprep.subr.bf16.mxu1 %v5201_v15 }
 0x8ed   : > { %4750 = vmatpush3.bf16.msra.mxu1 %v4749_v19 }
 0x8ee   : > { %4751 = vmatprep.subr.bf16.mxu1 %v5201_v15 }
 0x8f1   : > { %4753 = vmatpush3.bf16.msra.mxu1 %v4752_v20 }
 0x8f2   : > { %4754 = vmatprep.subr.bf16.mxu1 %v5201_v15 }
 0x8f5   : > { %4756 = vmatpush3.bf16.msra.mxu1 %v4755_v21 }
 0x8f6   : > { %4757 = vmatprep.subr.bf16.mxu1 %v5201_v15 }
 0x8f8   : > { %4450 = vmatmul.mubr.f32.vlgmr.msra.gmra.mrb[0].mxu1 %v5836_v14 }
 0x8f9   : > { %4452 = vmatprep.mubr.msk.f32.mxu1 %vm5202_vm6, %v5203_v10  ;;  %4759 = vmatpush3.bf16.msra.mxu1 %v4734_v13 }
 0x8fa   : > { %4760 = vmatprep.subr.bf16.mxu1 %v5201_v15 }
 0x8fc   : > { %4453 = vmatmul.mubr.f32.gmra.mrb[2].mxu1 %v5855_v22 }
 0x8fd   : > { %4455 = vmatprep.mubr.msk.f32.mxu1 %vm5202_vm6, %v5203_v10  ;;  %4762 = vmatpush3.bf16.msra.mxu1 %v4737_v3 }
 0x8fe   : > { %4763 = vmatprep.subr.bf16.mxu1 %v5201_v15 }
 0x900   : > { %4456 = vmatmul.mubr.f32.gmra.mrb[4].mxu1 %v5859_v23 }
 0x901   : > { %4765 = vmatpush3.bf16.msra.mxu1 %v4740_v11  ;;  %4490 = vmatprep.mubr.msk.f32.mxu1 %vm5202_vm6, %v5203_v10 }
 0x902   : > { %4766 = vmatprep.subr.bf16.mxu1 %v5201_v15 }
 0x905   : > { %4768 = vmatpush3.bf16.msra.mxu1 %v4743_v17 }
 0x906   : > { %4769 = vmatprep.subr.bf16.mxu1 %v5201_v15 }
 0x909   : > { %4771 = vmatpush3.bf16.msra.mxu1 %v4746_v18 }
 0x90a   : > { %4772 = vmatprep.subr.bf16.mxu1 %v5201_v15 }
 0x90d   : > { %4774 = vmatpush3.bf16.msra.mxu1 %v4749_v19 }
 0x90e   : > { %4775 = vmatprep.subr.bf16.mxu1 %v5201_v15 }
 0x911   : > { %4777 = vmatpush3.bf16.msra.mxu1 %v4752_v20 }
 0x912   : > { %4778 = vmatprep.subr.bf16.mxu1 %v5201_v15 }
 0x915   : > { %4780 = vmatpush3.bf16.msra.mxu1 %v4755_v21 }
 0x95b   : > { %v3083_v6 = vpop.permute.xlu0 %3082  ;;  %v3093_v7 = vpop.permute.xlu1 %3092 }
 0x95f   : > { %v3088_v8 = vpop.permute.xlu0 %3087  ;;  %v3098_v12 = vpop.permute.xlu1 %3097 }
 0x963   : > { %v3108_v20 = vpop.permute.xlu1 %3107 }
 0x9cb   : > { %v2558_v25 = vpop.f32.mrb[0].mxu1 }
 0x9cc   : > { %v4451_v26 = vpop.f32.mrb[1].mxu1  ;;  %4491 = vmatmul.mubr.f32.vlgmr.msra.gmra.mrb[6].mxu1 %v2558_v25 }
 0x9cd   : > { %4493 = vmatprep.mubr.msk.f32.mxu1 %vm5202_vm6, %v5203_v10 }
 0x9cf   : > { %v2563_v27 = vpop.f32.mrb[2].mxu1 }
 0x9d0   : > { %v4454_v28 = vpop.f32.mrb[3].mxu1  ;;  %4494 = vmatmul.mubr.f32.gmra.mrb[8].mxu1 %v2563_v27  ;;  %v4781_v29 = vpack.c.bf16 %v2563_v27, %v2558_v25 }
 0x9d1   : > { %4496 = vmatprep.mubr.msk.f32.mxu1 %vm5202_vm6, %v5203_v10 }
 0x9d2   : > { %4782 = vmatprep.subr.bf16.mxu0 %v4781_v29 }
 0x9d3   : > { %4784 = vmatpush3.bf16.msra.mxu0 %v4781_v29  ;;  %v2568_v30 = vpop.f32.mrb[4].mxu1 }
 0x9d4   : > { %4497 = vmatmul.mubr.f32.gmra.mrb[10].mxu1 %v2568_v30  ;;  %v4457_v31 = vpop.f32.mrb[5].mxu1  ;;  %4503 = vmatprep.subr.mxu0 %v2568_v30 }
 0x9d7   : > { %4504 = vmatpush3.msra.mxu0 %v2568_v30  ;;  %v3118_v30 = vpop.permute.xlu1 %3117 }
 0x9d8   : > { %4506 = vmatmul.mubr.msk.f32.vlgmr.msra.gmra.mrb[0].mxu0 %vm2675_vm7, %v3656_v16  ;;  %4786 = vmatprep.subr.bf16.mxu0 %v4785_v32 }
 0x9d9   : > { %4508 = vmatprep.mubr.msk.f32.mxu0 %vm2675_vm7, %v3657_v41  ;;  %4788 = vmatpush3.bf16.msra.mxu0 %v4785_v32 }
 0x9da   : > { %4521 = vmatprep.subr.mxu0 %v5859_v23 }
 0x9dc   : > { %4509 = vmatmul.mubr.msk.f32.gmra.mrb[2].mxu0 %vm2675_vm7, %v3658_v43 }
 0x9dd   : > { %4511 = vmatprep.mubr.msk.f32.mxu0 %vm2675_vm7, %v3659_v44  ;;  %4522 = vmatpush3.msra.mxu0 %v5859_v23 }
 0x9e0   : > { %4512 = vmatmul.mubr.msk.f32.gmra.mrb[4].mxu0 %vm2675_vm7, %v3660_v45 }
 0x9e1   : > { %4514 = vmatprep.mubr.msk.f32.mxu0 %vm2675_vm7, %v3661_v46 }
 0x9e4   : > { %4515 = vmatmul.mubr.msk.f32.gmra.mrb[6].mxu0 %vm2675_vm7, %v3662_v47 }
 0x9e5   : > { %4523 = vmatprep.mubr.msk.f32.mxu0 %vm2675_vm7, %v2658_v48 }
 0x9e8   : > { %4524 = vmatmul.mubr.msk.f32.vlgmr.msra.gmra.mrb[0].mxu0 %vm2675_vm7, %v2659_v49 }
 0x9e9   : > { %4526 = vmatprep.mubr.msk.f32.mxu0 %vm2675_vm7, %v2660_v50 }
 0x9ec   : > { %4527 = vmatmul.mubr.msk.f32.gmra.mrb[2].mxu0 %vm2675_vm7, %v2661_v51 }
 0x9ed   : > { %4529 = vmatprep.mubr.msk.f32.mxu0 %vm2675_vm7, %v2662_v54 }
 0x9f0   : > { %4530 = vmatmul.mubr.msk.f32.gmra.mrb[4].mxu0 %vm2675_vm7, %v2663_v55 }
 0x9f1   : > { %4532 = vmatprep.mubr.msk.f32.mxu0 %vm2675_vm7, %v2664_v57 }
 0x9f4   : > { %4533 = vmatmul.mubr.msk.f32.gmra.mrb[6].mxu0 %vm2675_vm7, %v2665_v42 }
 0x9f5   : > { %4541 = vmatprep.mubr.msk.f32.mxu0 %vm2675_vm7, %v3679_v52 }
 0xa9f   : > { %v2638_v58 = vpop.f32.mrb[6].mxu1 }
 0xaa0   : > { %v4492_v59 = vpop.f32.mrb[7].mxu1  ;;  %v2652_v60 = vmul.f32 2.0, %v2638_v58 }
 0xaa1   : > { %v3167_v59 = vld [vmem:[#allocation4 + $0x8] sm:$0xff] }
 0xaa2   : > { %v2655_v35 = vsub.f32 %v2652_v60, %v5836_v14 }
 0xaa3   : > { %v2643_v61 = vpop.f32.mrb[8].mxu1 }
 0xaa4   : > { %v2653_v62 = vmul.f32 2.0, %v2643_v61  ;;  %v4495_v33 = vpop.f32.mrb[9].mxu1  ;;  %v3166_v61 = vld [vmem:[#allocation4] sm:$0xff] }
 0xaa6   : > { %v2656_v34 = vsub.f32 %v2653_v62, %v5855_v22  ;;  %v3103_v22 = vpop.permute.xlu0 %3102 }
 0xaa7   : > { %v2648_v1 = vpop.f32.mrb[10].mxu1 }
 0xaa8   : > { %v2654_v36 = vmul.f32 2.0, %v2648_v1  ;;  %v4789_v2 = vpack.c.bf16 %v2656_v34, %v2655_v35  ;;  %v4498_v38 = vpop.f32.mrb[11].mxu1 }
 0xaaa   : > { %v2657_v37 = vsub.f32 %v2654_v36, %v5859_v23  ;;  %4790 = vmatprep.subr.bf16.mxu0 %v4789_v2  ;;  %v3113_v32 = vpop.permute.xlu0 %3112 }
 0xaab   : > { %4792 = vmatpush3.bf16.msra.mxu0 %v4789_v2 }
 0xaac   : > { %4539 = vmatprep.subr.mxu0 %v2657_v37 }
 0xaaf   : > { %4540 = vmatpush3.msra.mxu0 %v2657_v37 }
 0xab0   : > { %4542 = vmatmul.mubr.msk.f32.vlgmr.msra.gmra.mrb[0].mxu0 %vm2675_vm7, %v3680_v39 }
 0xab1   : > { %4544 = vmatprep.mubr.msk.f32.mxu0 %vm2675_vm7, %v3681_v40 }
 0xab4   : > { %4545 = vmatmul.mubr.msk.f32.gmra.mrb[2].mxu0 %vm2675_vm7, %v3682_v4  ;;  %v3186_v4 = vld [vmem:[#allocation5 + $0x8] sm:$0xff] }
 0xab5   : > { %4547 = vmatprep.mubr.msk.f32.mxu0 %vm2675_vm7, %v3683_v56 }
 0xab8   : > { %4548 = vmatmul.mubr.msk.f32.gmra.mrb[4].mxu0 %vm2675_vm7, %v3684_v63 }
 0xab9   : > { %4550 = vmatprep.mubr.msk.f32.mxu0 %vm2675_vm7, %v3685_v0  ;;  %v3185_v0 = vld [vmem:[#allocation5] sm:$0xff] }
 0xabc   : > { %4551 = vmatmul.mubr.msk.f32.gmra.mrb[6].mxu0 %vm2675_vm7, %v3686_v5  ;;  %v3192_v5 = vld [vmem:[#allocation5 + $0x18] sm:$0xff] }
 0xb83   : > { %v4543_v9 = vpop.f32.mrb[0].mxu0 }
 0xb84   : > { %v3121_v13 = vadd.f32 %v4543_v9, %v3088_v8  ;;  %v3033_v14 = vpop.f32.mrb[1].mxu0  ;;  %v3191_v9 = vld [vmem:[#allocation5 + $0x10] sm:$0xff] }
 0xb85   : > { %v3120_v15 = vadd.f32 %v3083_v6, %v3033_v14 }
 0xb86   : > { %v3696_v3 = vmul.f32 -1.442695, %v3121_v13 }
 0xb87   : > { %v3695_v10 = vmul.f32 -1.442695, %v3120_v15  ;;  %v4546_v11 = vpop.f32.mrb[2].mxu0 }
 0xb88   : > { %5066 = vpow2.f32 %v3696_v3  ;;  %v3123_v17 = vadd.f32 %v4546_v11, %v3098_v12  ;;  %v3043_v18 = vpop.f32.mrb[3].mxu0 }
 0xb89   : > { %5068 = vpow2.f32 %v3695_v10  ;;  %v3122_v19 = vadd.f32 %v3093_v7, %v3043_v18 }
 0xb8a   : > { %v3698_v21 = vmul.f32 -1.442695, %v3123_v17 }
 0xb8b   : > { %v3697_v23 = vmul.f32 -1.442695, %v3122_v19  ;;  %v4549_v24 = vpop.f32.mrb[4].mxu0 }
 0xb8c   : > { %5070 = vpow2.f32 %v3698_v21  ;;  %v3125_v25 = vadd.f32 %v4549_v24, %v3108_v20  ;;  %v3053_v26 = vpop.f32.mrb[5].mxu0 }
 0xb8d   : > { %5072 = vpow2.f32 %v3697_v23  ;;  %v3124_v27 = vadd.f32 %v3103_v22, %v3053_v26 }
 0xb8e   : > { %v3700_v28 = vmul.f32 -1.442695, %v3125_v25 }
 0xb8f   : > { %v3699_v29 = vmul.f32 -1.442695, %v3124_v27  ;;  %v4552_v31 = vpop.f32.mrb[6].mxu0 }
 0xb90   : > { %v3127_v16 = vadd.f32 %v4552_v31, %v3118_v30  ;;  %v3063_v41 = vpop.f32.mrb[7].mxu0  ;;  %5074 = vpow2.f32 %v3700_v28 }
 0xb91   : > { %v3126_v43 = vadd.f32 %v3113_v32, %v3063_v41  ;;  %5076 = vpow2.f32 %v3699_v29 }
 0xb92   : > { %v5067_v44 = vpop.eup %5066  ;;  %5078 = vtanh.f32 %v3127_v16 }
 0xb93   : > { %v5069_v45 = vpop.eup %5068  ;;  %v3135_v46 = vadd.f32 1.0, %v5067_v44  ;;  %5080 = vtanh.f32 %v3126_v43 }
 0xb94   : > { %v3134_v47 = vadd.f32 1.0, %v5069_v45 }
 0xb95   : > { %5082 = vrcp.f32 %v3135_v46 }
 0xb96   : > { %v5071_v48 = vpop.eup %5070  ;;  %5084 = vrcp.f32 %v3134_v47 }
 0xb97   : > { %v5073_v49 = vpop.eup %5072  ;;  %v3147_v50 = vadd.f32 1.0, %v5071_v48 }
 0xb98   : > { %v3146_v51 = vadd.f32 1.0, %v5073_v49 }
 0xb99   : > { %5086 = vrcp.f32 %v3147_v50 }
 0xb9a   : > { %5088 = vrcp.f32 %v3146_v51  ;;  %v5075_v54 = vpop.eup %5074 }
 0xb9b   : > { %v5077_v55 = vpop.eup %5076  ;;  %v3159_v62 = vadd.f32 1.0, %v5075_v54 }
 0xb9c   : > { %v5079_v57 = vpop.eup %5078  ;;  %v3158_v35 = vadd.f32 1.0, %v5077_v55 }
 0xb9d   : > { %v5081_v42 = vpop.eup %5080  ;;  %5090 = vrcp.f32 %v3159_v62 }
 0xb9e   : > { %5092 = vrcp.f32 %v3158_v35 }
 0xb9f   : > { %v5083_v52 = vpop.eup %5082 }
 0xba0   : > { %v5085_v53 = vpop.eup %5084  ;;  %v3171_v58 = vmul.f32 %v5083_v52, %v5079_v57 }
 0xba1   : > { %v3170_v60 = vmul.f32 %v5085_v53, %v5081_v42 }
 0xba3   : > { %v5087_v33 = vpop.eup %5086 }
 0xba4   : > { %v5089_v34 = vpop.eup %5088  ;;  %v3169_v1 = vmul.f32 %v5087_v33, %v3167_v59 }
 0xba5   : > { %v3168_v36 = vmul.f32 %v5089_v34, %v3166_v61 }
 0xba6   : > { %v3173_v2 = vadd.f32 %v3171_v58, %v3169_v1 }
 0xba7   : > { %v3172_v38 = vadd.f32 %v3170_v60, %v3168_v36  ;;  %v5091_v37 = vpop.eup %5090 }
 0xba8   : > { %5094 = vtanh.f32 %v3173_v2  ;;  %3179 = vst [vmem:[#allocation4 + $0x8] sm:$0xff] %v3173_v2  ;;  %v5093_v39 = vpop.eup %5092 }
 0xba9   : > { %5096 = vtanh.f32 %v3172_v38  ;;  %3178 = vst [vmem:[#allocation4] sm:$0xff] %v3172_v38 }
 0xbb2   : > { %v5095_v40 = vpop.eup %5094 }
 0xbb3   : > { %v5097_v56 = vpop.eup %5096  ;;  %v3177_v63 = vmul.f32 %v5095_v40, %v5091_v37 }
 0xbb4   : > { %v3176_v6 = vmul.f32 %v5097_v56, %v5093_v39 }
 0xbb5   : > { %3181 = vst [vmem:[#allocation3 + $0x10] sm:$0xff] %v3177_v63  ;;  %3702 = vst [vmem:[%s5271_s10 + $0x38] sm:$0xff] %v3177_v63  ;;  %v3188_v7 = vadd.f32 %v3186_v4, %v3177_v63  ;;  %v3194_v8 = vmul.f32 %v3177_v63, %v3177_v63 }
 0xbb6   : > { %3180 = vst [vmem:[#allocation3 + $0x8] sm:$0xff] %v3176_v6  ;;  %3701 = vst [vmem:[%s5271_s10 + $0x18] sm:$0xff] %v3176_v6  ;;  %v3187_v12 = vadd.f32 %v3185_v0, %v3176_v6  ;;  %v3193_v13 = vmul.f32 %v3176_v6, %v3176_v6 }
 0xbb7   : > { %3190 = vst [vmem:[#allocation5 + $0x8] sm:$0xff] %v3188_v7  ;;  %v3196_v14 = vadd.f32 %v3194_v8, %v3192_v5 }
 0xbb8   : > { %3189 = vst [vmem:[#allocation5] sm:$0xff] %v3187_v12  ;;  %v3195_v15 = vadd.f32 %v3193_v13, %v3191_v9 }
 0xbb9   : > { %3198 = vst [vmem:[#allocation5 + $0x18] sm:$0xff] %v3196_v14 }
 0xbba   : > { %3197 = vst [vmem:[#allocation5 + $0x10] sm:$0xff] %v3195_v15 }
 0xbbb PF: > { %p3703_p13 = scmp.ne.s32.totalorder %s5246_s21, 1 }
 0xbbc   : > { %v3215_v20 = vlaneseq (!%p3703_p13)  ;;  %vm3225_vm8 = vcmask (!%p3703_p13), 1041409   ;;  %vm3228_vm9 = vcmask (!%p3703_p13), 58368  }
 0xbbd   : > { %3202 = sbr.rel (%p3703_p13) target bundleno = 3160 (0xc58), region = 90 }
 0xbbe   : > { %v3204_v10 = vld [vmem:[#allocation5 + $0x8] sm:$0xff] (!%p3703_p13)  ;;  %v3216_v21 = vand.u32 (!%p3703_p13), 127, %v3215_v20  ;;  %v3218_v22 = vshrl.u32 (!%p3703_p13), %v3215_v20, 7 }
 0xbbf   : > { %v3203_v3 = vld [vmem:[#allocation5] sm:$0xff] (!%p3703_p13) }
 0xbc0   : > { %v3207_v17 = vadd.f32 (!%p3703_p13), %v3204_v10, %v3203_v3  ;;  %v3206_v18 = vld [vmem:[#allocation5 + $0x18] sm:$0xff] (!%p3703_p13)  ;;  %v3219_v24 = vsub.s32 (!%p3703_p13), %v3216_v21, %v3218_v22 }
 0xbc1   : > { %v3205_v11 = vld [vmem:[#allocation5 + $0x10] sm:$0xff] (!%p3703_p13) }
 0xbc2   : > { %3208 = vadd.xlane.f32.xlu0 (!%p3703_p13), %v3207_v17  ;;  %v3210_v19 = vadd.f32 (!%p3703_p13), %v3206_v18, %v3205_v11 }
 0xbc6   : > { %3211 = vadd.xlane.f32.xlu0 %v3210_v19 }
 0xc4f   : > { %v3209_v23 = vpop.xlane.xlu0 %3208 }
 0xc50   : > { %v3220_v26 = vrot.slane %v3209_v23, %v3219_v24 }
 0xc53   : > { %v3212_v25 = vpop.xlane.xlu0 %3211 }
 0xc54   : > { %v3224_v27 = vrot.slane %v3212_v25, %v3219_v24 }
 0xc56   : > { %v3226_v28 = vsel %vm3225_vm8, %v3224_v27, %v3220_v26 }
 0xc57   : > { %3229 = vst.msk [vmem:[%s6052_s5] sm:$0x3] %vm3228_vm9, %v3226_v28 }
 0xc58 PF: > { %3236 = sbr.rel (!%p5257_p4) target bundleno = 3216 (0xc90), region = 94  ;;  %s3238_s15 = ssub.s32 (%p5257_p4), 6, %s5262_s28 }
 0xc59   : > { %s3722_s16 = sshll.u32 (%p5257_p4), %s5246_s21, 5  ;;  %p3239_p0 = scmp.lt.s32.totalorder (%p5257_p4), %s3238_s15, 4 }
 0xc5a   : > { %s5989_s9 = scalar_lea.vmem (%p5257_p4), %s6051_s4, %s3722_s16  }
 0xc5f   : > { %s6061_s15 = smov (!%p3239_p0, %s3238_s15), 4 }
 0xc60   : > { %s3706_s20 = sshll.u32 %s6061_s15, 8 }
 0xc61   : > { %p3709_p1 = scmp.eq.s32.totalorder %s3706_s20, 0 }
 0xc62   : > { %s5995_s23 = sshrl.u32 (!%p3709_p1), %s6061_s15, 2 }
 0xc63   : > { %3247 = sbr.rel (%p3709_p1) target bundleno = 3216 (0xc90), region = 98  ;;  %p3710_p2 = scmp.le.s32.totalorder (!%p3709_p1), %s5995_s23, 0 }
 0xc6a   : > { %3453 = sbr.rel (%p3710_p2) target bundleno = 3195 (0xc7b), region = 204  ;;  %s6054_s21 = smov (!%p3710_p2), %s5989_s9 }
 0xc6b   : > { %s6055_s26 = smov (!%p3710_p2), %s5271_s10  ;;  %s6004_s28 = smov (!%p3710_p2), 0  }
 0xc6c   : > { %s6006_s24 = smov (!%p3710_p2), 0  }
 0xc71 LB: >> { %v3325_v29 = vld [vmem:[%s5162_s26] sm:$0xff]  ;;  %v3327_v30 = vld [vmem:[%s5162_s26 + $0x8] sm:$0xff]  ;;  %v3329_v31 = vld [vmem:[%s5162_s26 + $0x10] sm:$0xff]  ;;  %s3341_s27 = sadd.s32 1, %s5166_s28  ;;  %s3319_s24 = sadd.s32 1, %s5170_s24   ;;  %s5170_s24 = sphi %s6006_s24, %s3319_s24   ;;  %s5166_s28 = sphi %s6004_s28, %s6056_s28   ;;  %s5162_s26 = sphi %s6055_s26, %s3346_s26   ;;  %s5158_s21 = sphi %s6054_s21, %s3347_s21  }
 0xc72   : >> { %3326 = vst [vmem:[%s5158_s21] sm:$0xff] %v3325_v29  ;;  %3328 = vst [vmem:[%s5158_s21 + $0x8] sm:$0xff] %v3327_v30  ;;  %v3331_v32 = vld [vmem:[%s5162_s26 + $0x18] sm:$0xff]  ;;  %v3333_v16 = vld [vmem:[%s5162_s26 + $0x20] sm:$0xff]  ;;  %p3342_p3 = scmp.ge.s32.totalorder %s3341_s27, %s5995_s23  ;;  %p3318_p4 = scmp.ge.s32.totalorder %s3319_s24, %s5995_s23 }
 0xc73   : >> { %3330 = vst [vmem:[%s5158_s21 + $0x10] sm:$0xff] %v3329_v31  ;;  %v3335_v41 = vld [vmem:[%s5162_s26 + $0x28] sm:$0xff]  ;;  %3332 = vst [vmem:[%s5158_s21 + $0x18] sm:$0xff] %v3331_v32  ;;  %v3337_v43 = vld [vmem:[%s5162_s26 + $0x30] sm:$0xff] }
 0xc74   : >> { %3334 = vst [vmem:[%s5158_s21 + $0x30] sm:$0xff] %v3333_v16  ;;  %3336 = vst [vmem:[%s5158_s21 + $0x38] sm:$0xff] %v3335_v41  ;;  %v3339_v44 = vld [vmem:[%s5162_s26 + $0x38] sm:$0xff]  ;;  %s6063_s27 = smov (%p3342_p3, %s3341_s27), 0  ;;  %3321 = sbr.rel (!%p3318_p4) target bundleno = 3185 (0xc71), region = 210 }
 0xc75   : >> { %3338 = vst [vmem:[%s5158_s21 + $0x40] sm:$0xff] %v3337_v43  ;;  %3340 = vst [vmem:[%s5158_s21 + $0x48] sm:$0xff] %v3339_v44  ;;  %s3711_s29 = sshll.u32 %s6063_s27, 5  ;;  %s6056_s28 = smov %s6063_s27 }
 0xc76   : >> { %s3346_s26 = scalar_lea.vmem %s5271_s10, %s3711_s29 [#allocation7]   ;;  %s3347_s21 = scalar_lea.vmem %s5989_s9, %s3711_s29  }
 0xc7b PF: > { %s6025_s30 = sand.u32 3, %s6061_s15   ;;  %s3723_s6 = sshll.u32 %s5995_s23, 5 }
 0xc7c   : > { %s6029_s7 = scalar_lea.vmem %s5271_s10, %s3723_s6 [#allocation7]   ;;  %s3354_s8 = scalar_lea.vmem %s5989_s9, %s3723_s6  }
 0xc7d   : > { %p3716_p5 = scmp.le.s32.totalorder %s6025_s30, 0 }
 0xc7e   : > { %s5172_s11 = smov (!%p3716_p5), %s3354_s8   ;;  %s5176_s12 = smov (!%p3716_p5), %s6029_s7  }
 0xc7f   : > { %3467 = sbr.rel (%p3716_p5) target bundleno = 3216 (0xc90), region = 215  ;;  %s5180_s13 = smov (!%p3716_p5), 0  }
 0xc80   : > { %s5184_s14 = smov (!%p3716_p5), 0  }
 0xc86 LB: >> { %v3364_v45 = vld [vmem:[%s5178_s12] sm:$0xff]  ;;  %s3368_s10 = sadd.s32 1, %s5182_s13  ;;  %s3358_s14 = sadd.s32 1, %s5186_s14   ;;  %s5186_s14 = sphi %s5184_s14, %s3358_s14   ;;  %s5182_s13 = sphi %s5180_s13, %s5181_s13   ;;  %s5178_s12 = sphi %s5176_s12, %s3373_s12   ;;  %s5174_s11 = sphi %s5172_s11, %s3374_s11  }
 0xc87   : >> { %v3366_v46 = vld [vmem:[%s5178_s12 + $0x20] sm:$0xff]  ;;  %3365 = vst [vmem:[%s5174_s11] sm:$0xff] %v3364_v45  ;;  %p3369_p6 = scmp.ge.s32.totalorder %s3368_s10, %s6025_s30  ;;  %p3357_p7 = scmp.ge.s32.totalorder %s3358_s14, %s6025_s30 }
 0xc88   : >> { %3367 = vst [vmem:[%s5174_s11 + $0x30] sm:$0xff] %v3366_v46 }
 0xc89   : >> { %s6065_s10 = smov (%p3369_p6, %s3368_s10), 0  ;;  %3360 = sbr.rel (!%p3357_p7) target bundleno = 3206 (0xc86), region = 221 }
 0xc8a   : >> { %s3717_s15 = sshll.u32 %s6065_s10, 3  ;;  %s5181_s13 = smov %s6065_s10  }
 0xc8b   : >> { %s3373_s12 = scalar_lea.vmem %s6029_s7, %s3717_s15 [#allocation7]   ;;  %s3374_s11 = scalar_lea.vmem %s3354_s8, %s3717_s15  }
 0xc90 PF: > { %p13_p8 = scmp.ge.s32.totalorder %s5248_s22, 4   ;;  %s6057_s18 = smov %s5150_s19 }
 0xc91   : > { %s6058_s19 = smov %s5255_s25  ;;  %s6059_s20 = smov %s5248_s22 }
 0xc92   :  { %15 = sbr.rel (!%p13_p8) target bundleno = 2 (0x2), region = 232 }
 0xc99   :  { %3396 = vsyncmov [#allocation6] }
 0xc9c   :  { %s3397_s16 = vpop.sfrf %3396 }
 0xc9d   :  { %p3721_p9 = scmp.ne.s32.totalorder %s3397_s16, 0 }
 0xc9f   :  { %3401 = shalt.err (%p3721_p9)  }

</bundles_post_ra>
